<compile_context>
chip_gen: v7x
topology: tpu7x:2x2x1
jax: 0.10.0
libtpu: 0.0.40
codegen_flags: <defaults>
</compile_context>

<pallas_src>
from functools import partial

import jax
import jax.numpy as jnp
from jax.experimental import pallas as pl
from jax.experimental.pallas import tpu as pltpu


def flowhead_kernel(x_ref, mask_ref, w1_ref, b1_ref, w2_ref, b2_ref, out_ref,
                    patch1_ref, patch2_ref, *, H, W):
    # x_ref:    (1, Cin, H*W)        mask_ref: (9, H*W)  (1.0 inside image, 0.0 at pad)
    # w1_ref:   (Chid, 9*Cin)        b1_ref:   (Chid, 1)
    # w2_ref:   (Cout, 9*Chid)       b2_ref:   (Cout, 1)
    # out_ref:  (1, Cout, H*W)
    # patch*_ref (scratch): (9*Cin, H*W) / (9*Chid, H*W) f32 im2col buffers.
    Cin = x_ref.shape[1]
    HW = x_ref.shape[2]
    Chid = w1_ref.shape[0]

    def build_patch(src, patch_ref, C):
        # Fill patch_ref (9*C, HW) with im2col rows of `src` (C, HW).
        # Tap (dy, dx): spatially shifted src; positions falling outside the
        # image (SAME zero padding) are zeroed via the precomputed mask, so any
        # roll wrap-around values are discarded too.
        for t in range(9):
            dy, dx = t // 3, t % 3
            if dy == 1 and dx == 1:                       # center tap: no shift/mask
                patch_ref[t * C:(t + 1) * C, :] = src
            else:
                shift = ((1 - dy) * W + (1 - dx)) % HW    # jnp.roll convention
                shifted = pltpu.roll(src, shift=shift, axis=1)
                patch_ref[t * C:(t + 1) * C, :] = shifted * mask_ref[t:t + 1, :]

    # ---- conv1: 3x3 SAME, Cin -> Chid, as one (Chid,9Cin)@(9Cin,HW) matmul ----
    x = x_ref[0].astype(jnp.float32)                      # (Cin, HW) lane-dense
    build_patch(x, patch1_ref, Cin)
    h = jnp.dot(w1_ref[...], patch1_ref[...],
                preferred_element_type=jnp.float32)       # (Chid, HW)
    h = jnp.maximum(h + b1_ref[...], 0.0)                 # bias + ReLU on VPU

    # ---- conv2: 3x3 SAME, Chid -> Cout(=2), as one (Cout,9Chid)@(9Chid,HW) matmul ----
    build_patch(h, patch2_ref, Chid)
    out = jnp.dot(w2_ref[...], patch2_ref[...],
                  preferred_element_type=jnp.float32)     # (Cout, HW)
    out_ref[0] = (out + b2_ref[...]).astype(out_ref.dtype)


def flowhead_pallas(x, w1, b1, w2, b2):
    """FlowHead forward.  x: (B,Cin,H,W) NCHW; w*: (Cout,Cin,3,3) OIHW; b*: (Cout,)."""
    B, Cin, H, W = x.shape
    Chid = w1.shape[0]
    Cout = w2.shape[0]
    HW = H * W

    def wprep(w):
        co, ci = w.shape[0], w.shape[1]
        # [o, c, dy, dx] -> [o, (dy*3+dx)*ci + c]  (matches patch row ordering)
        return jnp.transpose(w, (0, 2, 3, 1)).reshape(co, 9 * ci).astype(jnp.float32)

    def bprep(b):
        return b.reshape(-1, 1).astype(jnp.float32)

    # Per-tap validity masks for SAME (zero) padding, shape (9, H*W); computed
    # once outside the kernel so the VPU does no index math per grid step.
    hh = jnp.arange(H).reshape(H, 1)
    ww = jnp.arange(W).reshape(1, W)
    masks = []
    for dy in range(3):
        for dx in range(3):
            oy, ox = dy - 1, dx - 1
            valid = ((hh + oy >= 0) & (hh + oy < H) &
                     (ww + ox >= 0) & (ww + ox < W))
            masks.append(valid.reshape(HW))
    tap_mask = jnp.stack(masks, axis=0).astype(jnp.float32)   # (9, HW)

    kernel = partial(flowhead_kernel, H=H, W=W)

    out = pl.pallas_call(
        kernel,
        out_shape=jax.ShapeDtypeStruct((B, Cout, HW), x.dtype),
        grid_spec=pltpu.PrefetchScalarGridSpec(
            num_scalar_prefetch=0,
            grid=(B,),
            in_specs=[
                pl.BlockSpec((1, Cin, HW), lambda b: (b, 0, 0)),
                pl.BlockSpec((9, HW), lambda b: (0, 0)),
                pl.BlockSpec((Chid, 9 * Cin), lambda b: (0, 0)),
                pl.BlockSpec((Chid, 1), lambda b: (0, 0)),
                pl.BlockSpec((Cout, 9 * Chid), lambda b: (0, 0)),
                pl.BlockSpec((Cout, 1), lambda b: (0, 0)),
            ],
            out_specs=pl.BlockSpec((1, Cout, HW), lambda b: (b, 0, 0)),
            scratch_shapes=[
                pltpu.VMEM((9 * Cin, HW), jnp.float32),    # im2col patch, conv1
                pltpu.VMEM((9 * Chid, HW), jnp.float32),   # im2col patch, conv2
            ],
        ),
        compiler_params=pltpu.CompilerParams(
            dimension_semantics=("parallel",)),            # v7x: one batch per TC
    )(x.reshape(B, Cin, HW), tap_mask,
      wprep(w1), bprep(b1), wprep(w2), bprep(b2))
    return out.reshape(B, Cout, H, W)


# ---------------- pure-JAX reference (for correctness check) ----------------
def flowhead_ref(x, w1, b1, w2, b2):
    dn = ("NCHW", "OIHW", "NCHW")
    y = jax.lax.conv_general_dilated(
        x, w1, (1, 1), "SAME", dimension_numbers=dn,
        precision=jax.lax.Precision.HIGHEST)
    y = jnp.maximum(y + b1[None, :, None, None], 0.0)
    y = jax.lax.conv_general_dilated(
        y, w2, (1, 1), "SAME", dimension_numbers=dn,
        precision=jax.lax.Precision.HIGHEST)
    return y + b2[None, :, None, None]


if __name__ == "__main__":
    # FlowHead(input_dim=64, hidden_dim=128); output is always 2 flow channels.
    B, H, W = 2, 16, 16
    Cin, Chid, Cout = 64, 128, 2

    key = jax.random.PRNGKey(0)
    kx, k1, k2, kb1, kb2 = jax.random.split(key, 5)

    x = jax.random.normal(kx, (B, Cin, H, W), jnp.float32)

    s1 = 1.0 / jnp.sqrt(9.0 * Cin)
    s2 = 1.0 / jnp.sqrt(9.0 * Chid)
    w1 = jax.random.normal(k1, (Chid, Cin, 3, 3), jnp.float32) * s1
    b1 = jax.random.normal(kb1, (Chid,), jnp.float32) * 0.1
    w2 = jax.random.normal(k2, (Cout, Chid, 3, 3), jnp.float32) * s2
    b2 = jax.random.normal(kb2, (Cout,), jnp.float32) * 0.1

    out = flowhead_pallas(x, w1, b1, w2, b2)
    out = jax.block_until_ready(out)

    ref = flowhead_ref(x, w1, b1, w2, b2)
    ref = jax.block_until_ready(ref)

    assert out.shape == (B, Cout, H, W)
    err = float(jnp.max(jnp.abs(out - ref)))
    assert err < 2e-3, f"mismatch vs reference: max abs err = {err}"
    print("KERNEL_OK")
</pallas_src>

<mosaic_0001>
module attributes {stable_mosaic.version = 11 : i64} {
  func.func @flowhead_kernel(%arg0: i32, %arg1: memref<1x64x256xf32, #tpu.memory_space<vmem>>, %arg2: memref<9x256xf32, #tpu.memory_space<vmem>>, %arg3: memref<128x576xf32, #tpu.memory_space<vmem>>, %arg4: memref<128x1xf32, #tpu.memory_space<vmem>>, %arg5: memref<2x1152xf32, #tpu.memory_space<vmem>>, %arg6: memref<2x1xf32, #tpu.memory_space<vmem>>, %arg7: memref<1x2x256xf32, #tpu.memory_space<vmem>>, %arg8: memref<576x256xf32, #tpu.memory_space<vmem>>, %arg9: memref<1152x256xf32, #tpu.memory_space<vmem>>) attributes {dimension_semantics = [#tpu.dimension_semantics<parallel>], iteration_bounds = array<i64: 2>, scalar_prefetch = 0 : i64, scratch_operands = 2 : i64, tpu.core_type = #tpu.core_type<tc>, window_params = [{transform_indices = @transform_0, window_bounds = array<i64: 1, 64, 256>}, {pipeline_mode = #tpu.pipeline_mode<synchronous>, transform_indices = @transform_1, window_bounds = array<i64: 9, 256>}, {pipeline_mode = #tpu.pipeline_mode<synchronous>, transform_indices = @transform_2, window_bounds = array<i64: 128, 576>}, {pipeline_mode = #tpu.pipeline_mode<synchronous>, transform_indices = @transform_3, window_bounds = array<i64: 128, 1>}, {pipeline_mode = #tpu.pipeline_mode<synchronous>, transform_indices = @transform_4, window_bounds = array<i64: 2, 1152>}, {pipeline_mode = #tpu.pipeline_mode<synchronous>, transform_indices = @transform_5, window_bounds = array<i64: 2, 1>}, {transform_indices = @transform_6, window_bounds = array<i64: 1, 2, 256>}]} {
    %c0 = arith.constant 0 : index
    %c0_0 = arith.constant 0 : index
    %c0_1 = arith.constant 0 : index
    %0 = vector.load %arg1[%c0, %c0_0, %c0_1] : memref<1x64x256xf32, #tpu.memory_space<vmem>>, vector<1x64x256xf32>
    %1 = vector.shape_cast %0 : vector<1x64x256xf32> to vector<64x256xf32>
    %c17_i32 = arith.constant 17 : i32
    %2 = tpu.dynamic_rotate %1 by %c17_i32 dim 1 : vector<64x256xf32>, i32 -> vector<64x256xf32>
    %c0_2 = arith.constant 0 : index
    %c0_3 = arith.constant 0 : index
    %3 = vector.load %arg2[%c0_2, %c0_3] : memref<9x256xf32, #tpu.memory_space<vmem>>, vector<1x256xf32>
    %4 = vector.broadcast %3 : vector<1x256xf32> to vector<64x256xf32>
    %5 = arith.mulf %2, %4 : vector<64x256xf32>
    %c0_4 = arith.constant 0 : index
    %c0_5 = arith.constant 0 : index
    %6 = vector.load %arg8[%c0_4, %c0_5] : memref<576x256xf32, #tpu.memory_space<vmem>>, vector<64x256xf32>
    tpu.vector_store %arg8[%c0_4, %c0_5], %5 {strides = array<i32>} : memref<576x256xf32, #tpu.memory_space<vmem>>, vector<64x256xf32>,
    %c16_i32 = arith.constant 16 : i32
    %7 = tpu.dynamic_rotate %1 by %c16_i32 dim 1 : vector<64x256xf32>, i32 -> vector<64x256xf32>
    %c1 = arith.constant 1 : index
    %c0_6 = arith.constant 0 : index
    %8 = vector.load %arg2[%c1, %c0_6] : memref<9x256xf32, #tpu.memory_space<vmem>>, vector<1x256xf32>
    %9 = vector.broadcast %8 : vector<1x256xf32> to vector<64x256xf32>
    %10 = arith.mulf %7, %9 : vector<64x256xf32>
    %c64 = arith.constant 64 : index
    %c0_7 = arith.constant 0 : index
    %11 = vector.load %arg8[%c64, %c0_7] : memref<576x256xf32, #tpu.memory_space<vmem>>, vector<64x256xf32>
    tpu.vector_store %arg8[%c64, %c0_7], %10 {strides = array<i32>} : memref<576x256xf32, #tpu.memory_space<vmem>>, vector<64x256xf32>,
    %c15_i32 = arith.constant 15 : i32
    %12 = tpu.dynamic_rotate %1 by %c15_i32 dim 1 : vector<64x256xf32>, i32 -> vector<64x256xf32>
    %c2 = arith.constant 2 : index
    %c0_8 = arith.constant 0 : index
    %13 = vector.load %arg2[%c2, %c0_8] : memref<9x256xf32, #tpu.memory_space<vmem>>, vector<1x256xf32>
    %14 = vector.broadcast %13 : vector<1x256xf32> to vector<64x256xf32>
    %15 = arith.mulf %12, %14 : vector<64x256xf32>
    %c128 = arith.constant 128 : index
    %c0_9 = arith.constant 0 : index
    %16 = vector.load %arg8[%c128, %c0_9] : memref<576x256xf32, #tpu.memory_space<vmem>>, vector<64x256xf32>
    tpu.vector_store %arg8[%c128, %c0_9], %15 {strides = array<i32>} : memref<576x256xf32, #tpu.memory_space<vmem>>, vector<64x256xf32>,
    %c1_i32 = arith.constant 1 : i32
    %17 = tpu.dynamic_rotate %1 by %c1_i32 dim 1 : vector<64x256xf32>, i32 -> vector<64x256xf32>
    %c3 = arith.constant 3 : index
    %c0_10 = arith.constant 0 : index
    %18 = vector.load %arg2[%c3, %c0_10] : memref<9x256xf32, #tpu.memory_space<vmem>>, vector<1x256xf32>
    %19 = vector.broadcast %18 : vector<1x256xf32> to vector<64x256xf32>
    %20 = arith.mulf %17, %19 : vector<64x256xf32>
    %c192 = arith.constant 192 : index
    %c0_11 = arith.constant 0 : index
    %21 = vector.load %arg8[%c192, %c0_11] : memref<576x256xf32, #tpu.memory_space<vmem>>, vector<64x256xf32>
    tpu.vector_store %arg8[%c192, %c0_11], %20 {strides = array<i32>} : memref<576x256xf32, #tpu.memory_space<vmem>>, vector<64x256xf32>,
    %c256 = arith.constant 256 : index
    %c0_12 = arith.constant 0 : index
    %22 = vector.load %arg8[%c256, %c0_12] : memref<576x256xf32, #tpu.memory_space<vmem>>, vector<64x256xf32>
    tpu.vector_store %arg8[%c256, %c0_12], %1 {strides = array<i32>} : memref<576x256xf32, #tpu.memory_space<vmem>>, vector<64x256xf32>,
    %c255_i32 = arith.constant 255 : i32
    %23 = tpu.dynamic_rotate %1 by %c255_i32 dim 1 : vector<64x256xf32>, i32 -> vector<64x256xf32>
    %c5 = arith.constant 5 : index
    %c0_13 = arith.constant 0 : index
    %24 = vector.load %arg2[%c5, %c0_13] : memref<9x256xf32, #tpu.memory_space<vmem>>, vector<1x256xf32>
    %25 = vector.broadcast %24 : vector<1x256xf32> to vector<64x256xf32>
    %26 = arith.mulf %23, %25 : vector<64x256xf32>
    %c320 = arith.constant 320 : index
    %c0_14 = arith.constant 0 : index
    %27 = vector.load %arg8[%c320, %c0_14] : memref<576x256xf32, #tpu.memory_space<vmem>>, vector<64x256xf32>
    tpu.vector_store %arg8[%c320, %c0_14], %26 {strides = array<i32>} : memref<576x256xf32, #tpu.memory_space<vmem>>, vector<64x256xf32>,
    %c241_i32 = arith.constant 241 : i32
    %28 = tpu.dynamic_rotate %1 by %c241_i32 dim 1 : vector<64x256xf32>, i32 -> vector<64x256xf32>
    %c6 = arith.constant 6 : index
    %c0_15 = arith.constant 0 : index
    %29 = vector.load %arg2[%c6, %c0_15] : memref<9x256xf32, #tpu.memory_space<vmem>>, vector<1x256xf32>
    %30 = vector.broadcast %29 : vector<1x256xf32> to vector<64x256xf32>
    %31 = arith.mulf %28, %30 : vector<64x256xf32>
    %c384 = arith.constant 384 : index
    %c0_16 = arith.constant 0 : index
    %32 = vector.load %arg8[%c384, %c0_16] : memref<576x256xf32, #tpu.memory_space<vmem>>, vector<64x256xf32>
    tpu.vector_store %arg8[%c384, %c0_16], %31 {strides = array<i32>} : memref<576x256xf32, #tpu.memory_space<vmem>>, vector<64x256xf32>,
    %c240_i32 = arith.constant 240 : i32
    %33 = tpu.dynamic_rotate %1 by %c240_i32 dim 1 : vector<64x256xf32>, i32 -> vector<64x256xf32>
    %c7 = arith.constant 7 : index
    %c0_17 = arith.constant 0 : index
    %34 = vector.load %arg2[%c7, %c0_17] : memref<9x256xf32, #tpu.memory_space<vmem>>, vector<1x256xf32>
    %35 = vector.broadcast %34 : vector<1x256xf32> to vector<64x256xf32>
    %36 = arith.mulf %33, %35 : vector<64x256xf32>
    %c448 = arith.constant 448 : index
    %c0_18 = arith.constant 0 : index
    %37 = vector.load %arg8[%c448, %c0_18] : memref<576x256xf32, #tpu.memory_space<vmem>>, vector<64x256xf32>
    tpu.vector_store %arg8[%c448, %c0_18], %36 {strides = array<i32>} : memref<576x256xf32, #tpu.memory_space<vmem>>, vector<64x256xf32>,
    %c239_i32 = arith.constant 239 : i32
    %38 = tpu.dynamic_rotate %1 by %c239_i32 dim 1 : vector<64x256xf32>, i32 -> vector<64x256xf32>
    %c8 = arith.constant 8 : index
    %c0_19 = arith.constant 0 : index
    %39 = vector.load %arg2[%c8, %c0_19] : memref<9x256xf32, #tpu.memory_space<vmem>>, vector<1x256xf32>
    %40 = vector.broadcast %39 : vector<1x256xf32> to vector<64x256xf32>
    %41 = arith.mulf %38, %40 : vector<64x256xf32>
    %c512 = arith.constant 512 : index
    %c0_20 = arith.constant 0 : index
    %42 = vector.load %arg8[%c512, %c0_20] : memref<576x256xf32, #tpu.memory_space<vmem>>, vector<64x256xf32>
    tpu.vector_store %arg8[%c512, %c0_20], %41 {strides = array<i32>} : memref<576x256xf32, #tpu.memory_space<vmem>>, vector<64x256xf32>,
    %c0_21 = arith.constant 0 : index
    %c0_22 = arith.constant 0 : index
    %43 = vector.load %arg3[%c0_21, %c0_22] : memref<128x576xf32, #tpu.memory_space<vmem>>, vector<128x576xf32>
    %c0_23 = arith.constant 0 : index
    %c0_24 = arith.constant 0 : index
    %44 = vector.load %arg8[%c0_23, %c0_24] : memref<576x256xf32, #tpu.memory_space<vmem>>, vector<576x256xf32>
    %cst = arith.constant dense<0.000000e+00> : vector<128x256xf32>
    %45 = tpu.matmul %43, %44, %cst {dimension_numbers = #tpu.dot_dimension_numbers<[1], [0], [0], [1], [0, 0, 1, 1], [], []>} : vector<128x576xf32>, vector<576x256xf32>, vector<128x256xf32> -> vector<128x256xf32>
    %c0_25 = arith.constant 0 : index
    %c0_26 = arith.constant 0 : index
    %46 = vector.load %arg4[%c0_25, %c0_26] : memref<128x1xf32, #tpu.memory_space<vmem>>, vector<128x1xf32>
    %47 = vector.broadcast %46 : vector<128x1xf32> to vector<128x256xf32>
    %48 = arith.addf %45, %47 : vector<128x256xf32>
    %cst_27 = arith.constant 0.000000e+00 : f32
    %49 = vector.broadcast %cst_27 : f32 to vector<128x256xf32>
    %50 = arith.maximumf %48, %49 : vector<128x256xf32>
    %c17_i32_28 = arith.constant 17 : i32
    %51 = tpu.dynamic_rotate %50 by %c17_i32_28 dim 1 : vector<128x256xf32>, i32 -> vector<128x256xf32>
    %c0_29 = arith.constant 0 : index
    %c0_30 = arith.constant 0 : index
    %52 = vector.load %arg2[%c0_29, %c0_30] : memref<9x256xf32, #tpu.memory_space<vmem>>, vector<1x256xf32>
    %53 = vector.broadcast %52 : vector<1x256xf32> to vector<128x256xf32>
    %54 = arith.mulf %51, %53 : vector<128x256xf32>
    %c0_31 = arith.constant 0 : index
    %c0_32 = arith.constant 0 : index
    %55 = vector.load %arg9[%c0_31, %c0_32] : memref<1152x256xf32, #tpu.memory_space<vmem>>, vector<128x256xf32>
    tpu.vector_store %arg9[%c0_31, %c0_32], %54 {strides = array<i32>} : memref<1152x256xf32, #tpu.memory_space<vmem>>, vector<128x256xf32>,
    %c16_i32_33 = arith.constant 16 : i32
    %56 = tpu.dynamic_rotate %50 by %c16_i32_33 dim 1 : vector<128x256xf32>, i32 -> vector<128x256xf32>
    %c1_34 = arith.constant 1 : index
    %c0_35 = arith.constant 0 : index
    %57 = vector.load %arg2[%c1_34, %c0_35] : memref<9x256xf32, #tpu.memory_space<vmem>>, vector<1x256xf32>
    %58 = vector.broadcast %57 : vector<1x256xf32> to vector<128x256xf32>
    %59 = arith.mulf %56, %58 : vector<128x256xf32>
    %c128_36 = arith.constant 128 : index
    %c0_37 = arith.constant 0 : index
    %60 = vector.load %arg9[%c128_36, %c0_37] : memref<1152x256xf32, #tpu.memory_space<vmem>>, vector<128x256xf32>
    tpu.vector_store %arg9[%c128_36, %c0_37], %59 {strides = array<i32>} : memref<1152x256xf32, #tpu.memory_space<vmem>>, vector<128x256xf32>,
    %c15_i32_38 = arith.constant 15 : i32
    %61 = tpu.dynamic_rotate %50 by %c15_i32_38 dim 1 : vector<128x256xf32>, i32 -> vector<128x256xf32>
    %c2_39 = arith.constant 2 : index
    %c0_40 = arith.constant 0 : index
    %62 = vector.load %arg2[%c2_39, %c0_40] : memref<9x256xf32, #tpu.memory_space<vmem>>, vector<1x256xf32>
    %63 = vector.broadcast %62 : vector<1x256xf32> to vector<128x256xf32>
    %64 = arith.mulf %61, %63 : vector<128x256xf32>
    %c256_41 = arith.constant 256 : index
    %c0_42 = arith.constant 0 : index
    %65 = vector.load %arg9[%c256_41, %c0_42] : memref<1152x256xf32, #tpu.memory_space<vmem>>, vector<128x256xf32>
    tpu.vector_store %arg9[%c256_41, %c0_42], %64 {strides = array<i32>} : memref<1152x256xf32, #tpu.memory_space<vmem>>, vector<128x256xf32>,
    %c1_i32_43 = arith.constant 1 : i32
    %66 = tpu.dynamic_rotate %50 by %c1_i32_43 dim 1 : vector<128x256xf32>, i32 -> vector<128x256xf32>
    %c3_44 = arith.constant 3 : index
    %c0_45 = arith.constant 0 : index
    %67 = vector.load %arg2[%c3_44, %c0_45] : memref<9x256xf32, #tpu.memory_space<vmem>>, vector<1x256xf32>
    %68 = vector.broadcast %67 : vector<1x256xf32> to vector<128x256xf32>
    %69 = arith.mulf %66, %68 : vector<128x256xf32>
    %c384_46 = arith.constant 384 : index
    %c0_47 = arith.constant 0 : index
    %70 = vector.load %arg9[%c384_46, %c0_47] : memref<1152x256xf32, #tpu.memory_space<vmem>>, vector<128x256xf32>
    tpu.vector_store %arg9[%c384_46, %c0_47], %69 {strides = array<i32>} : memref<1152x256xf32, #tpu.memory_space<vmem>>, vector<128x256xf32>,
    %c512_48 = arith.constant 512 : index
    %c0_49 = arith.constant 0 : index
    %71 = vector.load %arg9[%c512_48, %c0_49] : memref<1152x256xf32, #tpu.memory_space<vmem>>, vector<128x256xf32>
    tpu.vector_store %arg9[%c512_48, %c0_49], %50 {strides = array<i32>} : memref<1152x256xf32, #tpu.memory_space<vmem>>, vector<128x256xf32>,
    %c255_i32_50 = arith.constant 255 : i32
    %72 = tpu.dynamic_rotate %50 by %c255_i32_50 dim 1 : vector<128x256xf32>, i32 -> vector<128x256xf32>
    %c5_51 = arith.constant 5 : index
    %c0_52 = arith.constant 0 : index
    %73 = vector.load %arg2[%c5_51, %c0_52] : memref<9x256xf32, #tpu.memory_space<vmem>>, vector<1x256xf32>
    %74 = vector.broadcast %73 : vector<1x256xf32> to vector<128x256xf32>
    %75 = arith.mulf %72, %74 : vector<128x256xf32>
    %c640 = arith.constant 640 : index
    %c0_53 = arith.constant 0 : index
    %76 = vector.load %arg9[%c640, %c0_53] : memref<1152x256xf32, #tpu.memory_space<vmem>>, vector<128x256xf32>
    tpu.vector_store %arg9[%c640, %c0_53], %75 {strides = array<i32>} : memref<1152x256xf32, #tpu.memory_space<vmem>>, vector<128x256xf32>,
    %c241_i32_54 = arith.constant 241 : i32
    %77 = tpu.dynamic_rotate %50 by %c241_i32_54 dim 1 : vector<128x256xf32>, i32 -> vector<128x256xf32>
    %c6_55 = arith.constant 6 : index
    %c0_56 = arith.constant 0 : index
    %78 = vector.load %arg2[%c6_55, %c0_56] : memref<9x256xf32, #tpu.memory_space<vmem>>, vector<1x256xf32>
    %79 = vector.broadcast %78 : vector<1x256xf32> to vector<128x256xf32>
    %80 = arith.mulf %77, %79 : vector<128x256xf32>
    %c768 = arith.constant 768 : index
    %c0_57 = arith.constant 0 : index
    %81 = vector.load %arg9[%c768, %c0_57] : memref<1152x256xf32, #tpu.memory_space<vmem>>, vector<128x256xf32>
    tpu.vector_store %arg9[%c768, %c0_57], %80 {strides = array<i32>} : memref<1152x256xf32, #tpu.memory_space<vmem>>, vector<128x256xf32>,
    %c240_i32_58 = arith.constant 240 : i32
    %82 = tpu.dynamic_rotate %50 by %c240_i32_58 dim 1 : vector<128x256xf32>, i32 -> vector<128x256xf32>
    %c7_59 = arith.constant 7 : index
    %c0_60 = arith.constant 0 : index
    %83 = vector.load %arg2[%c7_59, %c0_60] : memref<9x256xf32, #tpu.memory_space<vmem>>, vector<1x256xf32>
    %84 = vector.broadcast %83 : vector<1x256xf32> to vector<128x256xf32>
    %85 = arith.mulf %82, %84 : vector<128x256xf32>
    %c896 = arith.constant 896 : index
    %c0_61 = arith.constant 0 : index
    %86 = vector.load %arg9[%c896, %c0_61] : memref<1152x256xf32, #tpu.memory_space<vmem>>, vector<128x256xf32>
    tpu.vector_store %arg9[%c896, %c0_61], %85 {strides = array<i32>} : memref<1152x256xf32, #tpu.memory_space<vmem>>, vector<128x256xf32>,
    %c239_i32_62 = arith.constant 239 : i32
    %87 = tpu.dynamic_rotate %50 by %c239_i32_62 dim 1 : vector<128x256xf32>, i32 -> vector<128x256xf32>
    %c8_63 = arith.constant 8 : index
    %c0_64 = arith.constant 0 : index
    %88 = vector.load %arg2[%c8_63, %c0_64] : memref<9x256xf32, #tpu.memory_space<vmem>>, vector<1x256xf32>
    %89 = vector.broadcast %88 : vector<1x256xf32> to vector<128x256xf32>
    %90 = arith.mulf %87, %89 : vector<128x256xf32>
    %c1024 = arith.constant 1024 : index
    %c0_65 = arith.constant 0 : index
    %91 = vector.load %arg9[%c1024, %c0_65] : memref<1152x256xf32, #tpu.memory_space<vmem>>, vector<128x256xf32>
    tpu.vector_store %arg9[%c1024, %c0_65], %90 {strides = array<i32>} : memref<1152x256xf32, #tpu.memory_space<vmem>>, vector<128x256xf32>,
    %c0_66 = arith.constant 0 : index
    %c0_67 = arith.constant 0 : index
    %92 = vector.load %arg5[%c0_66, %c0_67] : memref<2x1152xf32, #tpu.memory_space<vmem>>, vector<2x1152xf32>
    %c0_68 = arith.constant 0 : index
    %c0_69 = arith.constant 0 : index
    %93 = vector.load %arg9[%c0_68, %c0_69] : memref<1152x256xf32, #tpu.memory_space<vmem>>, vector<1152x256xf32>
    %cst_70 = arith.constant dense<0.000000e+00> : vector<2x256xf32>
    %94 = tpu.matmul %92, %93, %cst_70 {dimension_numbers = #tpu.dot_dimension_numbers<[1], [0], [0], [1], [0, 0, 1, 1], [], []>} : vector<2x1152xf32>, vector<1152x256xf32>, vector<2x256xf32> -> vector<2x256xf32>
    %c0_71 = arith.constant 0 : index
    %c0_72 = arith.constant 0 : index
    %95 = vector.load %arg6[%c0_71, %c0_72] : memref<2x1xf32, #tpu.memory_space<vmem>>, vector<2x1xf32>
    %96 = vector.broadcast %95 : vector<2x1xf32> to vector<2x256xf32>
    %97 = arith.addf %94, %96 : vector<2x256xf32>
    %c0_73 = arith.constant 0 : index
    %c0_74 = arith.constant 0 : index
    %c0_75 = arith.constant 0 : index
    %98 = vector.load %arg7[%c0_73, %c0_74, %c0_75] : memref<1x2x256xf32, #tpu.memory_space<vmem>>, vector<1x2x256xf32>
    %99 = vector.shape_cast %98 : vector<1x2x256xf32> to vector<2x256xf32>
    %100 = vector.shape_cast %97 : vector<2x256xf32> to vector<1x2x256xf32>
    tpu.vector_store %arg7[%c0_73, %c0_74, %c0_75], %100 {strides = array<i32>} : memref<1x2x256xf32, #tpu.memory_space<vmem>>, vector<1x2x256xf32>,
    return
  }
  func.func @transform_0(%arg0: i32) -> (i32, i32, i32) {
    %c0_i32 = arith.constant 0 : i32
    %c0_i32_0 = arith.constant 0 : i32
    %c0_i32_1 = arith.constant 0 : i32
    return %arg0, %c0_i32, %c0_i32_0 : i32, i32, i32
  }
  func.func @transform_1(%arg0: i32) -> (i32, i32) {
    %c0_i32 = arith.constant 0 : i32
    %c0_i32_0 = arith.constant 0 : i32
    %c0_i32_1 = arith.constant 0 : i32
    return %c0_i32, %c0_i32_0 : i32, i32
  }
  func.func @transform_2(%arg0: i32) -> (i32, i32) {
    %c0_i32 = arith.constant 0 : i32
    %c0_i32_0 = arith.constant 0 : i32
    %c0_i32_1 = arith.constant 0 : i32
    return %c0_i32, %c0_i32_0 : i32, i32
  }
  func.func @transform_3(%arg0: i32) -> (i32, i32) {
    %c0_i32 = arith.constant 0 : i32
    %c0_i32_0 = arith.constant 0 : i32
    %c0_i32_1 = arith.constant 0 : i32
    return %c0_i32, %c0_i32_0 : i32, i32
  }
  func.func @transform_4(%arg0: i32) -> (i32, i32) {
    %c0_i32 = arith.constant 0 : i32
    %c0_i32_0 = arith.constant 0 : i32
    %c0_i32_1 = arith.constant 0 : i32
    return %c0_i32, %c0_i32_0 : i32, i32
  }
  func.func @transform_5(%arg0: i32) -> (i32, i32) {
    %c0_i32 = arith.constant 0 : i32
    %c0_i32_0 = arith.constant 0 : i32
    %c0_i32_1 = arith.constant 0 : i32
    return %c0_i32, %c0_i32_0 : i32, i32
  }
  func.func @transform_6(%arg0: i32) -> (i32, i32, i32) {
    %c0_i32 = arith.constant 0 : i32
    %c0_i32_0 = arith.constant 0 : i32
    %c0_i32_1 = arith.constant 0 : i32
    return %arg0, %c0_i32, %c0_i32_0 : i32, i32, i32
  }
}

</mosaic_0001>

<bundles_post_ra>
// kernel: tpu_custom_call.1
= control target key start
LH: loop header
LB: loop body
LE: loop exit
PB: predicated region body
PF: predicated region fallthrough
CT: control target
= control target key end

     0   :  { %11 = vsyncpa [#allocation5], 0  ;;  %s8021_s0 = inlined_call_operand.vmem [shape: f32[2,64,256], index: 0, kind: input, shape index: {}]   ;;  %s8022_s1 = inlined_call_operand.vmem [shape: f32[9,256], index: 1, kind: input, shape index: {}]   ;;  %s8023_s2 = inlined_call_operand.vmem [shape: f32[128,576], index: 2, kind: input, shape index: {}]   ;;  %s8024_s3 = inlined_call_operand.vmem [shape: f32[128,1], index: 3, kind: input, shape index: {}]   ;;  %s8025_s4 = inlined_call_operand.vmem [shape: f32[2,1152], index: 4, kind: input, shape index: {}]   ;;  %s8026_s5 = inlined_call_operand.vmem [shape: f32[2,1], index: 5, kind: input, shape index: {}]   ;;  %s8027_s6 = inlined_call_operand.hbm [shape: f32[2,2,256], index: 6, kind: output, shape index: {}]  }
   0x1   :  { %13 = vsyncpa [#allocation5 + $0x1], 0  ;;  %s4867_s21 = smov 0   ;;  %s4869_s22 = smov 0  }
   0x2   :  { %s4871_s23 = smov 0   ;;  %s4873_s24 = smov 0  }
   0x3 LB: > { %s4888_s25 = sadd.s32 4294967295, %s4818_s24   ;;  %s4118_s26 = sadd.s32 4294967294, %s4818_s24   ;;  %s4818_s24 = sphi %s4873_s24, %s8265_s24   ;;  %s4814_s23 = sphi %s4871_s23, %s8264_s23   ;;  %s4810_s22 = sphi %s4869_s22, %s8263_s22   ;;  %s4806_s21 = sphi %s4867_s21, %s8262_s21  }
   0x4   : > { %s4892_s27 = sadd.s32 1, %s4818_s24   ;;  %s157_s28 = sadd.s32 1, %s4814_s23 }
   0x5   : > { %s154_s29 = ssub.s32 %s4818_s24, %s4892_s27  ;;  %p167_p0 = scmp.ne.s32.totalorder %s4814_s23, %s4810_s22 }
   0x6   : > { %p155_p1 = scmp.eq.s32.totalorder %s154_s29, 0  ;;  %p168_p2 = scmp.eq.s32.totalorder %s4888_s25, 1 }
   0x7   : > { %p173_p3 = scmp.ne.s32.totalorder %s4810_s22, %s4806_s21  ;;  %p174_p4 = scmp.eq.s32.totalorder %s4118_s26, 1 }
   0x8   : > { %s4903_s30 = scalar_select %p155_p1, %s4814_s23, %s157_s28  }
   0x9   : > { %p4905_p5 = por %p168_p2, %p167_p0  ;;  %p4909_p6 = por %p174_p4, %p173_p3 }
   0xa   : > { %p4121_p7 = scmp.ge.s32.totalorder %s4818_s24, 1  ;;  %p215_p8 = scmp.lt.s32.totalorder %s4818_s24, 3 }
   0xc   : > { %p216_p9 = pnand %p4121_p7, %p215_p8 }
   0xe   : > { %219 = sbr.rel (%p216_p9) target bundleno = 1486 (0x5ce), region = 44 }
  0x15   : > { %p245_p10 = scmp.lt.s32.totalorder %s4888_s25, 1  ;;  %s4820_s14 = smov 17   ;;  %v298_v16 = vlaneseq  ;;  %v317_v20 = vld [vmem:[%s8022_s1] ss:$8 sm:$0x3]  ;;  %vm1355_vm8 = vcmask 523264  }
  0x16   : > { %s4821_s15 = smov 16   ;;  %s4822_s16 = smov 15   ;;  %v1036_v36 = vld [vmem:[%s8023_s2 + $0x8] sm:$0xff] }
  0x17   : > { %s246_s9 = scalar_select %p245_p10, %s4888_s25, 1  ;;  %v5078_v17 = vshrl.u32 %v298_v16, 7  ;;  %v5084_v18 = vand.u32 127, %v298_v16  ;;  %1468 = vmatprep.mubr.f32.mxu0 %v1036_v36 }
  0x18   : > { %s4823_s17 = smov 1   ;;  %s4824_s28 = smov 127  }
  0x19   : > { %s4162_s10 = sshll.u32 %s246_s9, 7  ;;  %v5087_v19 = vsub.s32 1, %v5078_v17  ;;  %v5097_v21 = vsub.s32 0, %v5078_v17  ;;  %vm300_vm0 = vcmp.lt.s32.totalorder %v5084_v18, 17  ;;  %vm393_vm1 = vcmp.lt.s32.totalorder %v5084_v18, 16  ;;  %s8028_s18 = smov 111  }
  0x1a   : > { %s4920_s13 = scalar_lea.vmem %s8021_s0, %s4162_s10  ;;  %s4825_s10 = smov 113   ;;  %vm487_vm2 = vcmp.lt.s32.totalorder %v5084_v18, 15  ;;  %vm581_vm3 = vcmp.lt.s32.totalorder %v5084_v18, 1  ;;  %vm691_vm4 = vcmp.lt.s32.totalorder %v5084_v18, 127  ;;  %vm785_vm5 = vcmp.lt.s32.totalorder %v5084_v18, 113 }
  0x1b   : > { %v4923_v0 = vld [vmem:[%s4920_s13 + $0x8] sm:$0xff]  ;;  %v4926_v1 = vld [vmem:[%s4920_s13] sm:$0xff]  ;;  %v4933_v2 = vld [vmem:[%s4920_s13 + $0x18] sm:$0xff]  ;;  %8126 = vst [vmem:[#allocation7_spill] sm:$0xff] %v5087_v19  ;;  %v5101_v24 = vrot.slane %v317_v20, %v5087_v19  ;;  %v5110_v26 = vrot.slane %v317_v20, %v5097_v21  ;;  %vm879_vm6 = vcmp.lt.s32.totalorder %v5084_v18, 112  ;;  %vm973_vm7 = vcmp.lt.s32.totalorder %v5084_v18, 111 }
  0x1c   : > { %282 = vrot.lane.b32.xlu1 %v4923_v0, %s4820_s14  ;;  %266 = vrot.lane.b32.xlu0 %v4926_v1, %s4820_s14  ;;  %v4936_v3 = vld [vmem:[%s4920_s13 + $0x10] sm:$0xff]  ;;  %v4946_v5 = vld [vmem:[%s4920_s13 + $0x20] sm:$0xff]  ;;  %s8206_s11 = smov 111  }
  0x1d   : > { %v4943_v4 = vld [vmem:[%s4920_s13 + $0x30] sm:$0xff]  ;;  %v4953_v6 = vld [vmem:[%s4920_s13 + $0x38] sm:$0xff]  ;;  %v4956_v7 = vld [vmem:[%s4920_s13 + $0x28] sm:$0xff] }
  0x1e   : > { %v4963_v8 = vld [vmem:[%s4920_s13 + $0x50] sm:$0xff]  ;;  %v4966_v9 = vld [vmem:[%s4920_s13 + $0x40] sm:$0xff]  ;;  %v4973_v10 = vld [vmem:[%s4920_s13 + $0x58] sm:$0xff] }
  0x1f   : > { %v4976_v11 = vld [vmem:[%s4920_s13 + $0x48] sm:$0xff]  ;;  %v4983_v12 = vld [vmem:[%s4920_s13 + $0x70] sm:$0xff]  ;;  %v4986_v13 = vld [vmem:[%s4920_s13 + $0x60] sm:$0xff] }
  0x20   : > { %284 = vrot.lane.b32.xlu1 %v4933_v2, %s4820_s14  ;;  %268 = vrot.lane.b32.xlu0 %v4936_v3, %s4820_s14  ;;  %v4993_v14 = vld [vmem:[%s4920_s13 + $0x78] sm:$0xff]  ;;  %v4996_v15 = vld [vmem:[%s4920_s13 + $0x68] sm:$0xff]  ;;  %s4826_s13 = smov 112  }
  0x24   : > { %272 = vrot.lane.b32.xlu1 %v4943_v4, %s4820_s14  ;;  %270 = vrot.lane.b32.xlu0 %v4946_v5, %s4820_s14 }
  0x28   : > { %288 = vrot.lane.b32.xlu1 %v4953_v6, %s4820_s14  ;;  %286 = vrot.lane.b32.xlu0 %v4956_v7, %s4820_s14 }
  0x2c   : > { %276 = vrot.lane.b32.xlu1 %v4963_v8, %s4820_s14  ;;  %274 = vrot.lane.b32.xlu0 %v4966_v9, %s4820_s14 }
  0x30   : > { %292 = vrot.lane.b32.xlu1 %v4973_v10, %s4820_s14  ;;  %290 = vrot.lane.b32.xlu0 %v4976_v11, %s4820_s14 }
  0x34   : > { %280 = vrot.lane.b32.xlu1 %v4983_v12, %s4820_s14  ;;  %278 = vrot.lane.b32.xlu0 %v4986_v13, %s4820_s14 }
  0x38   : > { %296 = vrot.lane.b32.xlu1 %v4993_v14, %s4820_s14  ;;  %294 = vrot.lane.b32.xlu0 %v4996_v15, %s4820_s14 }
  0x3c   : > { %363 = vrot.lane.b32.xlu1 %v4936_v3, %s4821_s15  ;;  %361 = vrot.lane.b32.xlu0 %v4926_v1, %s4821_s15 }
  0x40   : > { %379 = vrot.lane.b32.xlu1 %v4933_v2, %s4821_s15  ;;  %377 = vrot.lane.b32.xlu0 %v4923_v0, %s4821_s15 }
  0x44   : > { %367 = vrot.lane.b32.xlu1 %v4943_v4, %s4821_s15  ;;  %365 = vrot.lane.b32.xlu0 %v4946_v5, %s4821_s15 }
  0x48   : > { %383 = vrot.lane.b32.xlu1 %v4953_v6, %s4821_s15  ;;  %381 = vrot.lane.b32.xlu0 %v4956_v7, %s4821_s15 }
  0x4c   : > { %371 = vrot.lane.b32.xlu1 %v4963_v8, %s4821_s15  ;;  %369 = vrot.lane.b32.xlu0 %v4966_v9, %s4821_s15 }
  0x50   : > { %387 = vrot.lane.b32.xlu1 %v4973_v10, %s4821_s15  ;;  %385 = vrot.lane.b32.xlu0 %v4976_v11, %s4821_s15 }
  0x54   : > { %375 = vrot.lane.b32.xlu1 %v4983_v12, %s4821_s15  ;;  %373 = vrot.lane.b32.xlu0 %v4986_v13, %s4821_s15 }
  0x58   : > { %391 = vrot.lane.b32.xlu1 %v4993_v14, %s4821_s15  ;;  %389 = vrot.lane.b32.xlu0 %v4996_v15, %s4821_s15 }
  0x5c   : > { %457 = vrot.lane.b32.xlu1 %v4936_v3, %s4822_s16  ;;  %455 = vrot.lane.b32.xlu0 %v4926_v1, %s4822_s16 }
  0x60   : > { %473 = vrot.lane.b32.xlu1 %v4933_v2, %s4822_s16  ;;  %471 = vrot.lane.b32.xlu0 %v4923_v0, %s4822_s16 }
  0x64   : > { %461 = vrot.lane.b32.xlu1 %v4943_v4, %s4822_s16  ;;  %459 = vrot.lane.b32.xlu0 %v4946_v5, %s4822_s16 }
  0x68   : > { %477 = vrot.lane.b32.xlu1 %v4953_v6, %s4822_s16  ;;  %475 = vrot.lane.b32.xlu0 %v4956_v7, %s4822_s16 }
  0x6c   : > { %465 = vrot.lane.b32.xlu1 %v4963_v8, %s4822_s16  ;;  %463 = vrot.lane.b32.xlu0 %v4966_v9, %s4822_s16 }
  0x70   : > { %481 = vrot.lane.b32.xlu1 %v4973_v10, %s4822_s16  ;;  %479 = vrot.lane.b32.xlu0 %v4976_v11, %s4822_s16 }
  0x74   : > { %469 = vrot.lane.b32.xlu1 %v4983_v12, %s4822_s16  ;;  %467 = vrot.lane.b32.xlu0 %v4986_v13, %s4822_s16 }
  0x78   : > { %485 = vrot.lane.b32.xlu1 %v4993_v14, %s4822_s16  ;;  %483 = vrot.lane.b32.xlu0 %v4996_v15, %s4822_s16 }
  0x7c   : > { %551 = vrot.lane.b32.xlu1 %v4936_v3, %s4823_s17  ;;  %549 = vrot.lane.b32.xlu0 %v4926_v1, %s4823_s17 }
  0x80   : > { %567 = vrot.lane.b32.xlu1 %v4933_v2, %s4823_s17  ;;  %565 = vrot.lane.b32.xlu0 %v4923_v0, %s4823_s17 }
  0x84   : > { %555 = vrot.lane.b32.xlu1 %v4943_v4, %s4823_s17  ;;  %553 = vrot.lane.b32.xlu0 %v4946_v5, %s4823_s17 }
  0x88   : > { %571 = vrot.lane.b32.xlu1 %v4953_v6, %s4823_s17  ;;  %569 = vrot.lane.b32.xlu0 %v4956_v7, %s4823_s17 }
  0x8c   : > { %559 = vrot.lane.b32.xlu1 %v4963_v8, %s4823_s17  ;;  %557 = vrot.lane.b32.xlu0 %v4966_v9, %s4823_s17 }
  0x8e   : > { %v283_v22 = vpop.permute.xlu1 %282  ;;  %v267_v23 = vpop.permute.xlu0 %266 }
  0x8f   : > { %v301_v25 = vsel %vm300_vm0, %v267_v23, %v283_v22  ;;  %v309_v27 = vsel %vm300_vm0, %v283_v22, %v267_v23 }
  0x90   : > { %575 = vrot.lane.b32.xlu1 %v4973_v10, %s4823_s17  ;;  %573 = vrot.lane.b32.xlu0 %v4976_v11, %s4823_s17  ;;  %v330_v32 = vmul.f32 %v5101_v24, %v301_v25  ;;  %v329_v34 = vmul.f32 %v5110_v26, %v309_v27 }
  0x92   : > { %v285_v28 = vpop.permute.xlu1 %284  ;;  %v269_v29 = vpop.permute.xlu0 %268 }
  0x93   : > { %v310_v30 = vsel %vm300_vm0, %v285_v28, %v269_v29  ;;  %v302_v31 = vsel %vm300_vm0, %v269_v29, %v285_v28 }
  0x94   : > { %563 = vrot.lane.b32.xlu1 %v4983_v12, %s4823_s17  ;;  %561 = vrot.lane.b32.xlu0 %v4986_v13, %s4823_s17  ;;  %v332_v33 = vmul.f32 %v5101_v24, %v302_v31  ;;  %v331_v35 = vmul.f32 %v5110_v26, %v310_v30 }
  0x96   : > { %v273_v37 = vpop.permute.xlu1 %272  ;;  %v271_v38 = vpop.permute.xlu0 %270  ;;  %v4164_v39 = vpack.c.bf16 %v332_v33, %v330_v32  ;;  %v4166_v40 = vpack.c.bf16 %v331_v35, %v329_v34 }
  0x98   : > { %579 = vrot.lane.b32.xlu1 %v4993_v14, %s4823_s17  ;;  %577 = vrot.lane.b32.xlu0 %v4996_v15, %s4823_s17 }
  0x99   : > { %4165 = vmatprep.subr.bf16.mxu0 %v4164_v39 }
  0x9a   : > { %4167 = vmatpush1.bf16.msra.mxu0 %v4166_v40  ;;  %v289_v41 = vpop.permute.xlu1 %288  ;;  %v287_v42 = vpop.permute.xlu0 %286 }
  0x9b   : > { %v304_v43 = vsel %vm300_vm0, %v273_v37, %v289_v41  ;;  %v312_v44 = vsel %vm300_vm0, %v289_v41, %v273_v37  ;;  %v303_v45 = vsel %vm300_vm0, %v271_v38, %v287_v42  ;;  %v311_v46 = vsel %vm300_vm0, %v287_v42, %v271_v38  ;;  %v4125_v37 = vld [vmem:[%s8022_s1 + $0x1] ss:$8 sm:$0x3] }
  0x9c   : > { %v335_v47 = vmul.f32 %v5110_v26, %v312_v44  ;;  %v336_v48 = vmul.f32 %v5101_v24, %v304_v43  ;;  %v333_v49 = vmul.f32 %v5110_v26, %v311_v46  ;;  %v334_v50 = vmul.f32 %v5101_v24, %v303_v45  ;;  %661 = vrot.lane.b32.xlu1 %v4936_v3, %s4824_s28 }
  0x9d   : > { %659 = vrot.lane.b32.xlu0 %v4926_v1, %s4824_s28 }
  0x9e   : > { %v277_v51 = vpop.permute.xlu1 %276  ;;  %v275_v52 = vpop.permute.xlu0 %274  ;;  %v4168_v53 = vpack.c.bf16 %v336_v48, %v334_v50  ;;  %v4170_v54 = vpack.c.bf16 %v335_v47, %v333_v49 }
  0xa0   : > { %677 = vrot.lane.b32.xlu1 %v4933_v2, %s4824_s28  ;;  %4169 = vmatprep.subr.bf16.mxu0 %v4168_v53 }
  0xa1   : > { %675 = vrot.lane.b32.xlu0 %v4923_v0, %s4824_s28  ;;  %4171 = vmatpush1.bf16.msra.mxu0 %v4170_v54 }
  0xa2   : > { %v293_v55 = vpop.permute.xlu1 %292  ;;  %v291_v56 = vpop.permute.xlu0 %290 }
  0xa3   : > { %v306_v57 = vsel %vm300_vm0, %v277_v51, %v293_v55  ;;  %v314_v58 = vsel %vm300_vm0, %v293_v55, %v277_v51  ;;  %v305_v59 = vsel %vm300_vm0, %v275_v52, %v291_v56  ;;  %v313_v60 = vsel %vm300_vm0, %v291_v56, %v275_v52 }
  0xa4   : > { %v339_v61 = vmul.f32 %v5110_v26, %v314_v58  ;;  %v340_v62 = vmul.f32 %v5101_v24, %v306_v57  ;;  %v337_v63 = vmul.f32 %v5110_v26, %v313_v60  ;;  %v338_v16 = vmul.f32 %v5101_v24, %v305_v59  ;;  %665 = vrot.lane.b32.xlu1 %v4943_v4, %s4824_s28 }
  0xa5   : > { %663 = vrot.lane.b32.xlu0 %v4946_v5, %s4824_s28 }
  0xa6   : > { %v281_v20 = vpop.permute.xlu1 %280  ;;  %v279_v22 = vpop.permute.xlu0 %278  ;;  %v4172_v23 = vpack.c.bf16 %v340_v62, %v338_v16  ;;  %v4174_v25 = vpack.c.bf16 %v339_v61, %v337_v63 }
  0xa8   : > { %681 = vrot.lane.b32.xlu1 %v4953_v6, %s4824_s28  ;;  %4173 = vmatprep.subr.bf16.mxu0 %v4172_v23 }
  0xa9   : > { %679 = vrot.lane.b32.xlu0 %v4956_v7, %s4824_s28  ;;  %4175 = vmatpush1.bf16.msra.mxu0 %v4174_v25 }
  0xaa   : > { %v297_v27 = vpop.permute.xlu1 %296  ;;  %v295_v28 = vpop.permute.xlu0 %294 }
  0xab   : > { %v308_v29 = vsel %vm300_vm0, %v281_v20, %v297_v27  ;;  %v316_v30 = vsel %vm300_vm0, %v297_v27, %v281_v20  ;;  %v307_v31 = vsel %vm300_vm0, %v279_v22, %v295_v28  ;;  %v315_v32 = vsel %vm300_vm0, %v295_v28, %v279_v22 }
  0xac   : > { %v343_v33 = vmul.f32 %v5110_v26, %v316_v30  ;;  %v344_v34 = vmul.f32 %v5101_v24, %v308_v29  ;;  %v341_v35 = vmul.f32 %v5110_v26, %v315_v32  ;;  %v342_v36 = vmul.f32 %v5101_v24, %v307_v31  ;;  %669 = vrot.lane.b32.xlu1 %v4963_v8, %s4824_s28 }
  0xad   : > { %667 = vrot.lane.b32.xlu0 %v4966_v9, %s4824_s28  ;;  %v5196_v24 = vrot.slane %v4125_v37, %v5097_v21  ;;  %v5199_v26 = vrot.slane %v4125_v37, %v5087_v19 }
  0xae   : > { %v364_v38 = vpop.permute.xlu1 %363  ;;  %v362_v39 = vpop.permute.xlu0 %361  ;;  %v4176_v40 = vpack.c.bf16 %v344_v34, %v342_v36  ;;  %v4178_v41 = vpack.c.bf16 %v343_v33, %v341_v35 }
  0xb0   : > { %685 = vrot.lane.b32.xlu1 %v4973_v10, %s4824_s28  ;;  %4177 = vmatprep.subr.bf16.mxu0 %v4176_v40 }
  0xb1   : > { %683 = vrot.lane.b32.xlu0 %v4976_v11, %s4824_s28  ;;  %4179 = vmatpush1.bf16.msra.mxu0 %v4178_v41 }
  0xb2   : > { %v380_v42 = vpop.permute.xlu1 %379  ;;  %v378_v43 = vpop.permute.xlu0 %377 }
  0xb3   : > { %v395_v44 = vsel %vm393_vm1, %v364_v38, %v380_v42  ;;  %v403_v45 = vsel %vm393_vm1, %v380_v42, %v364_v38  ;;  %v394_v46 = vsel %vm393_vm1, %v362_v39, %v378_v43  ;;  %v402_v47 = vsel %vm393_vm1, %v378_v43, %v362_v39 }
  0xb4   : > { %v425_v48 = vmul.f32 %v5196_v24, %v403_v45  ;;  %v426_v49 = vmul.f32 %v5199_v26, %v395_v44  ;;  %v423_v50 = vmul.f32 %v5196_v24, %v402_v47  ;;  %v424_v51 = vmul.f32 %v5199_v26, %v394_v46  ;;  %673 = vrot.lane.b32.xlu1 %v4983_v12, %s4824_s28 }
  0xb5   : > { %671 = vrot.lane.b32.xlu0 %v4986_v13, %s4824_s28 }
  0xb6   : > { %v368_v52 = vpop.permute.xlu1 %367  ;;  %v366_v53 = vpop.permute.xlu0 %365  ;;  %v4180_v54 = vpack.c.bf16 %v426_v49, %v424_v51  ;;  %v4182_v55 = vpack.c.bf16 %v425_v48, %v423_v50 }
  0xb8   : > { %689 = vrot.lane.b32.xlu1 %v4993_v14, %s4824_s28  ;;  %4181 = vmatprep.subr.bf16.mxu0 %v4180_v54 }
  0xb9   : > { %687 = vrot.lane.b32.xlu0 %v4996_v15, %s4824_s28  ;;  %4183 = vmatpush1.bf16.msra.mxu0 %v4182_v55 }
  0xba   : > { %v384_v56 = vpop.permute.xlu1 %383  ;;  %v382_v57 = vpop.permute.xlu0 %381 }
  0xbb   : > { %v397_v58 = vsel %vm393_vm1, %v368_v52, %v384_v56  ;;  %v405_v59 = vsel %vm393_vm1, %v384_v56, %v368_v52  ;;  %v396_v60 = vsel %vm393_vm1, %v366_v53, %v382_v57  ;;  %v404_v61 = vsel %vm393_vm1, %v382_v57, %v366_v53  ;;  %v4126_v52 = vld [vmem:[%s8022_s1 + $0x2] ss:$8 sm:$0x3] }
  0xbc   : > { %v429_v62 = vmul.f32 %v5196_v24, %v405_v59  ;;  %v430_v63 = vmul.f32 %v5199_v26, %v397_v58  ;;  %v427_v16 = vmul.f32 %v5196_v24, %v404_v61  ;;  %v428_v20 = vmul.f32 %v5199_v26, %v396_v60  ;;  %755 = vrot.lane.b32.xlu1 %v4936_v3, %s4825_s10 }
  0xbd   : > { %753 = vrot.lane.b32.xlu0 %v4926_v1, %s4825_s10 }
  0xbe   : > { %v372_v22 = vpop.permute.xlu1 %371  ;;  %v370_v23 = vpop.permute.xlu0 %369  ;;  %v4184_v25 = vpack.c.bf16 %v430_v63, %v428_v20  ;;  %v4186_v27 = vpack.c.bf16 %v429_v62, %v427_v16 }
  0xc0   : > { %771 = vrot.lane.b32.xlu1 %v4933_v2, %s4825_s10  ;;  %4185 = vmatprep.subr.bf16.mxu0 %v4184_v25 }
  0xc1   : > { %769 = vrot.lane.b32.xlu0 %v4923_v0, %s4825_s10  ;;  %4187 = vmatpush1.bf16.msra.mxu0 %v4186_v27 }
  0xc2   : > { %v388_v28 = vpop.permute.xlu1 %387  ;;  %v386_v29 = vpop.permute.xlu0 %385 }
  0xc3   : > { %v399_v30 = vsel %vm393_vm1, %v372_v22, %v388_v28  ;;  %v407_v31 = vsel %vm393_vm1, %v388_v28, %v372_v22  ;;  %v398_v32 = vsel %vm393_vm1, %v370_v23, %v386_v29  ;;  %v406_v33 = vsel %vm393_vm1, %v386_v29, %v370_v23 }
  0xc4   : > { %v433_v34 = vmul.f32 %v5196_v24, %v407_v31  ;;  %v434_v35 = vmul.f32 %v5199_v26, %v399_v30  ;;  %v431_v36 = vmul.f32 %v5196_v24, %v406_v33  ;;  %v432_v37 = vmul.f32 %v5199_v26, %v398_v32  ;;  %759 = vrot.lane.b32.xlu1 %v4943_v4, %s4825_s10 }
  0xc5   : > { %757 = vrot.lane.b32.xlu0 %v4946_v5, %s4825_s10 }
  0xc6   : > { %v376_v38 = vpop.permute.xlu1 %375  ;;  %v374_v39 = vpop.permute.xlu0 %373  ;;  %v4188_v40 = vpack.c.bf16 %v434_v35, %v432_v37  ;;  %v4190_v41 = vpack.c.bf16 %v433_v34, %v431_v36 }
  0xc8   : > { %775 = vrot.lane.b32.xlu1 %v4953_v6, %s4825_s10  ;;  %4189 = vmatprep.subr.bf16.mxu0 %v4188_v40 }
  0xc9   : > { %773 = vrot.lane.b32.xlu0 %v4956_v7, %s4825_s10  ;;  %4191 = vmatpush1.bf16.msra.mxu0 %v4190_v41 }
  0xca   : > { %v392_v42 = vpop.permute.xlu1 %391  ;;  %v390_v43 = vpop.permute.xlu0 %389 }
  0xcb   : > { %v401_v44 = vsel %vm393_vm1, %v376_v38, %v392_v42  ;;  %v409_v45 = vsel %vm393_vm1, %v392_v42, %v376_v38  ;;  %v400_v46 = vsel %vm393_vm1, %v374_v39, %v390_v43  ;;  %v408_v47 = vsel %vm393_vm1, %v390_v43, %v374_v39 }
  0xcc   : > { %v437_v48 = vmul.f32 %v5196_v24, %v409_v45  ;;  %v438_v49 = vmul.f32 %v5199_v26, %v401_v44  ;;  %v435_v50 = vmul.f32 %v5196_v24, %v408_v47  ;;  %v436_v51 = vmul.f32 %v5199_v26, %v400_v46  ;;  %763 = vrot.lane.b32.xlu1 %v4963_v8, %s4825_s10 }
  0xcd   : > { %761 = vrot.lane.b32.xlu0 %v4966_v9, %s4825_s10  ;;  %v5286_v24 = vrot.slane %v4126_v52, %v5097_v21  ;;  %v5289_v26 = vrot.slane %v4126_v52, %v5087_v19 }
  0xce   : > { %v458_v53 = vpop.permute.xlu1 %457  ;;  %v456_v54 = vpop.permute.xlu0 %455  ;;  %v4192_v55 = vpack.c.bf16 %v438_v49, %v436_v51  ;;  %v4194_v56 = vpack.c.bf16 %v437_v48, %v435_v50 }
  0xd0   : > { %779 = vrot.lane.b32.xlu1 %v4973_v10, %s4825_s10  ;;  %4193 = vmatprep.subr.bf16.mxu0 %v4192_v55 }
  0xd1   : > { %777 = vrot.lane.b32.xlu0 %v4976_v11, %s4825_s10  ;;  %4195 = vmatpush1.bf16.msra.mxu0 %v4194_v56 }
  0xd2   : > { %v474_v57 = vpop.permute.xlu1 %473  ;;  %v472_v58 = vpop.permute.xlu0 %471 }
  0xd3   : > { %v489_v59 = vsel %vm487_vm2, %v458_v53, %v474_v57  ;;  %v497_v60 = vsel %vm487_vm2, %v474_v57, %v458_v53  ;;  %v488_v61 = vsel %vm487_vm2, %v456_v54, %v472_v58  ;;  %v496_v62 = vsel %vm487_vm2, %v472_v58, %v456_v54 }
  0xd4   : > { %v519_v63 = vmul.f32 %v5286_v24, %v497_v60  ;;  %v520_v16 = vmul.f32 %v5289_v26, %v489_v59  ;;  %v517_v20 = vmul.f32 %v5286_v24, %v496_v62  ;;  %v518_v22 = vmul.f32 %v5289_v26, %v488_v61  ;;  %767 = vrot.lane.b32.xlu1 %v4983_v12, %s4825_s10 }
  0xd5   : > { %765 = vrot.lane.b32.xlu0 %v4986_v13, %s4825_s10 }
  0xd6   : > { %v462_v23 = vpop.permute.xlu1 %461  ;;  %v460_v25 = vpop.permute.xlu0 %459  ;;  %v4196_v27 = vpack.c.bf16 %v520_v16, %v518_v22  ;;  %v4198_v28 = vpack.c.bf16 %v519_v63, %v517_v20 }
  0xd8   : > { %783 = vrot.lane.b32.xlu1 %v4993_v14, %s4825_s10  ;;  %4197 = vmatprep.subr.bf16.mxu0 %v4196_v27 }
  0xd9   : > { %781 = vrot.lane.b32.xlu0 %v4996_v15, %s4825_s10  ;;  %4199 = vmatpush1.bf16.msra.mxu0 %v4198_v28 }
  0xda   : > { %v478_v29 = vpop.permute.xlu1 %477  ;;  %v476_v30 = vpop.permute.xlu0 %475 }
  0xdb   : > { %v491_v31 = vsel %vm487_vm2, %v462_v23, %v478_v29  ;;  %v499_v32 = vsel %vm487_vm2, %v478_v29, %v462_v23  ;;  %v490_v33 = vsel %vm487_vm2, %v460_v25, %v476_v30  ;;  %v498_v34 = vsel %vm487_vm2, %v476_v30, %v460_v25  ;;  %v4127_v23 = vld [vmem:[%s8022_s1 + $0x3] ss:$8 sm:$0x3] }
  0xdc   : > { %v523_v35 = vmul.f32 %v5286_v24, %v499_v32  ;;  %v524_v36 = vmul.f32 %v5289_v26, %v491_v31  ;;  %v521_v37 = vmul.f32 %v5286_v24, %v498_v34  ;;  %v522_v38 = vmul.f32 %v5289_v26, %v490_v33  ;;  %849 = vrot.lane.b32.xlu1 %v4936_v3, %s4826_s13 }
  0xdd   : > { %847 = vrot.lane.b32.xlu0 %v4926_v1, %s4826_s13 }
  0xde   : > { %v466_v39 = vpop.permute.xlu1 %465  ;;  %v464_v40 = vpop.permute.xlu0 %463  ;;  %v4200_v41 = vpack.c.bf16 %v524_v36, %v522_v38  ;;  %v4202_v42 = vpack.c.bf16 %v523_v35, %v521_v37 }
  0xe0   : > { %865 = vrot.lane.b32.xlu1 %v4933_v2, %s4826_s13  ;;  %4201 = vmatprep.subr.bf16.mxu0 %v4200_v41 }
  0xe1   : > { %863 = vrot.lane.b32.xlu0 %v4923_v0, %s4826_s13  ;;  %4203 = vmatpush1.bf16.msra.mxu0 %v4202_v42 }
  0xe2   : > { %v482_v43 = vpop.permute.xlu1 %481  ;;  %v480_v44 = vpop.permute.xlu0 %479 }
  0xe3   : > { %v493_v45 = vsel %vm487_vm2, %v466_v39, %v482_v43  ;;  %v501_v46 = vsel %vm487_vm2, %v482_v43, %v466_v39  ;;  %v492_v47 = vsel %vm487_vm2, %v464_v40, %v480_v44  ;;  %v500_v48 = vsel %vm487_vm2, %v480_v44, %v464_v40 }
  0xe4   : > { %v527_v49 = vmul.f32 %v5286_v24, %v501_v46  ;;  %v528_v50 = vmul.f32 %v5289_v26, %v493_v45  ;;  %v525_v51 = vmul.f32 %v5286_v24, %v500_v48  ;;  %v526_v52 = vmul.f32 %v5289_v26, %v492_v47  ;;  %943 = vrot.lane.b32.xlu1 %v4936_v3, %s8028_s18 }
  0xe5   : > { %941 = vrot.lane.b32.xlu0 %v4926_v1, %s8028_s18 }
  0xe6   : > { %v470_v53 = vpop.permute.xlu1 %469  ;;  %v468_v54 = vpop.permute.xlu0 %467  ;;  %v4204_v55 = vpack.c.bf16 %v528_v50, %v526_v52  ;;  %v4206_v56 = vpack.c.bf16 %v527_v49, %v525_v51 }
  0xe8   : > { %959 = vrot.lane.b32.xlu1 %v4933_v2, %s8028_s18  ;;  %4205 = vmatprep.subr.bf16.mxu0 %v4204_v55 }
  0xe9   : > { %957 = vrot.lane.b32.xlu0 %v4923_v0, %s8028_s18  ;;  %4207 = vmatpush1.bf16.msra.mxu0 %v4206_v56 }
  0xea   : > { %v486_v57 = vpop.permute.xlu1 %485  ;;  %v484_v58 = vpop.permute.xlu0 %483 }
  0xeb   : > { %v495_v59 = vsel %vm487_vm2, %v470_v53, %v486_v57  ;;  %v503_v60 = vsel %vm487_vm2, %v486_v57, %v470_v53  ;;  %v494_v61 = vsel %vm487_vm2, %v468_v54, %v484_v58  ;;  %v502_v62 = vsel %vm487_vm2, %v484_v58, %v468_v54 }
  0xec   : > { %v531_v63 = vmul.f32 %v5286_v24, %v503_v60  ;;  %v532_v16 = vmul.f32 %v5289_v26, %v495_v59  ;;  %v529_v20 = vmul.f32 %v5286_v24, %v502_v62  ;;  %v530_v22 = vmul.f32 %v5289_v26, %v494_v61  ;;  %853 = vrot.lane.b32.xlu1 %v4943_v4, %s4826_s13 }
  0xed   : > { %851 = vrot.lane.b32.xlu0 %v4946_v5, %s4826_s13  ;;  %v5376_v24 = vrot.slane %v4127_v23, %v5097_v21  ;;  %v5379_v26 = vrot.slane %v4127_v23, %v5087_v19 }
  0xee   : > { %v552_v25 = vpop.permute.xlu1 %551  ;;  %v550_v27 = vpop.permute.xlu0 %549  ;;  %v4208_v28 = vpack.c.bf16 %v532_v16, %v530_v22  ;;  %v4210_v29 = vpack.c.bf16 %v531_v63, %v529_v20 }
  0xf0   : > { %869 = vrot.lane.b32.xlu1 %v4953_v6, %s4826_s13  ;;  %4209 = vmatprep.subr.bf16.mxu0 %v4208_v28 }
  0xf1   : > { %867 = vrot.lane.b32.xlu0 %v4956_v7, %s4826_s13  ;;  %4211 = vmatpush1.bf16.msra.mxu0 %v4210_v29 }
  0xf2   : > { %v568_v30 = vpop.permute.xlu1 %567  ;;  %v566_v31 = vpop.permute.xlu0 %565 }
  0xf3   : > { %v583_v32 = vsel %vm581_vm3, %v552_v25, %v568_v30  ;;  %v591_v33 = vsel %vm581_vm3, %v568_v30, %v552_v25  ;;  %v582_v34 = vsel %vm581_vm3, %v550_v27, %v566_v31  ;;  %v590_v35 = vsel %vm581_vm3, %v566_v31, %v550_v27 }
  0xf4   : > { %v613_v36 = vmul.f32 %v5376_v24, %v591_v33  ;;  %v614_v37 = vmul.f32 %v5379_v26, %v583_v32  ;;  %v611_v38 = vmul.f32 %v5376_v24, %v590_v35  ;;  %v612_v39 = vmul.f32 %v5379_v26, %v582_v34  ;;  %947 = vrot.lane.b32.xlu1 %v4943_v4, %s8028_s18 }
  0xf5   : > { %945 = vrot.lane.b32.xlu0 %v4946_v5, %s8028_s18 }
  0xf6   : > { %v556_v40 = vpop.permute.xlu1 %555  ;;  %v554_v41 = vpop.permute.xlu0 %553  ;;  %v4212_v42 = vpack.c.bf16 %v614_v37, %v612_v39  ;;  %v4214_v43 = vpack.c.bf16 %v613_v36, %v611_v38 }
  0xf8   : > { %963 = vrot.lane.b32.xlu1 %v4953_v6, %s8028_s18  ;;  %4213 = vmatprep.subr.bf16.mxu0 %v4212_v42 }
  0xf9   : > { %961 = vrot.lane.b32.xlu0 %v4956_v7, %s8028_s18  ;;  %4215 = vmatpush1.bf16.msra.mxu0 %v4214_v43  ;;  %v4228_v43 = vpack.c.bf16 %v4933_v2, %v4923_v0  ;;  %v4232_v0 = vpack.c.bf16 %v4953_v6, %v4956_v7  ;;  %v1041_v2 = vld [vmem:[%s8023_s2 + $0x30] sm:$0xff]  ;;  %v4234_v6 = vpack.c.bf16 %v4943_v4, %v4946_v5  ;;  %v1040_v7 = vld [vmem:[%s8023_s2 + $0x28] sm:$0xff] }
  0xfa   : > { %v572_v44 = vpop.permute.xlu1 %571  ;;  %v570_v45 = vpop.permute.xlu0 %569 }
  0xfb   : > { %v585_v46 = vsel %vm581_vm3, %v556_v40, %v572_v44  ;;  %v593_v47 = vsel %vm581_vm3, %v572_v44, %v556_v40  ;;  %v584_v48 = vsel %vm581_vm3, %v554_v41, %v570_v45  ;;  %v592_v49 = vsel %vm581_vm3, %v570_v45, %v554_v41 }
  0xfc   : > { %v617_v50 = vmul.f32 %v5376_v24, %v593_v47  ;;  %v618_v51 = vmul.f32 %v5379_v26, %v585_v46  ;;  %v615_v52 = vmul.f32 %v5376_v24, %v592_v49  ;;  %v616_v53 = vmul.f32 %v5379_v26, %v584_v48  ;;  %857 = vrot.lane.b32.xlu1 %v4963_v8, %s4826_s13 }
  0xfd   : > { %855 = vrot.lane.b32.xlu0 %v4966_v9, %s4826_s13  ;;  %v4230_v45 = vpack.c.bf16 %v4936_v3, %v4926_v1  ;;  %v8030_v47 = vmov 0.0   ;;  %v4128_v1 = vld [vmem:[%s8022_s1 + $0x5] ss:$8 sm:$0x3]  ;;  %v4236_v49 = vpack.c.bf16 %v4973_v10, %v4976_v11 }
  0xfe   : > { %v560_v54 = vpop.permute.xlu1 %559  ;;  %v558_v55 = vpop.permute.xlu0 %557  ;;  %v4216_v56 = vpack.c.bf16 %v618_v51, %v616_v53  ;;  %v4218_v57 = vpack.c.bf16 %v617_v50, %v615_v52  ;;  %1790 = vmatprep.mubr.f32.mxu1 %v8030_v47  ;;  %v1046_v50 = vld [vmem:[%s8023_s2 + $0x58] sm:$0xff]  ;;  %v5497_v4 = vrot.slane %v4128_v1, %v5087_v19  ;;  %v4238_v51 = vpack.c.bf16 %v4963_v8, %v4966_v9  ;;  %v1045_v52 = vld [vmem:[%s8023_s2 + $0x50] sm:$0xff] }
  0xff   : > { %v5511_v53 = vrot.slane %v4128_v1, %v5097_v21 }
 0x100   : > { %873 = vrot.lane.b32.xlu1 %v4973_v10, %s4826_s13  ;;  %4217 = vmatprep.subr.bf16.mxu0 %v4216_v56  ;;  %v1051_v56 = vld [vmem:[%s8023_s2 + $0x80] sm:$0xff] }
 0x101   : > { %871 = vrot.lane.b32.xlu0 %v4976_v11, %s4826_s13  ;;  %4219 = vmatpush1.bf16.msra.mxu0 %v4218_v57 }
 0x102   : > { %v576_v58 = vpop.permute.xlu1 %575  ;;  %v574_v59 = vpop.permute.xlu0 %573 }
 0x103   : > { %v587_v60 = vsel %vm581_vm3, %v560_v54, %v576_v58  ;;  %v595_v61 = vsel %vm581_vm3, %v576_v58, %v560_v54  ;;  %v586_v62 = vsel %vm581_vm3, %v558_v55, %v574_v59  ;;  %v594_v63 = vsel %vm581_vm3, %v574_v59, %v558_v55 }
 0x104   : > { %v621_v16 = vmul.f32 %v5376_v24, %v595_v61  ;;  %v622_v20 = vmul.f32 %v5379_v26, %v587_v60  ;;  %v619_v22 = vmul.f32 %v5376_v24, %v594_v63  ;;  %v620_v23 = vmul.f32 %v5379_v26, %v586_v62  ;;  %951 = vrot.lane.b32.xlu1 %v4963_v8, %s8028_s18  ;;  %v1050_v61 = vld [vmem:[%s8023_s2 + $0x78] sm:$0xff] }
 0x105   : > { %949 = vrot.lane.b32.xlu0 %v4966_v9, %s8028_s18  ;;  %v4240_v55 = vpack.c.bf16 %v4993_v14, %v4996_v15  ;;  %v4242_v60 = vpack.c.bf16 %v4983_v12, %v4986_v13 }
 0x106   : > { %v564_v25 = vpop.permute.xlu1 %563  ;;  %v562_v27 = vpop.permute.xlu0 %561  ;;  %v4220_v28 = vpack.c.bf16 %v622_v20, %v620_v23  ;;  %v4222_v29 = vpack.c.bf16 %v621_v16, %v619_v22  ;;  %v1056_v20 = vld [vmem:[%s8023_s2 + $0xa8] sm:$0xff] }
 0x108   : > { %967 = vrot.lane.b32.xlu1 %v4973_v10, %s8028_s18  ;;  %4221 = vmatprep.subr.bf16.mxu0 %v4220_v28  ;;  %v1055_v28 = vld [vmem:[%s8023_s2 + $0xa0] sm:$0xff] }
 0x109   : > { %965 = vrot.lane.b32.xlu0 %v4976_v11, %s8028_s18  ;;  %4223 = vmatpush1.bf16.msra.mxu0 %v4222_v29 }
 0x10a   : > { %v580_v30 = vpop.permute.xlu1 %579  ;;  %v578_v31 = vpop.permute.xlu0 %577 }
 0x10b   : > { %v589_v32 = vsel %vm581_vm3, %v564_v25, %v580_v30  ;;  %v597_v33 = vsel %vm581_vm3, %v580_v30, %v564_v25  ;;  %v588_v34 = vsel %vm581_vm3, %v562_v27, %v578_v31  ;;  %v596_v35 = vsel %vm581_vm3, %v578_v31, %v562_v27 }
 0x10c   : > { %v625_v36 = vmul.f32 %v5376_v24, %v597_v33  ;;  %v626_v37 = vmul.f32 %v5379_v26, %v589_v32  ;;  %v623_v38 = vmul.f32 %v5376_v24, %v596_v35  ;;  %v624_v39 = vmul.f32 %v5379_v26, %v588_v34  ;;  %861 = vrot.lane.b32.xlu1 %v4983_v12, %s4826_s13  ;;  %v1035_v26 = vld [vmem:[%s8023_s2] sm:$0xff]  ;;  %v1061_v33 = vld [vmem:[%s8023_s2 + $0xd0] sm:$0xff] }
 0x10d   : > { %859 = vrot.lane.b32.xlu0 %v4986_v13, %s4826_s13 }
 0x10e   : > { %v662_v40 = vpop.permute.xlu1 %661  ;;  %v4224_v41 = vpack.c.bf16 %v626_v37, %v624_v39  ;;  %v4226_v42 = vpack.c.bf16 %v625_v36, %v623_v38 }
 0x10f   : > { %v660_v44 = vpop.permute.xlu0 %659 }
 0x110   : > { %877 = vrot.lane.b32.xlu1 %v4993_v14, %s4826_s13  ;;  %4225 = vmatprep.subr.bf16.mxu0 %v4224_v41 }
 0x111   : > { %875 = vrot.lane.b32.xlu0 %v4996_v15, %s4826_s13  ;;  %4227 = vmatpush1.bf16.msra.mxu0 %v4226_v42  ;;  %v1060_v42 = vld [vmem:[%s8023_s2 + $0xc8] sm:$0xff] }
 0x112   : > { %v678_v24 = vpop.permute.xlu1 %677  ;;  %4229 = vmatprep.subr.bf16.mxu0 %v4228_v43 }
 0x113   : > { %v676_v46 = vpop.permute.xlu0 %675  ;;  %v701_v5 = vsel %vm691_vm4, %v678_v24, %v662_v40  ;;  %v693_v8 = vsel %vm691_vm4, %v662_v40, %v678_v24 }
 0x114   : > { %955 = vrot.lane.b32.xlu1 %v4983_v12, %s8028_s18  ;;  %1469 = vmatmul.mubr.f32.vlgmr.msra.gmra.mrb[0].mxu0 %v1035_v26  ;;  %v700_v10 = vsel %vm691_vm4, %v676_v46, %v660_v44  ;;  %v692_v9 = vsel %vm691_vm4, %v660_v44, %v676_v46  ;;  %v724_v57 = vmul.f32 %v5497_v4, %v701_v5  ;;  %v1066_v26 = vld [vmem:[%s8023_s2 + $0xf8] sm:$0xff] }
 0x115   : > { %953 = vrot.lane.b32.xlu0 %v4986_v13, %s8028_s18  ;;  %4231 = vmatpush1.bf16.msra.mxu0 %v4230_v45  ;;  %v722_v58 = vmul.f32 %v5497_v4, %v700_v10  ;;  %v723_v62 = vmul.f32 %v5511_v53, %v693_v8  ;;  %v721_v63 = vmul.f32 %v5511_v53, %v692_v9 }
 0x116   : > { %v666_v3 = vpop.permute.xlu1 %665  ;;  %1474 = vmatprep.mubr.f32.mxu0 %v1041_v2  ;;  %4233 = vmatprep.subr.bf16.mxu0 %v4232_v0  ;;  %v1065_v2 = vld [vmem:[%s8023_s2 + $0xf0] sm:$0xff] }
 0x117   : > { %v664_v48 = vpop.permute.xlu0 %663  ;;  %v4244_v25 = vpack.c.bf16 %v724_v57, %v722_v58  ;;  %v4246_v29 = vpack.c.bf16 %v723_v62, %v721_v63 }
 0x118   : > { %971 = vrot.lane.b32.xlu1 %v4993_v14, %s8028_s18  ;;  %1475 = vmatmul.mubr.f32.gmra.mrb[2].mxu0 %v1040_v7 }
 0x119   : > { %969 = vrot.lane.b32.xlu0 %v4996_v15, %s8028_s18  ;;  %4235 = vmatpush1.bf16.msra.mxu0 %v4234_v6 }
 0x11a   : > { %v682_v11 = vpop.permute.xlu1 %681  ;;  %1480 = vmatprep.mubr.f32.mxu0 %v1046_v50  ;;  %4237 = vmatprep.subr.bf16.mxu0 %v4236_v49 }
 0x11b   : > { %v680_v54 = vpop.permute.xlu0 %679  ;;  %v703_v59 = vsel %vm691_vm4, %v682_v11, %v666_v3  ;;  %v695_v22 = vsel %vm691_vm4, %v666_v3, %v682_v11 }
 0x11c   : > { %1481 = vmatmul.mubr.f32.gmra.mrb[4].mxu0 %v1045_v52  ;;  %v702_v14 = vsel %vm691_vm4, %v680_v54, %v664_v48  ;;  %v728_v12 = vmul.f32 %v5497_v4, %v703_v59  ;;  %v694_v13 = vsel %vm691_vm4, %v664_v48, %v680_v54  ;;  %v727_v30 = vmul.f32 %v5511_v53, %v695_v22  ;;  %v1071_v48 = vld [vmem:[%s8023_s2 + $0x120] sm:$0xff] }
 0x11d   : > { %4239 = vmatpush1.bf16.msra.mxu0 %v4238_v51  ;;  %1486 = vmatprep.mubr.f32.mxu0 %v1051_v56  ;;  %v726_v23 = vmul.f32 %v5497_v4, %v702_v14  ;;  %v725_v34 = vmul.f32 %v5511_v53, %v694_v13  ;;  %v4129_v52 = vld [vmem:[%s8022_s1 + $0x6] ss:$8 sm:$0x3] }
 0x11e   : > { %v670_v15 = vpop.permute.xlu1 %669  ;;  %4241 = vmatprep.subr.bf16.mxu0 %v4240_v55  ;;  %v1070_v55 = vld [vmem:[%s8023_s2 + $0x118] sm:$0xff]  ;;  %v5602_v57 = vrot.slane %v4129_v52, %v5087_v19  ;;  %v1075_v59 = vld [vmem:[%s8023_s2 + $0x140] sm:$0xff] }
 0x11f   : > { %v668_v16 = vpop.permute.xlu0 %667  ;;  %v4248_v40 = vpack.c.bf16 %v728_v12, %v726_v23  ;;  %v4250_v45 = vpack.c.bf16 %v727_v30, %v725_v34  ;;  %v1080_v23 = vld [vmem:[%s8023_s2 + $0x168] sm:$0xff] }
 0x120   : > { %1487 = vmatmul.mubr.f32.gmra.mrb[6].mxu0 %v1050_v61  ;;  %v1081_v61 = vld [vmem:[%s8023_s2 + $0x170] sm:$0xff] }
 0x121   : > { %4243 = vmatpush1.bf16.msra.mxu0 %v4242_v60  ;;  %1492 = vmatprep.mubr.f32.mxu0 %v1056_v20 }
 0x122   : > { %v686_v27 = vpop.permute.xlu1 %685  ;;  %4245 = vmatprep.subr.bf16.mxu0 %v4244_v25 }
 0x123   : > { %v705_v31 = vsel %vm691_vm4, %v686_v27, %v670_v15  ;;  %v684_v32 = vpop.permute.xlu0 %683  ;;  %v697_v35 = vsel %vm691_vm4, %v670_v15, %v686_v27 }
 0x124   : > { %v696_v36 = vsel %vm691_vm4, %v668_v16, %v684_v32  ;;  %v704_v37 = vsel %vm691_vm4, %v684_v32, %v668_v16  ;;  %v732_v38 = vmul.f32 %v5497_v4, %v705_v31  ;;  %1493 = vmatmul.mubr.f32.gmra.mrb[8].mxu0 %v1055_v28  ;;  %v731_v43 = vmul.f32 %v5511_v53, %v697_v35  ;;  %v1085_v31 = vld [vmem:[%s8023_s2 + $0x190] sm:$0xff]  ;;  %v1091_v35 = vld [vmem:[%s8023_s2 + $0x1c0] sm:$0xff] }
 0x125   : > { %v730_v39 = vmul.f32 %v5497_v4, %v704_v37  ;;  %4247 = vmatpush1.bf16.msra.mxu0 %v4246_v29  ;;  %1498 = vmatprep.mubr.f32.mxu0 %v1061_v33  ;;  %v729_v44 = vmul.f32 %v5511_v53, %v696_v36  ;;  %v1086_v29 = vld [vmem:[%s8023_s2 + $0x198] sm:$0xff] }
 0x126   : > { %v674_v41 = vpop.permute.xlu1 %673  ;;  %4249 = vmatprep.subr.bf16.mxu0 %v4248_v40 }
 0x127   : > { %v672_v24 = vpop.permute.xlu0 %671  ;;  %v4252_v46 = vpack.c.bf16 %v732_v38, %v730_v39  ;;  %v4254_v1 = vpack.c.bf16 %v731_v43, %v729_v44  ;;  %v1090_v43 = vld [vmem:[%s8023_s2 + $0x1b8] sm:$0xff] }
 0x128   : > { %1499 = vmatmul.mubr.f32.gmra.mrb[10].mxu0 %v1060_v42 }
 0x129   : > { %4251 = vmatpush1.bf16.msra.mxu0 %v4250_v45  ;;  %1504 = vmatprep.mubr.f32.mxu0 %v1066_v26  ;;  %v1096_v45 = vld [vmem:[%s8023_s2 + $0x1e8] sm:$0xff] }
 0x12a   : > { %v690_v0 = vpop.permute.xlu1 %689  ;;  %4253 = vmatprep.subr.bf16.mxu0 %v4252_v46 }
 0x12b   : > { %v699_v3 = vsel %vm691_vm4, %v674_v41, %v690_v0  ;;  %v707_v6 = vsel %vm691_vm4, %v690_v0, %v674_v41  ;;  %v688_v7 = vpop.permute.xlu0 %687  ;;  %v1095_v0 = vld [vmem:[%s8023_s2 + $0x1e0] sm:$0xff] }
 0x12c   : > { %v735_v49 = vmul.f32 %v5511_v53, %v699_v3  ;;  %v736_v50 = vmul.f32 %v5497_v4, %v707_v6  ;;  %v698_v5 = vsel %vm691_vm4, %v672_v24, %v688_v7  ;;  %v706_v10 = vsel %vm691_vm4, %v688_v7, %v672_v24  ;;  %1505 = vmatmul.mubr.f32.gmra.mrb[12].mxu0 %v1065_v2  ;;  %v1101_v6 = vld [vmem:[%s8023_s2 + $0x210] sm:$0xff] }
 0x12d   : > { %v733_v11 = vmul.f32 %v5511_v53, %v698_v5  ;;  %v734_v51 = vmul.f32 %v5497_v4, %v706_v10  ;;  %4255 = vmatpush1.bf16.msra.mxu0 %v4254_v1  ;;  %1510 = vmatprep.mubr.f32.mxu0 %v1071_v48  ;;  %v1076_v53 = vld [vmem:[%s8023_s2 + $0x148] sm:$0xff]  ;;  %v5599_v4 = vrot.slane %v4129_v52, %v5097_v21 }
 0x12e   : > { %v756_v54 = vpop.permute.xlu1 %755 }
 0x12f   : > { %v4258_v56 = vpack.c.bf16 %v735_v49, %v733_v11  ;;  %v754_v8 = vpop.permute.xlu0 %753  ;;  %v4256_v9 = vpack.c.bf16 %v736_v50, %v734_v51  ;;  %v1100_v51 = vld [vmem:[%s8023_s2 + $0x208] sm:$0xff] }
 0x130   : > { %1511 = vmatmul.mubr.f32.gmra.mrb[14].mxu0 %v1070_v55 }
 0x131   : > { %4257 = vmatprep.subr.bf16.mxu0 %v4256_v9  ;;  %1516 = vmatprep.mubr.f32.mxu0 %v1076_v53  ;;  %v1105_v53 = vld [vmem:[%s8023_s2 + $0x230] sm:$0xff] }
 0x132   : > { %4259 = vmatpush1.bf16.msra.mxu0 %v4258_v56  ;;  %v772_v58 = vpop.permute.xlu1 %771  ;;  %v1106_v56 = vld [vmem:[%s8023_s2 + $0x238] sm:$0xff] }
 0x133   : > { %v787_v14 = vsel %vm785_vm5, %v756_v54, %v772_v58  ;;  %v795_v15 = vsel %vm785_vm5, %v772_v58, %v756_v54  ;;  %v770_v60 = vpop.permute.xlu0 %769 }
 0x134   : > { %v817_v62 = vmul.f32 %v5599_v4, %v787_v14  ;;  %v818_v63 = vmul.f32 %v5602_v57, %v795_v15  ;;  %v786_v16 = vsel %vm785_vm5, %v754_v8, %v770_v60  ;;  %v794_v20 = vsel %vm785_vm5, %v770_v60, %v754_v8  ;;  %1517 = vmatmul.mubr.f32.gmra.mrb[16].mxu0 %v1075_v59  ;;  %v1259_v8 = vld [vmem:[%s8024_s3] sm:$0xff] }
 0x135   : > { %v815_v22 = vmul.f32 %v5599_v4, %v786_v16  ;;  %v816_v12 = vmul.f32 %v5602_v57, %v794_v20  ;;  %1522 = vmatprep.mubr.f32.mxu0 %v1081_v61  ;;  %v1111_v15 = vld [vmem:[%s8023_s2 + $0x260] sm:$0xff]  ;;  %v4829_v60 = vmov 0  }
 0x136   : > { %v760_v13 = vpop.permute.xlu1 %759  ;;  %4752 = vset.pattern.permute.xlu0 %v4829_v60  ;;  %4753 = vset.pattern.permute.xlu1 %v4829_v60 }
 0x137   : > { %v4262_v25 = vpack.c.bf16 %v817_v62, %v815_v22  ;;  %v758_v27 = vpop.permute.xlu0 %757  ;;  %v4260_v28 = vpack.c.bf16 %v818_v63, %v816_v12  ;;  %1277 = vperm.xlu0 %4752, %v1259_v8   ;;  %v4130_v12 = vld [vmem:[%s8022_s1 + $0x7] ss:$8 sm:$0x3] }
 0x138   : > { %1523 = vmatmul.mubr.f32.gmra.mrb[18].mxu0 %v1080_v23 }
 0x139   : > { %4261 = vmatprep.subr.bf16.mxu0 %v4260_v28  ;;  %1528 = vmatprep.mubr.f32.mxu0 %v1086_v29  ;;  %v5711_v29 = vrot.slane %v4130_v12, %v5097_v21 }
 0x13a   : > { %4263 = vmatpush1.bf16.msra.mxu0 %v4262_v25  ;;  %v776_v30 = vpop.permute.xlu1 %775  ;;  %v1110_v25 = vld [vmem:[%s8023_s2 + $0x258] sm:$0xff] }
 0x13b   : > { %v789_v32 = vsel %vm785_vm5, %v760_v13, %v776_v30  ;;  %v797_v33 = vsel %vm785_vm5, %v776_v30, %v760_v13  ;;  %v774_v34 = vpop.permute.xlu0 %773  ;;  %v1262_v13 = vld [vmem:[%s8024_s3 + $0x18] sm:$0xff]  ;;  %v5714_v30 = vrot.slane %v4130_v12, %v5087_v19  ;;  %v1269_v12 = vld [vmem:[%s8024_s3 + $0x50] sm:$0xff] }
 0x13c   : > { %v821_v36 = vmul.f32 %v5599_v4, %v789_v32  ;;  %v822_v37 = vmul.f32 %v5602_v57, %v797_v33  ;;  %v788_v38 = vsel %vm785_vm5, %v758_v27, %v774_v34  ;;  %v796_v39 = vsel %vm785_vm5, %v774_v34, %v758_v27  ;;  %1529 = vmatmul.mubr.f32.gmra.mrb[20].mxu0 %v1085_v31  ;;  %v1260_v31 = vld [vmem:[%s8024_s3 + $0x8] sm:$0xff] }
 0x13d   : > { %v819_v40 = vmul.f32 %v5599_v4, %v788_v38  ;;  %v820_v41 = vmul.f32 %v5602_v57, %v796_v39  ;;  %1534 = vmatprep.mubr.f32.mxu0 %v1091_v35  ;;  %1292 = vperm.xlu0 %4752, %v1262_v13   ;;  %v1264_v32 = vld [vmem:[%s8024_s3 + $0x28] sm:$0xff] }
 0x13e   : > { %v764_v42 = vpop.permute.xlu1 %763  ;;  %1282 = vperm.xlu1 %4753, %v1260_v31   ;;  %v1271_v31 = vld [vmem:[%s8024_s3 + $0x60] sm:$0xff] }
 0x13f   : > { %v4266_v44 = vpack.c.bf16 %v821_v36, %v819_v40  ;;  %v762_v24 = vpop.permute.xlu0 %761  ;;  %v4264_v26 = vpack.c.bf16 %v822_v37, %v820_v41  ;;  %v1261_v41 = vld [vmem:[%s8024_s3 + $0x10] sm:$0xff] }
 0x140   : > { %1535 = vmatmul.mubr.f32.gmra.mrb[22].mxu0 %v1090_v43 }
 0x141   : > { %4265 = vmatprep.subr.bf16.mxu0 %v4264_v26  ;;  %1540 = vmatprep.mubr.f32.mxu0 %v1096_v45 }
 0x142   : > { %4267 = vmatpush1.bf16.msra.mxu0 %v4266_v44  ;;  %v780_v46 = vpop.permute.xlu1 %779  ;;  %1302 = vperm.xlu0 %4752, %v1264_v32   ;;  %v4131_v44 = vld [vmem:[%s8022_s1 + $0x10] ss:$8 sm:$0x3] }
 0x143   : > { %v791_v2 = vsel %vm785_vm5, %v764_v42, %v780_v46  ;;  %v799_v1 = vsel %vm785_vm5, %v780_v46, %v764_v42  ;;  %v778_v3 = vpop.permute.xlu0 %777  ;;  %1287 = vperm.xlu1 %4753, %v1261_v41  }
 0x144   : > { %v825_v7 = vmul.f32 %v5599_v4, %v791_v2  ;;  %v826_v48 = vmul.f32 %v5602_v57, %v799_v1  ;;  %v790_v49 = vsel %vm785_vm5, %v762_v24, %v778_v3  ;;  %v798_v50 = vsel %vm785_vm5, %v778_v3, %v762_v24  ;;  %1541 = vmatmul.mubr.f32.gmra.mrb[24].mxu0 %v1095_v0  ;;  %v1266_v24 = vld [vmem:[%s8024_s3 + $0x38] sm:$0xff]  ;;  %v1263_v3 = vld [vmem:[%s8024_s3 + $0x20] sm:$0xff] }
 0x145   : > { %v823_v5 = vmul.f32 %v5599_v4, %v790_v49  ;;  %v824_v10 = vmul.f32 %v5602_v57, %v798_v50  ;;  %1546 = vmatprep.mubr.f32.mxu0 %v1101_v6  ;;  %v5745_v2 = vrot.slane %v4131_v44, %v5087_v19  ;;  %v5748_v1 = vrot.slane %v4131_v44, %v5097_v21  ;;  %v1268_v6 = vld [vmem:[%s8024_s3 + $0x48] sm:$0xff] }
 0x146   : > { %v768_v11 = vpop.permute.xlu1 %767  ;;  %1312 = vperm.xlu0 %4752, %v1266_v24  }
 0x147   : > { %v4270_v52 = vpack.c.bf16 %v825_v7, %v823_v5  ;;  %v766_v54 = vpop.permute.xlu0 %765  ;;  %v4268_v55 = vpack.c.bf16 %v826_v48, %v824_v10  ;;  %1297 = vperm.xlu1 %4753, %v1263_v3  }
 0x148   : > { %1547 = vmatmul.mubr.f32.gmra.mrb[26].mxu0 %v1100_v51 }
 0x149   : > { %4269 = vmatprep.subr.bf16.mxu0 %v4268_v55  ;;  %1552 = vmatprep.mubr.f32.mxu0 %v1106_v56  ;;  %v1270_v56 = vld [vmem:[%s8024_s3 + $0x58] sm:$0xff] }
 0x14a   : > { %4271 = vmatpush1.bf16.msra.mxu0 %v4270_v52  ;;  %v784_v9 = vpop.permute.xlu1 %783  ;;  %1322 = vperm.xlu0 %4752, %v1268_v6   ;;  %v1265_v52 = vld [vmem:[%s8024_s3 + $0x30] sm:$0xff] }
 0x14b   : > { %v793_v58 = vsel %vm785_vm5, %v768_v11, %v784_v9  ;;  %v801_v59 = vsel %vm785_vm5, %v784_v9, %v768_v11  ;;  %v782_v14 = vpop.permute.xlu0 %781  ;;  %1307 = vperm.xlu1 %4753, %v1265_v52  }
 0x14c   : > { %v829_v61 = vmul.f32 %v5599_v4, %v793_v58  ;;  %v830_v62 = vmul.f32 %v5602_v57, %v801_v59  ;;  %v792_v63 = vsel %vm785_vm5, %v766_v54, %v782_v14  ;;  %v800_v16 = vsel %vm785_vm5, %v782_v14, %v766_v54  ;;  %1553 = vmatmul.mubr.f32.gmra.mrb[28].mxu0 %v1105_v53  ;;  %v1267_v59 = vld [vmem:[%s8024_s3 + $0x40] sm:$0xff]  ;;  %v1272_v14 = vld [vmem:[%s8024_s3 + $0x68] sm:$0xff] }
 0x14d   : > { %v827_v20 = vmul.f32 %v5599_v4, %v792_v63  ;;  %v828_v22 = vmul.f32 %v5602_v57, %v800_v16  ;;  %1558 = vmatprep.mubr.f32.mxu0 %v1111_v15  ;;  %v1038_v57 = vld [vmem:[%s8023_s2 + $0x18] sm:$0xff] }
 0x14e   : > { %v850_v23 = vpop.permute.xlu1 %849  ;;  %1332 = vperm.xlu0 %4752, %v1270_v56  }
 0x14f   : > { %v4274_v27 = vpack.c.bf16 %v829_v61, %v827_v20  ;;  %v848_v28 = vpop.permute.xlu0 %847  ;;  %v4272_v4 = vpack.c.bf16 %v830_v62, %v828_v22  ;;  %1317 = vperm.xlu1 %4753, %v1267_v59  }
 0x150   : > { %1559 = vmatmul.mubr.f32.gmra.mrb[30].mxu0 %v1110_v25  ;;  %v1274_v25 = vld [vmem:[%s8024_s3 + $0x78] sm:$0xff] }
 0x151   : > { %4273 = vmatprep.subr.bf16.mxu0 %v4272_v4  ;;  %1629 = vmatprep.mubr.f32.mxu0 %v1038_v57 }
 0x152   : > { %4275 = vmatpush1.bf16.msra.mxu0 %v4274_v27  ;;  %v866_v33 = vpop.permute.xlu1 %865  ;;  %1342 = vperm.xlu0 %4752, %v1272_v14  }
 0x153   : > { %v881_v34 = vsel %vm879_vm6, %v850_v23, %v866_v33  ;;  %v889_v35 = vsel %vm879_vm6, %v866_v33, %v850_v23  ;;  %v864_v36 = vpop.permute.xlu0 %863  ;;  %1327 = vperm.xlu1 %4753, %v1269_v12  }
 0x154   : > { %v911_v37 = vmul.f32 %v5711_v29, %v881_v34  ;;  %v912_v38 = vmul.f32 %v5714_v30, %v889_v35  ;;  %v880_v39 = vsel %vm879_vm6, %v848_v28, %v864_v36  ;;  %v888_v40 = vsel %vm879_vm6, %v864_v36, %v848_v28 }
 0x155   : > { %v909_v42 = vmul.f32 %v5711_v29, %v880_v39  ;;  %v910_v43 = vmul.f32 %v5714_v30, %v888_v40  ;;  %v1273_v40 = vld [vmem:[%s8024_s3 + $0x70] sm:$0xff] }
 0x156   : > { %v944_v26 = vpop.permute.xlu1 %943  ;;  %1352 = vperm.xlu0 %4752, %v1274_v25  }
 0x157   : > { %v4278_v45 = vpack.c.bf16 %v911_v37, %v909_v42  ;;  %v942_v46 = vpop.permute.xlu0 %941  ;;  %v4276_v0 = vpack.c.bf16 %v912_v38, %v910_v43  ;;  %1337 = vperm.xlu1 %4753, %v1271_v31  }
 0x159   : > { %4277 = vmatprep.subr.bf16.mxu0 %v4276_v0 }
 0x15a   : > { %4279 = vmatpush1.bf16.msra.mxu0 %v4278_v45  ;;  %v960_v7 = vpop.permute.xlu1 %959 }
 0x15b   : > { %v975_v48 = vsel %vm973_vm7, %v944_v26, %v960_v7  ;;  %v958_v49 = vpop.permute.xlu0 %957  ;;  %v983_v50 = vsel %vm973_vm7, %v960_v7, %v944_v26  ;;  %1347 = vperm.xlu1 %4753, %v1273_v40  }
 0x15c   : > { %v974_v5 = vsel %vm973_vm7, %v942_v46, %v958_v49  ;;  %v982_v10 = vsel %vm973_vm7, %v958_v49, %v942_v46  ;;  %v1006_v11 = vmul.f32 %v5745_v2, %v983_v50  ;;  %v1005_v51 = vmul.f32 %v5748_v1, %v975_v48 }
 0x15d   : > { %v1004_v54 = vmul.f32 %v5745_v2, %v982_v10  ;;  %v1003_v55 = vmul.f32 %v5748_v1, %v974_v5 }
 0x15e   : > { %v854_v8 = vpop.permute.xlu1 %853 }
 0x15f   : > { %v852_v9 = vpop.permute.xlu0 %851  ;;  %v4292_v53 = vpack.c.bf16 %v1006_v11, %v1004_v54  ;;  %v4294_v58 = vpack.c.bf16 %v1005_v51, %v1003_v55 }
 0x161   : > { %4293 = vmatprep.subr.bf16.mxu1 %v4292_v53 }
 0x162   : > { %4295 = vmatpush1.bf16.msra.mxu1 %v4294_v58  ;;  %v870_v15 = vpop.permute.xlu1 %869 }
 0x163   : > { %v883_v60 = vsel %vm879_vm6, %v854_v8, %v870_v15  ;;  %v891_v61 = vsel %vm879_vm6, %v870_v15, %v854_v8  ;;  %v868_v62 = vpop.permute.xlu0 %867 }
 0x164   : > { %v915_v63 = vmul.f32 %v5711_v29, %v883_v60  ;;  %v916_v16 = vmul.f32 %v5714_v30, %v891_v61  ;;  %v882_v20 = vsel %vm879_vm6, %v852_v9, %v868_v62  ;;  %v890_v22 = vsel %vm879_vm6, %v868_v62, %v852_v9 }
 0x165   : > { %v913_v13 = vmul.f32 %v5711_v29, %v882_v20  ;;  %v914_v23 = vmul.f32 %v5714_v30, %v890_v22 }
 0x166   : > { %v948_v27 = vpop.permute.xlu1 %947 }
 0x167   : > { %v4282_v28 = vpack.c.bf16 %v915_v63, %v913_v13  ;;  %v946_v4 = vpop.permute.xlu0 %945  ;;  %v4280_v57 = vpack.c.bf16 %v916_v16, %v914_v23 }
 0x169   : > { %4281 = vmatprep.subr.bf16.mxu0 %v4280_v57 }
 0x16a   : > { %4283 = vmatpush1.bf16.msra.mxu0 %v4282_v28  ;;  %v964_v32 = vpop.permute.xlu1 %963 }
 0x16b   : > { %v977_v33 = vsel %vm973_vm7, %v948_v27, %v964_v32  ;;  %v985_v34 = vsel %vm973_vm7, %v964_v32, %v948_v27  ;;  %v962_v35 = vpop.permute.xlu0 %961 }
 0x16c   : > { %v1009_v36 = vmul.f32 %v5748_v1, %v977_v33  ;;  %v1010_v37 = vmul.f32 %v5745_v2, %v985_v34  ;;  %v976_v38 = vsel %vm973_vm7, %v946_v4, %v962_v35  ;;  %v984_v39 = vsel %vm973_vm7, %v962_v35, %v946_v4  ;;  %v1037_v35 = vld [vmem:[%s8023_s2 + $0x10] sm:$0xff] }
 0x16d   : > { %v1007_v41 = vmul.f32 %v5748_v1, %v976_v38  ;;  %v1008_v42 = vmul.f32 %v5745_v2, %v984_v39 }
 0x16e   : > { %v858_v43 = vpop.permute.xlu1 %857 }
 0x16f   : > { %v856_v44 = vpop.permute.xlu0 %855  ;;  %v4296_v24 = vpack.c.bf16 %v1010_v37, %v1008_v42  ;;  %v4298_v26 = vpack.c.bf16 %v1009_v36, %v1007_v41 }
 0x171   : > { %4297 = vmatprep.subr.bf16.mxu1 %v4296_v24 }
 0x172   : > { %4299 = vmatpush1.bf16.msra.mxu1 %v4298_v26  ;;  %v874_v45 = vpop.permute.xlu1 %873 }
 0x173   : > { %v885_v46 = vsel %vm879_vm6, %v858_v43, %v874_v45  ;;  %v893_v0 = vsel %vm879_vm6, %v874_v45, %v858_v43  ;;  %v872_v3 = vpop.permute.xlu0 %871  ;;  %v1048_v45 = vld [vmem:[%s8023_s2 + $0x68] sm:$0xff] }
 0x174   : > { %v919_v6 = vmul.f32 %v5711_v29, %v885_v46  ;;  %v920_v7 = vmul.f32 %v5714_v30, %v893_v0  ;;  %v884_v48 = vsel %vm879_vm6, %v856_v44, %v872_v3  ;;  %v892_v49 = vsel %vm879_vm6, %v872_v3, %v856_v44  ;;  %v1042_v44 = vld [vmem:[%s8023_s2 + $0x38] sm:$0xff]  ;;  %v1053_v46 = vld [vmem:[%s8023_s2 + $0x90] sm:$0xff]  ;;  %v1052_v0 = vld [vmem:[%s8023_s2 + $0x88] sm:$0xff] }
 0x175   : > { %v917_v50 = vmul.f32 %v5711_v29, %v884_v48  ;;  %v918_v5 = vmul.f32 %v5714_v30, %v892_v49  ;;  %v1044_v3 = vld [vmem:[%s8023_s2 + $0x48] sm:$0xff]  ;;  %v1049_v48 = vld [vmem:[%s8023_s2 + $0x70] sm:$0xff]  ;;  %v1063_v49 = vld [vmem:[%s8023_s2 + $0xe0] sm:$0xff] }
 0x176   : > { %v952_v10 = vpop.permute.xlu1 %951 }
 0x177   : > { %v4286_v11 = vpack.c.bf16 %v919_v6, %v917_v50  ;;  %v950_v51 = vpop.permute.xlu0 %949  ;;  %v4284_v52 = vpack.c.bf16 %v920_v7, %v918_v5  ;;  %v1058_v6 = vld [vmem:[%s8023_s2 + $0xb8] sm:$0xff]  ;;  %v1057_v7 = vld [vmem:[%s8023_s2 + $0xb0] sm:$0xff] }
 0x178   : > { %v1062_v50 = vld [vmem:[%s8023_s2 + $0xd8] sm:$0xff] }
 0x179   : > { %4285 = vmatprep.subr.bf16.mxu0 %v4284_v52  ;;  %v1054_v5 = vld [vmem:[%s8023_s2 + $0x98] sm:$0xff]  ;;  %v1073_v52 = vld [vmem:[%s8023_s2 + $0x130] sm:$0xff] }
 0x17a   : > { %4287 = vmatpush1.bf16.msra.mxu0 %v4286_v11  ;;  %v968_v54 = vpop.permute.xlu1 %967  ;;  %v1067_v11 = vld [vmem:[%s8023_s2 + $0x100] sm:$0xff] }
 0x17b   : > { %v979_v55 = vsel %vm973_vm7, %v952_v10, %v968_v54  ;;  %v987_v56 = vsel %vm973_vm7, %v968_v54, %v952_v10  ;;  %v966_v8 = vpop.permute.xlu0 %965  ;;  %v1068_v10 = vld [vmem:[%s8023_s2 + $0x108] sm:$0xff] }
 0x17c   : > { %v1013_v9 = vmul.f32 %v5748_v1, %v979_v55  ;;  %v1014_v53 = vmul.f32 %v5745_v2, %v987_v56  ;;  %v978_v58 = vsel %vm973_vm7, %v950_v51, %v966_v8  ;;  %v986_v59 = vsel %vm973_vm7, %v966_v8, %v950_v51  ;;  %v1059_v51 = vld [vmem:[%s8023_s2 + $0xc0] sm:$0xff]  ;;  %v1072_v54 = vld [vmem:[%s8023_s2 + $0x128] sm:$0xff]  ;;  %v1078_v56 = vld [vmem:[%s8023_s2 + $0x158] sm:$0xff] }
 0x17d   : > { %v1011_v14 = vmul.f32 %v5748_v1, %v978_v58  ;;  %v1012_v15 = vmul.f32 %v5745_v2, %v986_v59  ;;  %v1064_v55 = vld [vmem:[%s8023_s2 + $0xe8] sm:$0xff]  ;;  %v1077_v8 = vld [vmem:[%s8023_s2 + $0x150] sm:$0xff]  ;;  %v1082_v58 = vld [vmem:[%s8023_s2 + $0x178] sm:$0xff] }
 0x17e   : > { %v862_v60 = vpop.permute.xlu1 %861  ;;  %v1074_v59 = vld [vmem:[%s8023_s2 + $0x138] sm:$0xff] }
 0x17f   : > { %v860_v61 = vpop.permute.xlu0 %859  ;;  %v4300_v62 = vpack.c.bf16 %v1014_v53, %v1012_v15  ;;  %v4302_v63 = vpack.c.bf16 %v1013_v9, %v1011_v14  ;;  %v1069_v9 = vld [vmem:[%s8023_s2 + $0x110] sm:$0xff]  ;;  %v1083_v53 = vld [vmem:[%s8023_s2 + $0x180] sm:$0xff]  ;;  %v1088_v14 = vld [vmem:[%s8023_s2 + $0x1a8] sm:$0xff] }
 0x180   : > { %v1087_v15 = vld [vmem:[%s8023_s2 + $0x1a0] sm:$0xff] }
 0x181   : > { %4301 = vmatprep.subr.bf16.mxu1 %v4300_v62  ;;  %v1092_v62 = vld [vmem:[%s8023_s2 + $0x1c8] sm:$0xff] }
 0x182   : > { %4303 = vmatpush1.bf16.msra.mxu1 %v4302_v63  ;;  %v878_v16 = vpop.permute.xlu1 %877  ;;  %v1084_v63 = vld [vmem:[%s8023_s2 + $0x188] sm:$0xff] }
 0x183   : > { %v887_v20 = vsel %vm879_vm6, %v862_v60, %v878_v16  ;;  %v895_v22 = vsel %vm879_vm6, %v878_v16, %v862_v60  ;;  %v876_v12 = vpop.permute.xlu0 %875  ;;  %v1079_v60 = vld [vmem:[%s8023_s2 + $0x160] sm:$0xff]  ;;  %v1098_v16 = vld [vmem:[%s8023_s2 + $0x1f8] sm:$0xff] }
 0x184   : > { %v923_v13 = vmul.f32 %v5711_v29, %v887_v20  ;;  %v924_v23 = vmul.f32 %v5714_v30, %v895_v22  ;;  %v886_v25 = vsel %vm879_vm6, %v860_v61, %v876_v12  ;;  %v894_v27 = vsel %vm879_vm6, %v876_v12, %v860_v61  ;;  %v1093_v61 = vld [vmem:[%s8023_s2 + $0x1d0] sm:$0xff]  ;;  %v1103_v12 = vld [vmem:[%s8023_s2 + $0x220] sm:$0xff] }
 0x185   : > { %v921_v28 = vmul.f32 %v5711_v29, %v886_v25  ;;  %v922_v4 = vmul.f32 %v5714_v30, %v894_v27  ;;  %v1043_v30 = vld [vmem:[%s8023_s2 + $0x40] sm:$0xff]  ;;  %v1097_v20 = vld [vmem:[%s8023_s2 + $0x1f0] sm:$0xff]  ;;  %v1108_v25 = vld [vmem:[%s8023_s2 + $0x248] sm:$0xff] }
 0x186   : > { %v956_v57 = vpop.permute.xlu1 %955  ;;  %v1089_v22 = vld [vmem:[%s8023_s2 + $0x1b0] sm:$0xff]  ;;  %v1107_v27 = vld [vmem:[%s8023_s2 + $0x240] sm:$0xff] }
 0x187   : > { %v4290_v31 = vpack.c.bf16 %v923_v13, %v921_v28  ;;  %v954_v32 = vpop.permute.xlu0 %953  ;;  %v4288_v33 = vpack.c.bf16 %v924_v23, %v922_v4  ;;  %v1102_v13 = vld [vmem:[%s8023_s2 + $0x218] sm:$0xff]  ;;  %v1099_v28 = vld [vmem:[%s8023_s2 + $0x200] sm:$0xff]  ;;  %v1113_v4 = vld [vmem:[%s8023_s2 + $0x270] sm:$0xff] }
 0x188   : > { %v1094_v23 = vld [vmem:[%s8023_s2 + $0x1d8] sm:$0xff] }
 0x189   : > { %4289 = vmatprep.subr.bf16.mxu0 %v4288_v33  ;;  %v1114_v33 = vld [vmem:[%s8023_s2 + $0x278] sm:$0xff] }
 0x18a   : > { %4291 = vmatpush1.bf16.msra.mxu0 %v4290_v31  ;;  %v972_v34 = vpop.permute.xlu1 %971  ;;  %v1104_v31 = vld [vmem:[%s8023_s2 + $0x228] sm:$0xff] }
 0x18b   : > { %v981_v36 = vsel %vm973_vm7, %v956_v57, %v972_v34  ;;  %v989_v37 = vsel %vm973_vm7, %v972_v34, %v956_v57  ;;  %v970_v29 = vpop.permute.xlu0 %969  ;;  %v1112_v57 = vld [vmem:[%s8023_s2 + $0x268] sm:$0xff] }
 0x18c   : > { %v1017_v38 = vmul.f32 %v5748_v1, %v981_v36  ;;  %v1018_v39 = vmul.f32 %v5745_v2, %v989_v37  ;;  %v980_v40 = vsel %vm973_vm7, %v954_v32, %v970_v29  ;;  %v988_v41 = vsel %vm973_vm7, %v970_v29, %v954_v32  ;;  %v1109_v32 = vld [vmem:[%s8023_s2 + $0x250] sm:$0xff] }
 0x18d   : > { %v1015_v42 = vmul.f32 %v5748_v1, %v980_v40  ;;  %v1016_v43 = vmul.f32 %v5745_v2, %v988_v41  ;;  %1630 = vmatmul.mubr.f32.vlgmr.msra.gmra.mrb[0].mxu0 %v1037_v35  ;;  %v1047_v2 = vld [vmem:[%s8023_s2 + $0x60] sm:$0xff] }
 0x18e   : > { %1635 = vmatprep.mubr.f32.mxu0 %v1043_v30  ;;  %v1039_v1 = vld [vmem:[%s8023_s2 + $0x20] sm:$0xff] }
 0x18f   : > { %v4304_v24 = vpack.c.bf16 %v1018_v39, %v1016_v43  ;;  %v4306_v26 = vpack.c.bf16 %v1017_v38, %v1015_v42 }
 0x191   : > { %1636 = vmatmul.mubr.f32.gmra.mrb[2].mxu0 %v1042_v44  ;;  %4305 = vmatprep.subr.bf16.mxu1 %v4304_v24 }
 0x192   : > { %4307 = vmatpush1.bf16.msra.mxu1 %v4306_v26  ;;  %1641 = vmatprep.mubr.f32.mxu0 %v1048_v45 }
 0x195   : > { %1642 = vmatmul.mubr.f32.gmra.mrb[4].mxu0 %v1047_v2  ;;  %4132 = vmatmul.mubr.msk.f32.vlgmr.msra.gmra.mrb[0].mxu1 %vm1355_vm8, %v1039_v1 }
 0x196   : > { %1647 = vmatprep.mubr.f32.mxu0 %v1053_v46  ;;  %1796 = vmatprep.mubr.f32.mxu1 %v8030_v47 }
 0x199   : > { %1648 = vmatmul.mubr.f32.gmra.mrb[6].mxu0 %v1052_v0  ;;  %4133 = vmatmul.mubr.msk.f32.gmra.mrb[2].mxu1 %vm1355_vm8, %v1044_v3 }
 0x19a   : > { %1653 = vmatprep.mubr.f32.mxu0 %v1058_v6  ;;  %1802 = vmatprep.mubr.f32.mxu1 %v8030_v47 }
 0x19d   : > { %1654 = vmatmul.mubr.f32.gmra.mrb[8].mxu0 %v1057_v7  ;;  %4134 = vmatmul.mubr.msk.f32.gmra.mrb[4].mxu1 %vm1355_vm8, %v1049_v48 }
 0x19e   : > { %1659 = vmatprep.mubr.f32.mxu0 %v1063_v49  ;;  %1808 = vmatprep.mubr.f32.mxu1 %v8030_v47 }
 0x1a1   : > { %1660 = vmatmul.mubr.f32.gmra.mrb[10].mxu0 %v1062_v50  ;;  %4135 = vmatmul.mubr.msk.f32.gmra.mrb[6].mxu1 %vm1355_vm8, %v1054_v5 }
 0x1a2   : > { %1665 = vmatprep.mubr.f32.mxu0 %v1068_v10  ;;  %1814 = vmatprep.mubr.f32.mxu1 %v8030_v47 }
 0x1a5   : > { %1666 = vmatmul.mubr.f32.gmra.mrb[12].mxu0 %v1067_v11  ;;  %4136 = vmatmul.mubr.msk.f32.gmra.mrb[8].mxu1 %vm1355_vm8, %v1059_v51 }
 0x1a6   : > { %1671 = vmatprep.mubr.f32.mxu0 %v1073_v52  ;;  %1820 = vmatprep.mubr.f32.mxu1 %v8030_v47 }
 0x1a9   : > { %1672 = vmatmul.mubr.f32.gmra.mrb[14].mxu0 %v1072_v54  ;;  %4137 = vmatmul.mubr.msk.f32.gmra.mrb[10].mxu1 %vm1355_vm8, %v1064_v55 }
 0x1aa   : > { %1677 = vmatprep.mubr.f32.mxu0 %v1078_v56  ;;  %1826 = vmatprep.mubr.f32.mxu1 %v8030_v47 }
 0x1ad   : > { %1678 = vmatmul.mubr.f32.gmra.mrb[16].mxu0 %v1077_v8  ;;  %4138 = vmatmul.mubr.msk.f32.gmra.mrb[12].mxu1 %vm1355_vm8, %v1069_v9 }
 0x1ae   : > { %1683 = vmatprep.mubr.f32.mxu0 %v1083_v53  ;;  %1832 = vmatprep.mubr.f32.mxu1 %v8030_v47 }
 0x1b1   : > { %1684 = vmatmul.mubr.f32.gmra.mrb[18].mxu0 %v1082_v58  ;;  %4139 = vmatmul.mubr.msk.f32.gmra.mrb[14].mxu1 %vm1355_vm8, %v1074_v59 }
 0x1b2   : > { %1689 = vmatprep.mubr.f32.mxu0 %v1088_v14  ;;  %1838 = vmatprep.mubr.f32.mxu1 %v8030_v47 }
 0x1b5   : > { %1690 = vmatmul.mubr.f32.gmra.mrb[20].mxu0 %v1087_v15  ;;  %4140 = vmatmul.mubr.msk.f32.gmra.mrb[16].mxu1 %vm1355_vm8, %v1079_v60 }
 0x1b6   : > { %1695 = vmatprep.mubr.f32.mxu0 %v1093_v61  ;;  %1844 = vmatprep.mubr.f32.mxu1 %v8030_v47  ;;  %v1278_v29 = vpop.permute.xlu0 %1277 }
 0x1b9   : > { %1696 = vmatmul.mubr.f32.gmra.mrb[22].mxu0 %v1092_v62  ;;  %4141 = vmatmul.mubr.msk.f32.gmra.mrb[18].mxu1 %vm1355_vm8, %v1084_v63 }
 0x1ba   : > { %1701 = vmatprep.mubr.f32.mxu0 %v1098_v16  ;;  %1850 = vmatprep.mubr.f32.mxu1 %v8030_v47 }
 0x1bc   : > { %v1293_v55 = vpop.permute.xlu0 %1292 }
 0x1bd   : > { %1702 = vmatmul.mubr.f32.gmra.mrb[24].mxu0 %v1097_v20  ;;  %4142 = vmatmul.mubr.msk.f32.gmra.mrb[20].mxu1 %vm1355_vm8, %v1089_v22  ;;  %v1283_v30 = vpop.permute.xlu1 %1282 }
 0x1be   : > { %1707 = vmatprep.mubr.f32.mxu0 %v1103_v12  ;;  %1856 = vmatprep.mubr.f32.mxu1 %v8030_v47 }
 0x1c1   : > { %1708 = vmatmul.mubr.f32.gmra.mrb[26].mxu0 %v1102_v13  ;;  %4143 = vmatmul.mubr.msk.f32.gmra.mrb[22].mxu1 %vm1355_vm8, %v1094_v23 }
 0x1c2   : > { %1713 = vmatprep.mubr.f32.mxu0 %v1108_v25  ;;  %1862 = vmatprep.mubr.f32.mxu1 %v8030_v47  ;;  %v1288_v7 = vpop.permute.xlu1 %1287  ;;  %v1303_v25 = vpop.permute.xlu0 %1302 }
 0x1c5   : > { %1714 = vmatmul.mubr.f32.gmra.mrb[28].mxu0 %v1107_v27  ;;  %4144 = vmatmul.mubr.msk.f32.gmra.mrb[24].mxu1 %vm1355_vm8, %v1099_v28 }
 0x1c6   : > { %1719 = vmatprep.mubr.f32.mxu0 %v1113_v4  ;;  %1868 = vmatprep.mubr.f32.mxu1 %v8030_v47  ;;  %v1298_v61 = vpop.permute.xlu1 %1297 }
 0x1c9   : > { %1720 = vmatmul.mubr.f32.gmra.mrb[30].mxu0 %v1112_v57  ;;  %4145 = vmatmul.mubr.msk.f32.gmra.mrb[26].mxu1 %vm1355_vm8, %v1104_v31 }
 0x1ca   : > { %1874 = vmatprep.mubr.f32.mxu1 %v8030_v47 }
 0x1cd   : > { %4146 = vmatmul.mubr.msk.f32.gmra.mrb[28].mxu1 %vm1355_vm8, %v1109_v32 }
 0x1ce   : > { %1880 = vmatprep.mubr.f32.mxu1 %v8030_v47 }
 0x1d1   : > { %4147 = vmatmul.mubr.msk.f32.gmra.mrb[30].mxu1 %vm1355_vm8, %v1114_v33 }
 0x260   : > { %v1631_v34 = vpop.f32.mrb[0].mxu0 }
 0x261   : > { %v1633_v35 = vpop.f32.mrb[1].mxu0  ;;  %v4596_v38 = vadd.f32 %v1631_v34, %v1278_v29 }
 0x262   : > { %v4598_v39 = vadd.f32 %v1633_v35, %v1278_v29  ;;  %v1308_v35 = vpop.permute.xlu1 %1307 }
 0x264   : > { %v1637_v36 = vpop.f32.mrb[2].mxu0 }
 0x265   : > { %v1639_v37 = vpop.f32.mrb[3].mxu0  ;;  %v4600_v26 = vadd.f32 %v1637_v36, %v1283_v30 }
 0x266   : > { %v4602_v2 = vadd.f32 %v1639_v37, %v1283_v30 }
 0x268   : > { %v1643_v40 = vpop.f32.mrb[4].mxu0  ;;  %v1792_v41 = vpop.f32.mrb[0].mxu1 }
 0x269   : > { %v4597_v42 = vadd.f32 %v4596_v38, %v1792_v41  ;;  %v1645_v43 = vpop.f32.mrb[5].mxu0  ;;  %v1794_v44 = vpop.f32.mrb[1].mxu1  ;;  %v4604_v49 = vadd.f32 %v1643_v40, %v1288_v7 }
 0x26a   : > { %v4599_v24 = vadd.f32 %v4598_v39, %v1794_v44  ;;  %v4606_v5 = vadd.f32 %v1645_v43, %v1288_v7  ;;  %v1313_v43 = vpop.permute.xlu0 %1312 }
 0x26b   : > { %v6036_v45 = vmax.f32 %v4597_v42, 0.0 }
 0x26c   : > { %v1649_v1 = vpop.f32.mrb[6].mxu0  ;;  %v1798_v46 = vpop.f32.mrb[2].mxu1  ;;  %v6042_v50 = vmax.f32 %v4599_v24, 0.0 }
 0x26d   : > { %8127 = vst [vmem:[#allocation8_spill] sm:$0xff] %v6036_v45  ;;  %v4601_v0 = vadd.f32 %v4600_v26, %v1798_v46  ;;  %v1800_v3 = vpop.f32.mrb[3].mxu1  ;;  %2263 = vrot.lane.b32.xlu0 %v6036_v45, %s4822_s16  ;;  %1919 = vrot.lane.b32.xlu1 %v6036_v45, %s4820_s14  ;;  %v1651_v6 = vpop.f32.mrb[7].mxu0  ;;  %v4608_v8 = vadd.f32 %v1649_v1, %v1293_v55 }
 0x26e   : > { %v4603_v48 = vadd.f32 %v4602_v2, %v1800_v3  ;;  %8128 = vst [vmem:[#allocation9_spill] sm:$0xff] %v6042_v50  ;;  %v4610_v53 = vadd.f32 %v1651_v6, %v1293_v55  ;;  %v1318_v6 = vpop.permute.xlu1 %1317  ;;  %v1323_v55 = vpop.permute.xlu0 %1322 }
 0x26f   : > { %v6052_v9 = vmax.f32 %v4601_v0, 0.0 }
 0x270   : > { %v1655_v10 = vpop.f32.mrb[8].mxu0  ;;  %v1804_v11 = vpop.f32.mrb[4].mxu1  ;;  %v6078_v37 = vmax.f32 %v4603_v48, 0.0 }
 0x271   : > { %v6044_v51 = vadd.f32 %v4604_v49, %v1804_v11  ;;  %v1806_v52 = vpop.f32.mrb[5].mxu1  ;;  %2435 = vrot.lane.b32.xlu0 %v6036_v45, %s4823_s17  ;;  %1951 = vrot.lane.b32.xlu1 %v6042_v50, %s4820_s14  ;;  %v1657_v54 = vpop.f32.mrb[9].mxu0  ;;  %8129 = vst [vmem:[#allocation10_spill] sm:$0xff] %v6052_v9  ;;  %v4612_v63 = vadd.f32 %v1655_v10, %v1298_v61 }
 0x272   : > { %v6050_v56 = vadd.f32 %v4606_v5, %v1806_v52  ;;  %v4614_v16 = vadd.f32 %v1657_v54, %v1298_v61  ;;  %8130 = vst [vmem:[#allocation11_spill] sm:$0xff] %v6078_v37 }
 0x274   : > { %v1661_v58 = vpop.f32.mrb[10].mxu0  ;;  %v1810_v59 = vpop.f32.mrb[6].mxu1 }
 0x275   : > { %v6054_v14 = vadd.f32 %v4608_v8, %v1810_v59  ;;  %v1812_v15 = vpop.f32.mrb[7].mxu1  ;;  %2639 = vrot.lane.b32.xlu0 %v6036_v45, %s4824_s28  ;;  %2265 = vrot.lane.b32.xlu1 %v6052_v9, %s4822_s16  ;;  %v1663_v60 = vpop.f32.mrb[11].mxu0  ;;  %v4616_v28 = vadd.f32 %v1661_v58, %v1303_v25 }
 0x276   : > { %v6060_v62 = vadd.f32 %v4610_v53, %v1812_v15  ;;  %v4618_v4 = vadd.f32 %v1663_v60, %v1303_v25  ;;  %v6105_v53 = vmax.f32 %v6044_v51, 0.0  ;;  %v6116_v51 = vmax.f32 %v6050_v56, 0.0 }
 0x277   : > { %v6127_v56 = vmax.f32 %v6054_v14, 0.0 }
 0x278   : > { %v1667_v20 = vpop.f32.mrb[12].mxu0  ;;  %v1816_v22 = vpop.f32.mrb[8].mxu1 }
 0x279   : > { %v6062_v12 = vadd.f32 %v4612_v63, %v1816_v22  ;;  %v1818_v13 = vpop.f32.mrb[9].mxu1  ;;  %2295 = vrot.lane.b32.xlu0 %v6042_v50, %s4822_s16  ;;  %2437 = vrot.lane.b32.xlu1 %v6052_v9, %s4823_s17  ;;  %v1669_v23 = vpop.f32.mrb[13].mxu0  ;;  %v4620_v29 = vadd.f32 %v1667_v20, %v1308_v35 }
 0x27a   : > { %v6068_v27 = vadd.f32 %v4614_v16, %v1818_v13  ;;  %v4622_v30 = vadd.f32 %v1669_v23, %v1308_v35  ;;  %v1328_v20 = vpop.permute.xlu1 %1327 }
 0x27c   : > { %v1673_v57 = vpop.f32.mrb[14].mxu0  ;;  %v1822_v31 = vpop.f32.mrb[10].mxu1 }
 0x27d   : > { %v6070_v32 = vadd.f32 %v4616_v28, %v1822_v31  ;;  %v1824_v33 = vpop.f32.mrb[11].mxu1  ;;  %2467 = vrot.lane.b32.xlu0 %v6042_v50, %s4823_s17  ;;  %2641 = vrot.lane.b32.xlu1 %v6052_v9, %s4824_s28  ;;  %v1675_v34 = vpop.f32.mrb[15].mxu0  ;;  %v4624_v24 = vadd.f32 %v1673_v57, %v1313_v43 }
 0x27e   : > { %v6076_v36 = vadd.f32 %v4618_v4, %v1824_v33  ;;  %v4626_v26 = vadd.f32 %v1675_v34, %v1313_v43  ;;  %v1333_v33 = vpop.permute.xlu0 %1332  ;;  %v1338_v43 = vpop.permute.xlu1 %1337 }
 0x280   : > { %v1679_v38 = vpop.f32.mrb[16].mxu0  ;;  %v1828_v39 = vpop.f32.mrb[12].mxu1 }
 0x281   : > { %v6080_v40 = vadd.f32 %v4620_v29, %v1828_v39  ;;  %v1830_v41 = vpop.f32.mrb[13].mxu1  ;;  %2671 = vrot.lane.b32.xlu0 %v6042_v50, %s4824_s28  ;;  %2297 = vrot.lane.b32.xlu1 %v6078_v37, %s4822_s16  ;;  %v1681_v42 = vpop.f32.mrb[17].mxu0  ;;  %v4628_v48 = vadd.f32 %v1679_v38, %v1318_v6 }
 0x282   : > { %v6086_v44 = vadd.f32 %v4622_v30, %v1830_v41  ;;  %v4630_v49 = vadd.f32 %v1681_v42, %v1318_v6 }
 0x284   : > { %v1685_v2 = vpop.f32.mrb[18].mxu0  ;;  %v1834_v1 = vpop.f32.mrb[14].mxu1 }
 0x285   : > { %v6088_v46 = vadd.f32 %v4624_v24, %v1834_v1  ;;  %v1836_v0 = vpop.f32.mrb[15].mxu1  ;;  %1921 = vrot.lane.b32.xlu0 %v6052_v9, %s4820_s14  ;;  %2469 = vrot.lane.b32.xlu1 %v6078_v37, %s4823_s17  ;;  %v1687_v3 = vpop.f32.mrb[19].mxu0  ;;  %v4632_v58 = vadd.f32 %v1685_v2, %v1323_v55 }
 0x286   : > { %v6094_v7 = vadd.f32 %v4626_v26, %v1836_v0  ;;  %v4634_v59 = vadd.f32 %v1687_v3, %v1323_v55 }
 0x288   : > { %v1691_v5 = vpop.f32.mrb[20].mxu0  ;;  %v1840_v10 = vpop.f32.mrb[16].mxu1 }
 0x289   : > { %v6096_v11 = vadd.f32 %v4628_v48, %v1840_v10  ;;  %v1842_v52 = vpop.f32.mrb[17].mxu1  ;;  %2673 = vrot.lane.b32.xlu1 %v6078_v37, %s4824_s28  ;;  %1953 = vrot.lane.b32.xlu0 %v6078_v37, %s4820_s14  ;;  %v1693_v54 = vpop.f32.mrb[21].mxu0  ;;  %v4636_v13 = vadd.f32 %v1691_v5, %v1328_v20 }
 0x28a   : > { %v6102_v8 = vadd.f32 %v4630_v49, %v1842_v52  ;;  %v4638_v23 = vadd.f32 %v1693_v54, %v1328_v20  ;;  %v1343_v48 = vpop.permute.xlu0 %1342 }
 0x28c   : > { %v1697_v15 = vpop.f32.mrb[22].mxu0  ;;  %v1846_v60 = vpop.f32.mrb[18].mxu1 }
 0x28d   : > { %v6107_v61 = vadd.f32 %v4632_v58, %v1846_v60  ;;  %v1848_v63 = vpop.f32.mrb[19].mxu1  ;;  %2267 = vrot.lane.b32.xlu0 %v6105_v53, %s4822_s16  ;;  %1923 = vrot.lane.b32.xlu1 %v6105_v53, %s4820_s14  ;;  %v1699_v16 = vpop.f32.mrb[23].mxu0  ;;  %v4640_v35 = vadd.f32 %v1697_v15, %v1333_v33 }
 0x28e   : > { %v6113_v22 = vadd.f32 %v4634_v59, %v1848_v63  ;;  %v4642_v29 = vadd.f32 %v1699_v16, %v1333_v33  ;;  %v1348_v15 = vpop.permute.xlu1 %1347  ;;  %v6154_v63 = vmax.f32 %v6060_v62, 0.0 }
 0x290   : > { %v1703_v25 = vpop.f32.mrb[24].mxu0  ;;  %v1852_v28 = vpop.f32.mrb[20].mxu1 }
 0x291   : > { %v6118_v4 = vadd.f32 %v4636_v13, %v1852_v28  ;;  %v1854_v57 = vpop.f32.mrb[21].mxu1  ;;  %2439 = vrot.lane.b32.xlu0 %v6105_v53, %s4823_s17  ;;  %1955 = vrot.lane.b32.xlu1 %v6116_v51, %s4820_s14  ;;  %v1705_v31 = vpop.f32.mrb[25].mxu0  ;;  %v4644_v26 = vadd.f32 %v1703_v25, %v1338_v43 }
 0x292   : > { %v6124_v34 = vadd.f32 %v4638_v23, %v1854_v57  ;;  %v4646_v14 = vadd.f32 %v1705_v31, %v1338_v43  ;;  %v1353_v28 = vpop.permute.xlu0 %1352  ;;  %v6254_v43 = vmax.f32 %v6094_v7, 0.0  ;;  %v6269_v7 = vmax.f32 %v6096_v11, 0.0 }
 0x294   : > { %v1709_v30 = vpop.f32.mrb[26].mxu0  ;;  %v1858_v38 = vpop.f32.mrb[22].mxu1  ;;  %8135 = vst [vmem:[#allocation16_spill] sm:$0xff] %v6269_v7 }
 0x295   : > { %v6129_v39 = vadd.f32 %v4640_v35, %v1858_v38  ;;  %v1860_v41 = vpop.f32.mrb[23].mxu1  ;;  %2643 = vrot.lane.b32.xlu0 %v6105_v53, %s4824_s28  ;;  %2269 = vrot.lane.b32.xlu1 %v6127_v56, %s4822_s16  ;;  %v1711_v42 = vpop.f32.mrb[27].mxu0  ;;  %v4648_v5 = vadd.f32 %v1709_v30, %v1343_v48  ;;  %v6177_v38 = vmax.f32 %v6062_v12, 0.0  ;;  %v6206_v12 = vmax.f32 %v6076_v36, 0.0 }
 0x296   : > { %v6135_v24 = vadd.f32 %v4642_v29, %v1860_v41  ;;  %v4650_v10 = vadd.f32 %v1711_v42, %v1343_v48  ;;  %v6184_v41 = vmax.f32 %v6068_v27, 0.0  ;;  %v6191_v42 = vmax.f32 %v6070_v32, 0.0 }
 0x297   : > { %8131 = vst [vmem:[#allocation12_spill] sm:$0xff] %v6177_v38  ;;  %v6221_v27 = vmax.f32 %v6080_v40, 0.0  ;;  %v6232_v32 = vmax.f32 %v6086_v44, 0.0  ;;  %v6243_v36 = vmax.f32 %v6088_v46, 0.0 }
 0x298   : > { %v1715_v2 = vpop.f32.mrb[28].mxu0  ;;  %v1864_v1 = vpop.f32.mrb[24].mxu1  ;;  %8132 = vst [vmem:[#allocation13_spill] sm:$0xff] %v6191_v42 }
 0x299   : > { %v6137_v0 = vadd.f32 %v4644_v26, %v1864_v1  ;;  %v1866_v3 = vpop.f32.mrb[25].mxu1  ;;  %2299 = vrot.lane.b32.xlu0 %v6116_v51, %s4822_s16  ;;  %2441 = vrot.lane.b32.xlu1 %v6127_v56, %s4823_s17  ;;  %v1717_v6 = vpop.f32.mrb[29].mxu0  ;;  %v4652_v16 = vadd.f32 %v1715_v2, %v1348_v15  ;;  %8133 = vst [vmem:[#allocation14_spill] sm:$0xff] %v6243_v36 }
 0x29a   : > { %v6143_v49 = vadd.f32 %v4646_v14, %v1866_v3  ;;  %v4654_v20 = vadd.f32 %v1717_v6, %v1348_v15  ;;  %v4149_v6 = vld [vmem:[%s8022_s1 + $0x2] ss:$8 sm:$0x3] }
 0x29b   : > { %v6285_v11 = vrot.slane %v4149_v6, %v5097_v21 }
 0x29c   : > { %v1721_v52 = vpop.f32.mrb[30].mxu0  ;;  %v1870_v54 = vpop.f32.mrb[26].mxu1 }
 0x29d   : > { %v6145_v55 = vadd.f32 %v4648_v5, %v1870_v54  ;;  %v1872_v58 = vpop.f32.mrb[27].mxu1  ;;  %2471 = vrot.lane.b32.xlu0 %v6116_v51, %s4823_s17  ;;  %2645 = vrot.lane.b32.xlu1 %v6127_v56, %s4824_s28  ;;  %v1723_v59 = vpop.f32.mrb[31].mxu0  ;;  %v4656_v31 = vadd.f32 %v1721_v52, %v1353_v28 }
 0x29e   : > { %v6151_v60 = vadd.f32 %v4650_v10, %v1872_v58  ;;  %v4658_v33 = vadd.f32 %v1723_v59, %v1353_v28  ;;  %v6288_v10 = vrot.slane %v4149_v6, %v5087_v19  ;;  %v6299_v58 = vmax.f32 %v6102_v8, 0.0  ;;  %v2015_v8 = vld [vmem:[%s8022_s1] ss:$8 sm:$0x3] }
 0x2a0   : > { %v1876_v13 = vpop.f32.mrb[28].mxu1  ;;  %8137 = vst [vmem:[#allocation18_spill] sm:$0xff] %v6299_v58 }
 0x2a1   : > { %v6156_v23 = vadd.f32 %v4652_v16, %v1876_v13  ;;  %v1878_v25 = vpop.f32.mrb[29].mxu1  ;;  %2675 = vrot.lane.b32.xlu0 %v6116_v51, %s4824_s28  ;;  %2301 = vrot.lane.b32.xlu1 %v6154_v63, %s4822_s16 }
 0x2a2   : > { %v6162_v57 = vadd.f32 %v4654_v20, %v1878_v25 }
 0x2a4   : > { %v1882_v35 = vpop.f32.mrb[30].mxu1 }
 0x2a5   : > { %v6164_v62 = vadd.f32 %v4656_v31, %v1882_v35  ;;  %v1884_v29 = vpop.f32.mrb[31].mxu1  ;;  %1925 = vrot.lane.b32.xlu0 %v6127_v56, %s4820_s14  ;;  %2473 = vrot.lane.b32.xlu1 %v6154_v63, %s4823_s17 }
 0x2a6   : > { %v6170_v30 = vadd.f32 %v4658_v33, %v1884_v29 }
 0x2a9   : > { %2677 = vrot.lane.b32.xlu1 %v6154_v63, %s4824_s28  ;;  %1957 = vrot.lane.b32.xlu0 %v6154_v63, %s4820_s14 }
 0x2ad   : > { %2271 = vrot.lane.b32.xlu0 %v6177_v38, %s4822_s16  ;;  %1927 = vrot.lane.b32.xlu1 %v6177_v38, %s4820_s14 }
 0x2b1   : > { %2443 = vrot.lane.b32.xlu0 %v6177_v38, %s4823_s17  ;;  %1959 = vrot.lane.b32.xlu1 %v6184_v41, %s4820_s14 }
 0x2b5   : > { %2647 = vrot.lane.b32.xlu0 %v6177_v38, %s4824_s28  ;;  %2273 = vrot.lane.b32.xlu1 %v6191_v42, %s4822_s16 }
 0x2b9   : > { %2303 = vrot.lane.b32.xlu0 %v6184_v41, %s4822_s16  ;;  %2445 = vrot.lane.b32.xlu1 %v6191_v42, %s4823_s17 }
 0x2bd   : > { %2475 = vrot.lane.b32.xlu0 %v6184_v41, %s4823_s17  ;;  %2649 = vrot.lane.b32.xlu1 %v6191_v42, %s4824_s28 }
 0x2c1   : > { %2679 = vrot.lane.b32.xlu0 %v6184_v41, %s4824_s28  ;;  %2305 = vrot.lane.b32.xlu1 %v6206_v12, %s4822_s16 }
 0x2c5   : > { %1929 = vrot.lane.b32.xlu0 %v6191_v42, %s4820_s14  ;;  %2477 = vrot.lane.b32.xlu1 %v6206_v12, %s4823_s17 }
 0x2c9   : > { %1961 = vrot.lane.b32.xlu0 %v6206_v12, %s4820_s14  ;;  %2681 = vrot.lane.b32.xlu1 %v6206_v12, %s4824_s28 }
 0x2cd   : > { %2275 = vrot.lane.b32.xlu0 %v6221_v27, %s4822_s16  ;;  %1931 = vrot.lane.b32.xlu1 %v6221_v27, %s4820_s14 }
 0x2d1   : > { %2447 = vrot.lane.b32.xlu0 %v6221_v27, %s4823_s17  ;;  %2651 = vrot.lane.b32.xlu1 %v6221_v27, %s4824_s28 }
 0x2d5   : > { %2683 = vrot.lane.b32.xlu1 %v6232_v32, %s4824_s28  ;;  %2307 = vrot.lane.b32.xlu0 %v6232_v32, %s4822_s16 }
 0x2d9   : > { %1963 = vrot.lane.b32.xlu1 %v6232_v32, %s4820_s14  ;;  %2479 = vrot.lane.b32.xlu0 %v6232_v32, %s4823_s17 }
 0x2dd   : > { %2277 = vrot.lane.b32.xlu1 %v6243_v36, %s4822_s16  ;;  %1933 = vrot.lane.b32.xlu0 %v6243_v36, %s4820_s14 }
 0x2df   : > { %v2264_v40 = vpop.permute.xlu0 %2263  ;;  %v1920_v44 = vpop.permute.xlu1 %1919 }
 0x2e1   : > { %2449 = vrot.lane.b32.xlu1 %v6243_v36, %s4823_s17  ;;  %2653 = vrot.lane.b32.xlu0 %v6243_v36, %s4824_s28 }
 0x2e3   : > { %v6256_v26 = vpop.permute.xlu0 %2435  ;;  %v1952_v46 = vpop.permute.xlu1 %1951 }
 0x2e4   : > { %v1983_v6 = vsel %vm300_vm0, %v1920_v44, %v1952_v46 }
 0x2e5   : > { %2685 = vrot.lane.b32.xlu0 %v6254_v43, %s4824_s28  ;;  %2309 = vrot.lane.b32.xlu1 %v6254_v43, %s4822_s16 }
 0x2e7   : > { %v6262_v14 = vpop.permute.xlu0 %2639  ;;  %v2266_v2 = vpop.permute.xlu1 %2265 }
 0x2e8   : > { %8134 = vst [vmem:[#allocation15_spill] sm:$0xff] %v6262_v14 }
 0x2e9   : > { %1965 = vrot.lane.b32.xlu0 %v6254_v43, %s4820_s14  ;;  %2481 = vrot.lane.b32.xlu1 %v6254_v43, %s4823_s17 }
 0x2eb   : > { %v2296_v1 = vpop.permute.xlu0 %2295  ;;  %v6271_v3 = vpop.permute.xlu1 %2437 }
 0x2ec   : > { %v2327_v52 = vsel %vm487_vm2, %v2264_v40, %v2296_v1  ;;  %v2343_v54 = vsel %vm487_vm2, %v2296_v1, %v2264_v40  ;;  %v6324_v1 = vrot.slane %v2015_v8, %v5087_v19 }
 0x2ed   : > { %2279 = vrot.lane.b32.xlu0 %v6269_v7, %s4822_s16  ;;  %1935 = vrot.lane.b32.xlu1 %v6269_v7, %s4820_s14  ;;  %v2371_v13 = vmul.f32 %v6285_v11, %v2343_v54  ;;  %v2372_v25 = vmul.f32 %v6288_v10, %v2327_v52  ;;  %v1999_v52 = vsel %vm300_vm0, %v1952_v46, %v1920_v44  ;;  %v6335_v54 = vmax.f32 %v6107_v61, 0.0 }
 0x2ee   : > { %v2028_v44 = vmul.f32 %v6324_v1, %v1983_v6 }
 0x2ef   : > { %v6280_v48 = vpop.permute.xlu0 %2467  ;;  %v6282_v5 = vpop.permute.xlu1 %2641  ;;  %8139 = vst [vmem:[#allocation20_spill] sm:$0xff] %v6335_v54 }
 0x2f0   : > { %8136 = vst [vmem:[#allocation17_spill] sm:$0xff] %v6282_v5 }
 0x2f1   : > { %2451 = vrot.lane.b32.xlu0 %v6269_v7, %s4823_s17  ;;  %2655 = vrot.lane.b32.xlu1 %v6269_v7, %s4824_s28 }
 0x2f3   : > { %v6301_v59 = vpop.permute.xlu0 %2671  ;;  %v2298_v15 = vpop.permute.xlu1 %2297 }
 0x2f4   : > { %8138 = vst [vmem:[#allocation19_spill] sm:$0xff] %v6301_v59  ;;  %v2328_v16 = vsel %vm487_vm2, %v2266_v2, %v2298_v15  ;;  %v2344_v20 = vsel %vm487_vm2, %v2298_v15, %v2266_v2  ;;  %v6321_v2 = vrot.slane %v2015_v8, %v5097_v21 }
 0x2f5   : > { %v2373_v28 = vmul.f32 %v6285_v11, %v2344_v20  ;;  %v2374_v31 = vmul.f32 %v6288_v10, %v2328_v16  ;;  %2687 = vrot.lane.b32.xlu1 %v6299_v58, %s4824_s28  ;;  %2311 = vrot.lane.b32.xlu0 %v6299_v58, %s4822_s16 }
 0x2f7   : > { %v4374_v33 = vpack.c.bf16 %v2373_v28, %v2371_v13  ;;  %v1922_v35 = vpop.permute.xlu0 %1921  ;;  %v6318_v29 = vpop.permute.xlu1 %2469  ;;  %v4372_v40 = vpack.c.bf16 %v2374_v31, %v2372_v25  ;;  %v2027_v25 = vmul.f32 %v6321_v2, %v1999_v52 }
 0x2f9   : > { %4373 = vmatprep.subr.bf16.mxu1 %v4372_v40  ;;  %1967 = vrot.lane.b32.xlu1 %v6299_v58, %s4820_s14 }
 0x2fa   : > { %2483 = vrot.lane.b32.xlu0 %v6299_v58, %s4823_s17  ;;  %4375 = vmatpush1.bf16.msra.mxu1 %v4374_v33 }
 0x2fb   : > { %v6337_v15 = vpop.permute.xlu1 %2673  ;;  %v1954_v16 = vpop.permute.xlu0 %1953 }
 0x2fc   : > { %8140 = vst [vmem:[#allocation21_spill] sm:$0xff] %v6337_v15  ;;  %v1984_v20 = vsel %vm300_vm0, %v1922_v35, %v1954_v16  ;;  %v2000_v13 = vsel %vm300_vm0, %v1954_v16, %v1922_v35  ;;  %v6356_v35 = vmax.f32 %v6113_v22, 0.0  ;;  %v6371_v22 = vmax.f32 %v6118_v4, 0.0 }
 0x2fd   : > { %v2029_v46 = vmul.f32 %v6321_v2, %v2000_v13  ;;  %v2030_v28 = vmul.f32 %v6324_v1, %v1984_v20  ;;  %2281 = vrot.lane.b32.xlu1 %v6335_v54, %s4822_s16 }
 0x2fe   : > { %1937 = vrot.lane.b32.xlu0 %v6335_v54, %s4820_s14  ;;  %8141 = vst [vmem:[#allocation22_spill] sm:$0xff] %v6356_v35  ;;  %8143 = vst [vmem:[#allocation24_spill] sm:$0xff] %v6371_v22 }
 0x2ff   : > { %v4310_v61 = vpack.c.bf16 %v2029_v46, %v2027_v25  ;;  %v2268_v31 = vpop.permute.xlu0 %2267  ;;  %v1924_v8 = vpop.permute.xlu1 %1923  ;;  %v4308_v33 = vpack.c.bf16 %v2030_v28, %v2028_v44  ;;  %v6392_v28 = vmax.f32 %v6124_v34, 0.0 }
 0x301   : > { %4309 = vmatprep.subr.bf16.mxu0 %v4308_v33  ;;  %2453 = vrot.lane.b32.xlu1 %v6335_v54, %s4823_s17  ;;  %8145 = vst [vmem:[#allocation26_spill] sm:$0xff] %v6392_v28 }
 0x302   : > { %2657 = vrot.lane.b32.xlu0 %v6335_v54, %s4824_s28  ;;  %4311 = vmatpush1.bf16.msra.mxu0 %v4310_v61 }
 0x303   : > { %v6358_v40 = vpop.permute.xlu0 %2439  ;;  %v1956_v6 = vpop.permute.xlu1 %1955 }
 0x305   : > { %2313 = vrot.lane.b32.xlu1 %v6356_v35, %s4822_s16 }
 0x306   : > { %2689 = vrot.lane.b32.xlu0 %v6356_v35, %s4824_s28 }
 0x307   : > { %v6364_v52 = vpop.permute.xlu0 %2643  ;;  %v2270_v16 = vpop.permute.xlu1 %2269 }
 0x308   : > { %8142 = vst [vmem:[#allocation23_spill] sm:$0xff] %v6364_v52 }
 0x309   : > { %2485 = vrot.lane.b32.xlu1 %v6356_v35, %s4823_s17 }
 0x30a   : > { %1969 = vrot.lane.b32.xlu0 %v6356_v35, %s4820_s14 }
 0x30b   : > { %v2300_v20 = vpop.permute.xlu0 %2299  ;;  %v6373_v13 = vpop.permute.xlu1 %2441 }
 0x30c   : > { %v2329_v4 = vsel %vm487_vm2, %v2268_v31, %v2300_v20  ;;  %v2345_v46 = vsel %vm487_vm2, %v2300_v20, %v2268_v31 }
 0x30d   : > { %1939 = vrot.lane.b32.xlu1 %v6371_v22, %s4820_s14  ;;  %v2376_v59 = vmul.f32 %v6288_v10, %v2329_v4 }
 0x30e   : > { %2283 = vrot.lane.b32.xlu0 %v6371_v22, %s4822_s16 }
 0x30f   : > { %v6379_v25 = vpop.permute.xlu0 %2471  ;;  %v6381_v44 = vpop.permute.xlu1 %2645 }
 0x310   : > { %8144 = vst [vmem:[#allocation25_spill] sm:$0xff] %v6381_v44  ;;  %v2375_v44 = vmul.f32 %v6285_v11, %v2345_v46 }
 0x311   : > { %2659 = vrot.lane.b32.xlu1 %v6371_v22, %s4824_s28 }
 0x312   : > { %2455 = vrot.lane.b32.xlu0 %v6371_v22, %s4823_s17 }
 0x313   : > { %v6394_v61 = vpop.permute.xlu0 %2675  ;;  %v2302_v33 = vpop.permute.xlu1 %2301 }
 0x314   : > { %8146 = vst [vmem:[#allocation27_spill] sm:$0xff] %v6394_v61  ;;  %v2330_v47 = vsel %vm487_vm2, %v2270_v16, %v2302_v33  ;;  %v2346_v52 = vsel %vm487_vm2, %v2302_v33, %v2270_v16  ;;  %v6419_v16 = vmax.f32 %v6129_v39, 0.0 }
 0x315   : > { %v2377_v31 = vmul.f32 %v6285_v11, %v2346_v52  ;;  %v2378_v20 = vmul.f32 %v6288_v10, %v2330_v47  ;;  %2691 = vrot.lane.b32.xlu1 %v6392_v28, %s4824_s28  ;;  %v1985_v52 = vsel %vm300_vm0, %v1924_v8, %v1956_v6  ;;  %v2001_v47 = vsel %vm300_vm0, %v1956_v6, %v1924_v8 }
 0x316   : > { %2315 = vrot.lane.b32.xlu0 %v6392_v28, %s4822_s16  ;;  %8147 = vst [vmem:[#allocation28_spill] sm:$0xff] %v6419_v16  ;;  %v2031_v46 = vmul.f32 %v6321_v2, %v2001_v47  ;;  %v2032_v8 = vmul.f32 %v6324_v1, %v1985_v52 }
 0x317   : > { %v4378_v34 = vpack.c.bf16 %v2377_v31, %v2375_v44  ;;  %v1926_v61 = vpop.permute.xlu0 %1925  ;;  %v6408_v14 = vpop.permute.xlu1 %2473  ;;  %v4376_v15 = vpack.c.bf16 %v2378_v20, %v2376_v59 }
 0x319   : > { %4377 = vmatprep.subr.bf16.mxu1 %v4376_v15  ;;  %1971 = vrot.lane.b32.xlu1 %v6392_v28, %s4820_s14 }
 0x31a   : > { %2487 = vrot.lane.b32.xlu0 %v6392_v28, %s4823_s17  ;;  %4379 = vmatpush1.bf16.msra.mxu1 %v4378_v34 }
 0x31b   : > { %v6421_v44 = vpop.permute.xlu1 %2677  ;;  %v1958_v59 = vpop.permute.xlu0 %1957 }
 0x31c   : > { %8148 = vst [vmem:[#allocation29_spill] sm:$0xff] %v6421_v44  ;;  %v1986_v15 = vsel %vm300_vm0, %v1926_v61, %v1958_v59  ;;  %v2002_v4 = vsel %vm300_vm0, %v1958_v59, %v1926_v61  ;;  %v6440_v61 = vmax.f32 %v6135_v24, 0.0  ;;  %v6455_v24 = vmax.f32 %v6137_v0, 0.0 }
 0x31d   : > { %v2033_v6 = vmul.f32 %v6321_v2, %v2002_v4  ;;  %v2034_v33 = vmul.f32 %v6324_v1, %v1986_v15  ;;  %2285 = vrot.lane.b32.xlu1 %v6419_v16, %s4822_s16 }
 0x31e   : > { %1941 = vrot.lane.b32.xlu0 %v6419_v16, %s4820_s14  ;;  %8149 = vst [vmem:[#allocation30_spill] sm:$0xff] %v6440_v61  ;;  %8152 = vst [vmem:[#allocation33_spill] sm:$0xff] %v6455_v24 }
 0x31f   : > { %v4314_v39 = vpack.c.bf16 %v2033_v6, %v2031_v46  ;;  %v2272_v31 = vpop.permute.xlu0 %2271  ;;  %v1928_v20 = vpop.permute.xlu1 %1927  ;;  %v4312_v34 = vpack.c.bf16 %v2034_v33, %v2032_v8 }
 0x321   : > { %4313 = vmatprep.subr.bf16.mxu0 %v4312_v34  ;;  %2457 = vrot.lane.b32.xlu1 %v6419_v16, %s4823_s17 }
 0x322   : > { %2661 = vrot.lane.b32.xlu0 %v6419_v16, %s4824_s28  ;;  %4315 = vmatpush1.bf16.msra.mxu0 %v4314_v39  ;;  %v6476_v39 = vmax.f32 %v6143_v49, 0.0 }
 0x323   : > { %v6442_v52 = vpop.permute.xlu0 %2443  ;;  %v1960_v47 = vpop.permute.xlu1 %1959 }
 0x324   : > { %8150 = vst [vmem:[#allocation31_spill] sm:$0xff] %v6442_v52  ;;  %8156 = vst [vmem:[#allocation37_spill] sm:$0xff] %v6476_v39 }
 0x325   : > { %2317 = vrot.lane.b32.xlu1 %v6440_v61, %s4822_s16 }
 0x326   : > { %2693 = vrot.lane.b32.xlu0 %v6440_v61, %s4824_s28 }
 0x327   : > { %v6448_v59 = vpop.permute.xlu0 %2647  ;;  %v2274_v15 = vpop.permute.xlu1 %2273 }
 0x328   : > { %8151 = vst [vmem:[#allocation32_spill] sm:$0xff] %v6448_v59 }
 0x329   : > { %2489 = vrot.lane.b32.xlu1 %v6440_v61, %s4823_s17 }
 0x32a   : > { %1973 = vrot.lane.b32.xlu0 %v6440_v61, %s4820_s14 }
 0x32b   : > { %v2304_v4 = vpop.permute.xlu0 %2303  ;;  %v6457_v46 = vpop.permute.xlu1 %2445 }
 0x32c   : > { %8153 = vst [vmem:[#allocation34_spill] sm:$0xff] %v6457_v46  ;;  %v2331_v0 = vsel %vm487_vm2, %v2272_v31, %v2304_v4  ;;  %v2347_v33 = vsel %vm487_vm2, %v2304_v4, %v2272_v31 }
 0x32d   : > { %1943 = vrot.lane.b32.xlu1 %v6455_v24, %s4820_s14  ;;  %v2379_v5 = vmul.f32 %v6285_v11, %v2347_v33  ;;  %v2380_v52 = vmul.f32 %v6288_v10, %v2331_v0 }
 0x32e   : > { %2287 = vrot.lane.b32.xlu0 %v6455_v24, %s4822_s16 }
 0x32f   : > { %v6463_v8 = vpop.permute.xlu0 %2475  ;;  %v6465_v6 = vpop.permute.xlu1 %2649 }
 0x330   : > { %8154 = vst [vmem:[#allocation35_spill] sm:$0xff] %v6463_v8  ;;  %8155 = vst [vmem:[#allocation36_spill] sm:$0xff] %v6465_v6 }
 0x331   : > { %2663 = vrot.lane.b32.xlu1 %v6455_v24, %s4824_s28 }
 0x332   : > { %2459 = vrot.lane.b32.xlu0 %v6455_v24, %s4823_s17 }
 0x333   : > { %v6478_v34 = vpop.permute.xlu0 %2679  ;;  %v2306_v59 = vpop.permute.xlu1 %2305 }
 0x334   : > { %8157 = vst [vmem:[#allocation38_spill] sm:$0xff] %v6478_v34  ;;  %v2332_v6 = vsel %vm487_vm2, %v2274_v15, %v2306_v59  ;;  %v2348_v44 = vsel %vm487_vm2, %v2306_v59, %v2274_v15  ;;  %v2003_v59 = vsel %vm300_vm0, %v1960_v47, %v1928_v20 }
 0x335   : > { %v2381_v31 = vmul.f32 %v6285_v11, %v2348_v44  ;;  %v2382_v4 = vmul.f32 %v6288_v10, %v2332_v6  ;;  %2695 = vrot.lane.b32.xlu1 %v6476_v39, %s4824_s28  ;;  %v1987_v44 = vsel %vm300_vm0, %v1928_v20, %v1960_v47  ;;  %v2035_v0 = vmul.f32 %v6321_v2, %v2003_v59 }
 0x336   : > { %2319 = vrot.lane.b32.xlu0 %v6476_v39, %s4822_s16  ;;  %v2036_v20 = vmul.f32 %v6324_v1, %v1987_v44 }
 0x337   : > { %v4382_v49 = vpack.c.bf16 %v2381_v31, %v2379_v5  ;;  %v1930_v34 = vpop.permute.xlu0 %1929  ;;  %v6492_v8 = vpop.permute.xlu1 %2477  ;;  %v4380_v46 = vpack.c.bf16 %v2382_v4, %v2380_v52  ;;  %v6503_v5 = vmax.f32 %v6145_v55, 0.0 }
 0x338   : > { %8158 = vst [vmem:[#allocation39_spill] sm:$0xff] %v6492_v8 }
 0x339   : > { %4381 = vmatprep.subr.bf16.mxu1 %v4380_v46  ;;  %1975 = vrot.lane.b32.xlu1 %v6476_v39, %s4820_s14  ;;  %8159 = vst [vmem:[#allocation40_spill] sm:$0xff] %v6503_v5 }
 0x33a   : > { %2491 = vrot.lane.b32.xlu0 %v6476_v39, %s4823_s17  ;;  %4383 = vmatpush1.bf16.msra.mxu1 %v4382_v49 }
 0x33b   : > { %v1962_v15 = vpop.permute.xlu0 %1961  ;;  %v6505_v6 = vpop.permute.xlu1 %2681 }
 0x33c   : > { %8160 = vst [vmem:[#allocation41_spill] sm:$0xff] %v6505_v6  ;;  %v1988_v52 = vsel %vm300_vm0, %v1930_v34, %v1962_v15  ;;  %v2004_v46 = vsel %vm300_vm0, %v1962_v15, %v1930_v34  ;;  %v6524_v34 = vmax.f32 %v6151_v60, 0.0  ;;  %v6541_v60 = vmax.f32 %v6156_v23, 0.0 }
 0x33d   : > { %v2037_v47 = vmul.f32 %v6321_v2, %v2004_v46  ;;  %v2038_v33 = vmul.f32 %v6324_v1, %v1988_v52  ;;  %2289 = vrot.lane.b32.xlu1 %v6503_v5, %s4822_s16  ;;  %v6554_v23 = vmax.f32 %v6164_v62, 0.0 }
 0x33e   : > { %1945 = vrot.lane.b32.xlu0 %v6503_v5, %s4820_s14  ;;  %8161 = vst [vmem:[#allocation42_spill] sm:$0xff] %v6524_v34  ;;  %8165 = vst [vmem:[#allocation46_spill] sm:$0xff] %v6541_v60 }
 0x33f   : > { %v4318_v55 = vpack.c.bf16 %v2037_v47, %v2035_v0  ;;  %v2276_v31 = vpop.permute.xlu0 %2275  ;;  %v1932_v4 = vpop.permute.xlu1 %1931  ;;  %v4316_v49 = vpack.c.bf16 %v2038_v33, %v2036_v20  ;;  %8167 = vst [vmem:[#allocation48_spill] sm:$0xff] %v6554_v23 }
 0x341   : > { %4317 = vmatprep.subr.bf16.mxu0 %v4316_v49  ;;  %2461 = vrot.lane.b32.xlu1 %v6503_v5, %s4823_s17  ;;  %v6561_v49 = vmax.f32 %v6162_v57, 0.0 }
 0x342   : > { %2665 = vrot.lane.b32.xlu0 %v6503_v5, %s4824_s28  ;;  %4319 = vmatpush1.bf16.msra.mxu0 %v4318_v55 }
 0x343   : > { %v6526_v44 = vpop.permute.xlu0 %2447  ;;  %v6528_v59 = vpop.permute.xlu1 %2651  ;;  %8170 = vst [vmem:[#allocation51_spill] sm:$0xff] %v6561_v49 }
 0x344   : > { %8162 = vst [vmem:[#allocation43_spill] sm:$0xff] %v6526_v44  ;;  %8163 = vst [vmem:[#allocation44_spill] sm:$0xff] %v6528_v59 }
 0x345   : > { %2321 = vrot.lane.b32.xlu1 %v6524_v34, %s4822_s16 }
 0x346   : > { %2697 = vrot.lane.b32.xlu0 %v6524_v34, %s4824_s28 }
 0x347   : > { %v6534_v15 = vpop.permute.xlu1 %2683  ;;  %v2308_v52 = vpop.permute.xlu0 %2307 }
 0x348   : > { %8164 = vst [vmem:[#allocation45_spill] sm:$0xff] %v6534_v15  ;;  %v2333_v15 = vsel %vm487_vm2, %v2276_v31, %v2308_v52  ;;  %v2349_v59 = vsel %vm487_vm2, %v2308_v52, %v2276_v31 }
 0x349   : > { %2493 = vrot.lane.b32.xlu1 %v6524_v34, %s4823_s17 }
 0x34a   : > { %1977 = vrot.lane.b32.xlu0 %v6524_v34, %s4820_s14 }
 0x34b   : > { %v1964_v46 = vpop.permute.xlu1 %1963  ;;  %v6543_v0 = vpop.permute.xlu0 %2479 }
 0x34c   : > { %8166 = vst [vmem:[#allocation47_spill] sm:$0xff] %v6543_v0  ;;  %v1989_v52 = vsel %vm300_vm0, %v1932_v4, %v1964_v46 }
 0x34d   : > { %1947 = vrot.lane.b32.xlu1 %v6541_v60, %s4820_s14 }
 0x34e   : > { %2291 = vrot.lane.b32.xlu0 %v6541_v60, %s4822_s16 }
 0x34f   : > { %v2278_v20 = vpop.permute.xlu1 %2277  ;;  %v1934_v47 = vpop.permute.xlu0 %1933 }
 0x351   : > { %2667 = vrot.lane.b32.xlu1 %v6541_v60, %s4824_s28 }
 0x352   : > { %2463 = vrot.lane.b32.xlu0 %v6541_v60, %s4823_s17  ;;  %v2383_v60 = vmul.f32 %v6285_v11, %v2349_v59 }
 0x353   : > { %v6556_v33 = vpop.permute.xlu1 %2449  ;;  %v6558_v55 = vpop.permute.xlu0 %2653 }
 0x354   : > { %8168 = vst [vmem:[#allocation49_spill] sm:$0xff] %v6556_v33  ;;  %8169 = vst [vmem:[#allocation50_spill] sm:$0xff] %v6558_v55  ;;  %v2384_v33 = vmul.f32 %v6288_v10, %v2333_v15 }
 0x355   : > { %2293 = vrot.lane.b32.xlu1 %v6554_v23, %s4822_s16 }
 0x356   : > { %2323 = vrot.lane.b32.xlu0 %v6561_v49, %s4822_s16 }
 0x357   : > { %v6571_v62 = vpop.permute.xlu0 %2685  ;;  %v2310_v6 = vpop.permute.xlu1 %2309 }
 0x358   : > { %8171 = vst [vmem:[#allocation52_spill] sm:$0xff] %v6571_v62  ;;  %v2334_v55 = vsel %vm487_vm2, %v2278_v20, %v2310_v6  ;;  %v2350_v57 = vsel %vm487_vm2, %v2310_v6, %v2278_v20  ;;  %v2005_v62 = vsel %vm300_vm0, %v1964_v46, %v1932_v4  ;;  %v2040_v4 = vmul.f32 %v6324_v1, %v1989_v52 }
 0x359   : > { %v2385_v44 = vmul.f32 %v6285_v11, %v2350_v57  ;;  %v2386_v31 = vmul.f32 %v6288_v10, %v2334_v55  ;;  %2465 = vrot.lane.b32.xlu1 %v6554_v23, %s4823_s17  ;;  %v6592_v57 = vmax.f32 %v6170_v30, 0.0  ;;  %v2039_v8 = vmul.f32 %v6321_v2, %v2005_v62 }
 0x35a   : > { %2495 = vrot.lane.b32.xlu0 %v6561_v49, %s4823_s17 }
 0x35b   : > { %v4386_v6 = vpack.c.bf16 %v2385_v44, %v2383_v60  ;;  %v1966_v59 = vpop.permute.xlu0 %1965  ;;  %v6589_v20 = vpop.permute.xlu1 %2481  ;;  %v4384_v15 = vpack.c.bf16 %v2386_v31, %v2384_v33  ;;  %8172 = vst [vmem:[#allocation53_spill] sm:$0xff] %v6592_v57 }
 0x35c   : > { %v1990_v55 = vsel %vm300_vm0, %v1934_v47, %v1966_v59  ;;  %v2006_v0 = vsel %vm300_vm0, %v1966_v59, %v1934_v47 }
 0x35d   : > { %v2041_v46 = vmul.f32 %v6321_v2, %v2006_v0  ;;  %v2042_v44 = vmul.f32 %v6324_v1, %v1990_v55  ;;  %4385 = vmatprep.subr.bf16.mxu1 %v4384_v15  ;;  %2325 = vrot.lane.b32.xlu1 %v6592_v57, %s4822_s16  ;;  %v4830_v55 = vmov 1983009808  }
 0x35e   : > { %1949 = vrot.lane.b32.xlu0 %v6554_v23, %s4820_s14  ;;  %4387 = vmatpush1.bf16.msra.mxu1 %v4386_v6 }
 0x35f   : > { %v4322_v30 = vpack.c.bf16 %v2041_v46, %v2039_v8  ;;  %v2280_v60 = vpop.permute.xlu0 %2279  ;;  %v1936_v33 = vpop.permute.xlu1 %1935  ;;  %v4320_v47 = vpack.c.bf16 %v2042_v44, %v2040_v4  ;;  %v3629_v4 = vunpack.c.l.s4 %v4830_v55 }
 0x361   : > { %4321 = vmatprep.subr.bf16.mxu0 %v4320_v47  ;;  %2497 = vrot.lane.b32.xlu1 %v6592_v57, %s4823_s17  ;;  %v3630_v44 = vunpack.c.0.s8 %v3629_v4  ;;  %v6641_v47 = vld [vmem:[%s8025_s4] sm:$0xff] }
 0x362   : > { %2669 = vrot.lane.b32.xlu0 %v6554_v23, %s4824_s28  ;;  %4323 = vmatpush1.bf16.msra.mxu0 %v4322_v30  ;;  %8176 = vst [vmem:[#allocation57_spill] sm:$0xff] %v6641_v47 }
 0x363   : > { %v6610_v0 = vpop.permute.xlu0 %2451  ;;  %v6612_v62 = vpop.permute.xlu1 %2655  ;;  %v6646_v55 = vsub.s32 %v3630_v44, %v5078_v17 }
 0x364   : > { %8173 = vst [vmem:[#allocation54_spill] sm:$0xff] %v6612_v62 }
 0x365   : > { %2699 = vrot.lane.b32.xlu1 %v6561_v49, %s4824_s28  ;;  %8177 = vst [vmem:[#allocation58_spill] sm:$0xff] %v6646_v55 }
 0x366   : > { %2701 = vrot.lane.b32.xlu0 %v6592_v57, %s4824_s28 }
 0x367   : > { %v6618_v8 = vpop.permute.xlu1 %2687  ;;  %v2312_v31 = vpop.permute.xlu0 %2311 }
 0x368   : > { %8174 = vst [vmem:[#allocation55_spill] sm:$0xff] %v6618_v8  ;;  %v3627_v8 = vcombine.high %v6641_v47, %v6641_v47  ;;  %v2335_v62 = vsel %vm487_vm2, %v2280_v60, %v2312_v31 }
 0x369   : > { %1979 = vrot.lane.b32.xlu1 %v6561_v49, %s4820_s14  ;;  %v2351_v49 = vsel %vm487_vm2, %v2312_v31, %v2280_v60  ;;  %v2388_v31 = vmul.f32 %v6288_v10, %v2335_v62 }
 0x36a   : > { %1981 = vrot.lane.b32.xlu0 %v6592_v57, %s4820_s14  ;;  %v2387_v60 = vmul.f32 %v6285_v11, %v2351_v49 }
 0x36b   : > { %v1968_v52 = vpop.permute.xlu1 %1967 }
 0x36c   : > { %v6624_v6 = vpop.permute.xlu0 %2483  ;;  %v1991_v49 = vsel %vm300_vm0, %v1936_v33, %v1968_v52 }
 0x36d   : > { %2811 = vrot.lane.b32.xlu1 %v6036_v45, %s4825_s10 }
 0x36e   : > { %2813 = vrot.lane.b32.xlu0 %v6052_v9, %s4825_s10 }
 0x36f   : > { %v2282_v59 = vpop.permute.xlu1 %2281 }
 0x370   : > { %v1938_v15 = vpop.permute.xlu0 %1937 }
 0x371   : > { %2843 = vrot.lane.b32.xlu1 %v6042_v50, %s4825_s10 }
 0x372   : > { %2845 = vrot.lane.b32.xlu0 %v6078_v37, %s4825_s10 }
 0x373   : > { %v6634_v46 = vpop.permute.xlu1 %2453 }
 0x374   : > { %v6636_v30 = vpop.permute.xlu0 %2657 }
 0x375   : > { %8175 = vst [vmem:[#allocation56_spill] sm:$0xff] %v6636_v30  ;;  %2091 = vrot.lane.b32.xlu1 %v6036_v45, %s4821_s15  ;;  %v6657_v30 = vrot.slane %v3627_v8, %v6646_v55  ;;  %v2007_v8 = vsel %vm300_vm0, %v1968_v52, %v1936_v33 }
 0x376   : > { %2093 = vrot.lane.b32.xlu0 %v6052_v9, %s4821_s15 }
 0x377   : > { %v2314_v4 = vpop.permute.xlu1 %2313  ;;  %8178 = vst [vmem:[#allocation59_spill] sm:$0xff] %v6657_v30 }
 0x378   : > { %v6659_v47 = vpop.permute.xlu0 %2689  ;;  %v2336_v17 = vsel %vm487_vm2, %v2282_v59, %v2314_v4  ;;  %v2352_v44 = vsel %vm487_vm2, %v2314_v4, %v2282_v59  ;;  %v3643_v59 = vcombine.high %v6657_v30, %v6657_v30  ;;  %v2044_v30 = vmul.f32 %v6324_v1, %v1991_v49 }
 0x379   : > { %8179 = vst [vmem:[#allocation60_spill] sm:$0xff] %v6659_v47  ;;  %v2389_v9 = vmul.f32 %v6285_v11, %v2352_v44  ;;  %v2390_v45 = vmul.f32 %v6288_v10, %v2336_v17  ;;  %2123 = vrot.lane.b32.xlu1 %v6042_v50, %s4821_s15  ;;  %v2043_v47 = vmul.f32 %v6321_v2, %v2007_v8 }
 0x37a   : > { %2125 = vrot.lane.b32.xlu0 %v6078_v37, %s4821_s15  ;;  %3812 = vmatprep.mubr.f32.mxu1 %v3643_v59 }
 0x37b   : > { %v4390_v62 = vpack.c.bf16 %v2389_v9, %v2387_v60  ;;  %v6679_v4 = vpop.permute.xlu1 %2485  ;;  %v4388_v44 = vpack.c.bf16 %v2390_v45, %v2388_v31 }
 0x37c   : > { %v1970_v17 = vpop.permute.xlu0 %1969 }
 0x37d   : > { %v1992_v37 = vsel %vm300_vm0, %v1938_v15, %v1970_v17  ;;  %v2008_v50 = vsel %vm300_vm0, %v1970_v17, %v1938_v15  ;;  %4389 = vmatprep.subr.bf16.mxu1 %v4388_v44  ;;  %2815 = vrot.lane.b32.xlu1 %v6105_v53, %s4825_s10 }
 0x37e   : > { %v2045_v55 = vmul.f32 %v6321_v2, %v2008_v50  ;;  %v2046_v9 = vmul.f32 %v6324_v1, %v1992_v37  ;;  %2817 = vrot.lane.b32.xlu0 %v6127_v56, %s4825_s10  ;;  %4391 = vmatpush1.bf16.msra.mxu1 %v4390_v62 }
 0x37f   : > { %v1940_v45 = vpop.permute.xlu1 %1939 }
 0x380   : > { %v4326_v33 = vpack.c.bf16 %v2045_v55, %v2043_v47  ;;  %v2284_v52 = vpop.permute.xlu0 %2283  ;;  %v4324_v60 = vpack.c.bf16 %v2046_v9, %v2044_v30 }
 0x381   : > { %2847 = vrot.lane.b32.xlu1 %v6116_v51, %s4825_s10 }
 0x382   : > { %4325 = vmatprep.subr.bf16.mxu0 %v4324_v60  ;;  %2849 = vrot.lane.b32.xlu0 %v6154_v63, %s4825_s10 }
 0x383   : > { %4327 = vmatpush1.bf16.msra.mxu0 %v4326_v33  ;;  %v6697_v50 = vpop.permute.xlu1 %2659 }
 0x384   : > { %8180 = vst [vmem:[#allocation61_spill] sm:$0xff] %v6697_v50  ;;  %v6699_v37 = vpop.permute.xlu0 %2455 }
 0x385   : > { %2095 = vrot.lane.b32.xlu1 %v6105_v53, %s4821_s15 }
 0x386   : > { %2097 = vrot.lane.b32.xlu0 %v6127_v56, %s4821_s15 }
 0x387   : > { %v6705_v15 = vpop.permute.xlu1 %2691 }
 0x388   : > { %8181 = vst [vmem:[#allocation62_spill] sm:$0xff] %v6705_v15  ;;  %v2316_v30 = vpop.permute.xlu0 %2315 }
 0x389   : > { %2127 = vrot.lane.b32.xlu1 %v6116_v51, %s4821_s15  ;;  %v2337_v62 = vsel %vm487_vm2, %v2284_v52, %v2316_v30  ;;  %v2353_v44 = vsel %vm487_vm2, %v2316_v30, %v2284_v52 }
 0x38a   : > { %2129 = vrot.lane.b32.xlu0 %v6154_v63, %s4821_s15  ;;  %v2391_v15 = vmul.f32 %v6285_v11, %v2353_v44  ;;  %v2392_v50 = vmul.f32 %v6288_v10, %v2337_v62 }
 0x38b   : > { %v1972_v47 = vpop.permute.xlu1 %1971 }
 0x38c   : > { %v6711_v55 = vpop.permute.xlu0 %2487 }
 0x38d   : > { %2819 = vrot.lane.b32.xlu1 %v6177_v38, %s4825_s10 }
 0x38e   : > { %2821 = vrot.lane.b32.xlu0 %v6191_v42, %s4825_s10 }
 0x38f   : > { %v2286_v31 = vpop.permute.xlu1 %2285 }
 0x390   : > { %v1942_v8 = vpop.permute.xlu0 %1941 }
 0x391   : > { %2851 = vrot.lane.b32.xlu1 %v6184_v41, %s4825_s10 }
 0x392   : > { %2853 = vrot.lane.b32.xlu0 %v6206_v12, %s4825_s10 }
 0x393   : > { %v6721_v59 = vpop.permute.xlu1 %2457 }
 0x394   : > { %v6723_v49 = vpop.permute.xlu0 %2661 }
 0x395   : > { %8182 = vst [vmem:[#allocation63_spill] sm:$0xff] %v6723_v49  ;;  %2099 = vrot.lane.b32.xlu1 %v6177_v38, %s4821_s15  ;;  %v2009_v49 = vsel %vm300_vm0, %v1972_v47, %v1940_v45 }
 0x396   : > { %2101 = vrot.lane.b32.xlu0 %v6191_v42, %s4821_s15 }
 0x397   : > { %v2318_v17 = vpop.permute.xlu1 %2317 }
 0x398   : > { %v6733_v9 = vpop.permute.xlu0 %2693  ;;  %v2338_v33 = vsel %vm487_vm2, %v2286_v31, %v2318_v17  ;;  %v2354_v60 = vsel %vm487_vm2, %v2318_v17, %v2286_v31  ;;  %v2047_v17 = vmul.f32 %v6321_v2, %v2009_v49 }
 0x399   : > { %8183 = vst [vmem:[#allocation64_spill] sm:$0xff] %v6733_v9  ;;  %v2393_v52 = vmul.f32 %v6285_v11, %v2354_v60  ;;  %v2394_v30 = vmul.f32 %v6288_v10, %v2338_v33  ;;  %v1993_v9 = vsel %vm300_vm0, %v1940_v45, %v1972_v47  ;;  %2131 = vrot.lane.b32.xlu1 %v6184_v41, %s4821_s15 }
 0x39a   : > { %2133 = vrot.lane.b32.xlu0 %v6206_v12, %s4821_s15  ;;  %v2048_v38 = vmul.f32 %v6324_v1, %v1993_v9 }
 0x39b   : > { %v4394_v42 = vpack.c.bf16 %v2393_v52, %v2391_v15  ;;  %v6751_v31 = vpop.permute.xlu1 %2489  ;;  %v4392_v62 = vpack.c.bf16 %v2394_v30, %v2392_v50 }
 0x39c   : > { %v1974_v44 = vpop.permute.xlu0 %1973 }
 0x39d   : > { %v1994_v33 = vsel %vm300_vm0, %v1942_v8, %v1974_v44  ;;  %v2010_v60 = vsel %vm300_vm0, %v1974_v44, %v1942_v8  ;;  %4393 = vmatprep.subr.bf16.mxu1 %v4392_v62  ;;  %2823 = vrot.lane.b32.xlu1 %v6221_v27, %s4825_s10 }
 0x39e   : > { %v2049_v45 = vmul.f32 %v6321_v2, %v2010_v60  ;;  %v2050_v15 = vmul.f32 %v6324_v1, %v1994_v33  ;;  %2825 = vrot.lane.b32.xlu0 %v6243_v36, %s4825_s10  ;;  %4395 = vmatpush1.bf16.msra.mxu1 %v4394_v42 }
 0x39f   : > { %v1944_v50 = vpop.permute.xlu1 %1943 }
 0x3a0   : > { %v4330_v47 = vpack.c.bf16 %v2049_v45, %v2047_v17  ;;  %v2288_v49 = vpop.permute.xlu0 %2287  ;;  %v4328_v52 = vpack.c.bf16 %v2050_v15, %v2048_v38 }
 0x3a1   : > { %2855 = vrot.lane.b32.xlu1 %v6232_v32, %s4825_s10 }
 0x3a2   : > { %4329 = vmatprep.subr.bf16.mxu0 %v4328_v52  ;;  %2857 = vrot.lane.b32.xlu0 %v6254_v43, %s4825_s10 }
 0x3a3   : > { %4331 = vmatpush1.bf16.msra.mxu0 %v4330_v47  ;;  %v6769_v8 = vpop.permute.xlu1 %2663 }
 0x3a4   : > { %8184 = vst [vmem:[#allocation65_spill] sm:$0xff] %v6769_v8  ;;  %v6771_v9 = vpop.permute.xlu0 %2459 }
 0x3a5   : > { %2103 = vrot.lane.b32.xlu1 %v6221_v27, %s4821_s15 }
 0x3a6   : > { %2105 = vrot.lane.b32.xlu0 %v6243_v36, %s4821_s15 }
 0x3a7   : > { %v6777_v42 = vpop.permute.xlu1 %2695 }
 0x3a8   : > { %8185 = vst [vmem:[#allocation66_spill] sm:$0xff] %v6777_v42  ;;  %v2320_v38 = vpop.permute.xlu0 %2319 }
 0x3a9   : > { %2135 = vrot.lane.b32.xlu1 %v6232_v32, %s4821_s15  ;;  %v2339_v45 = vsel %vm487_vm2, %v2288_v49, %v2320_v38  ;;  %v2355_v15 = vsel %vm487_vm2, %v2320_v38, %v2288_v49 }
 0x3aa   : > { %2137 = vrot.lane.b32.xlu0 %v6254_v43, %s4821_s15  ;;  %v2396_v36 = vmul.f32 %v6288_v10, %v2339_v45 }
 0x3ab   : > { %v1976_v30 = vpop.permute.xlu1 %1975 }
 0x3ac   : > { %v6783_v62 = vpop.permute.xlu0 %2491 }
 0x3ad   : > { %2827 = vrot.lane.b32.xlu1 %v6269_v7, %s4825_s10 }
 0x3ae   : > { %2829 = vrot.lane.b32.xlu0 %v6335_v54, %s4825_s10 }
 0x3af   : > { %v2290_v44 = vpop.permute.xlu1 %2289 }
 0x3b0   : > { %v1946_v17 = vpop.permute.xlu0 %1945 }
 0x3b1   : > { %2859 = vrot.lane.b32.xlu1 %v6299_v58, %s4825_s10 }
 0x3b2   : > { %2861 = vrot.lane.b32.xlu0 %v6356_v35, %s4825_s10 }
 0x3b3   : > { %v6793_v33 = vpop.permute.xlu1 %2461 }
 0x3b4   : > { %v6795_v60 = vpop.permute.xlu0 %2665 }
 0x3b5   : > { %8186 = vst [vmem:[#allocation67_spill] sm:$0xff] %v6795_v60  ;;  %2107 = vrot.lane.b32.xlu1 %v6269_v7, %s4821_s15  ;;  %v2395_v60 = vmul.f32 %v6285_v11, %v2355_v15 }
 0x3b6   : > { %2109 = vrot.lane.b32.xlu0 %v6335_v54, %s4821_s15  ;;  %v2011_v54 = vsel %vm300_vm0, %v1976_v30, %v1944_v50 }
 0x3b7   : > { %v2322_v47 = vpop.permute.xlu1 %2321 }
 0x3b8   : > { %v6805_v52 = vpop.permute.xlu0 %2697  ;;  %v2340_v42 = vsel %vm487_vm2, %v2290_v44, %v2322_v47  ;;  %v2356_v8 = vsel %vm487_vm2, %v2322_v47, %v2290_v44 }
 0x3b9   : > { %8187 = vst [vmem:[#allocation68_spill] sm:$0xff] %v6805_v52  ;;  %v2397_v49 = vmul.f32 %v6285_v11, %v2356_v8  ;;  %v2398_v38 = vmul.f32 %v6288_v10, %v2340_v42  ;;  %v1995_v52 = vsel %vm300_vm0, %v1944_v50, %v1976_v30  ;;  %2139 = vrot.lane.b32.xlu1 %v6299_v58, %s4821_s15 }
 0x3ba   : > { %2141 = vrot.lane.b32.xlu0 %v6356_v35, %s4821_s15  ;;  %v2051_v8 = vmul.f32 %v6321_v2, %v2011_v54  ;;  %v2052_v35 = vmul.f32 %v6324_v1, %v1995_v52 }
 0x3bb   : > { %v4398_v7 = vpack.c.bf16 %v2397_v49, %v2395_v60  ;;  %v6823_v44 = vpop.permute.xlu1 %2493  ;;  %v4396_v45 = vpack.c.bf16 %v2398_v38, %v2396_v36 }
 0x3bc   : > { %v1978_v15 = vpop.permute.xlu0 %1977 }
 0x3bd   : > { %v1996_v42 = vsel %vm300_vm0, %v1946_v17, %v1978_v15  ;;  %v2012_v47 = vsel %vm300_vm0, %v1978_v15, %v1946_v17  ;;  %4397 = vmatprep.subr.bf16.mxu1 %v4396_v45  ;;  %2831 = vrot.lane.b32.xlu1 %v6371_v22, %s4825_s10  ;;  %v4150_v45 = vld [vmem:[%s8022_s1 + $0x3] ss:$8 sm:$0x3] }
 0x3be   : > { %v2053_v50 = vmul.f32 %v6321_v2, %v2012_v47  ;;  %v2054_v30 = vmul.f32 %v6324_v1, %v1996_v42  ;;  %2833 = vrot.lane.b32.xlu0 %v6419_v16, %s4825_s10  ;;  %4399 = vmatpush1.bf16.msra.mxu1 %v4398_v7  ;;  %v6869_v42 = vrot.slane %v4150_v45, %v5087_v19 }
 0x3bf   : > { %v6837_v36 = vpop.permute.xlu1 %1947 }
 0x3c0   : > { %v4334_v54 = vpack.c.bf16 %v2053_v50, %v2051_v8  ;;  %v2292_v60 = vpop.permute.xlu0 %2291  ;;  %v4332_v49 = vpack.c.bf16 %v2054_v30, %v2052_v35  ;;  %v2500_v8 = vsel %vm581_vm3, %v6271_v3, %v6318_v29  ;;  %v2499_v30 = vsel %vm581_vm3, %v6256_v26, %v6280_v48 }
 0x3c1   : > { %2863 = vrot.lane.b32.xlu1 %v6392_v28, %s4825_s10 }
 0x3c2   : > { %4333 = vmatprep.subr.bf16.mxu0 %v4332_v49  ;;  %2865 = vrot.lane.b32.xlu0 %v6440_v61, %s4825_s10 }
 0x3c3   : > { %4335 = vmatpush1.bf16.msra.mxu0 %v4334_v54  ;;  %v6843_v17 = vpop.permute.xlu1 %2667 }
 0x3c4   : > { %8188 = vst [vmem:[#allocation69_spill] sm:$0xff] %v6843_v17  ;;  %v6845_v52 = vpop.permute.xlu0 %2463  ;;  %v2516_v17 = vsel %vm581_vm3, %v6318_v29, %v6271_v3  ;;  %v6897_v3 = vrot.slane %v4150_v45, %v5097_v21  ;;  %v2515_v29 = vsel %vm581_vm3, %v6280_v48, %v6256_v26 }
 0x3c5   : > { %2111 = vrot.lane.b32.xlu1 %v6371_v22, %s4821_s15 }
 0x3c6   : > { %2113 = vrot.lane.b32.xlu0 %v6419_v16, %s4821_s15  ;;  %v2546_v16 = vmul.f32 %v6869_v42, %v2500_v8  ;;  %v2545_v48 = vmul.f32 %v6897_v3, %v2516_v17  ;;  %v8192_v17 = vld [vmem:[#allocation31_spill] sm:$0xff] }
 0x3c7   : > { %v2294_v7 = vpop.permute.xlu1 %2293 }
 0x3c8   : > { %v2324_v35 = vpop.permute.xlu0 %2323 }
 0x3c9   : > { %2143 = vrot.lane.b32.xlu1 %v6392_v28, %s4821_s15  ;;  %v2341_v47 = vsel %vm487_vm2, %v2292_v60, %v2324_v35  ;;  %v2357_v50 = vsel %vm487_vm2, %v2324_v35, %v2292_v60 }
 0x3ca   : > { %2145 = vrot.lane.b32.xlu0 %v6440_v61, %s4821_s15  ;;  %v2399_v22 = vmul.f32 %v6285_v11, %v2357_v50  ;;  %v2400_v61 = vmul.f32 %v6288_v10, %v2341_v47  ;;  %v2501_v50 = vsel %vm581_vm3, %v6358_v40, %v6379_v25 }
 0x3cb   : > { %v6855_v38 = vpop.permute.xlu1 %2465 }
 0x3cc   : > { %v6860_v15 = vpop.permute.xlu0 %2495 }
 0x3cd   : > { %2835 = vrot.lane.b32.xlu1 %v6455_v24, %s4825_s10 }
 0x3ce   : > { %2837 = vrot.lane.b32.xlu0 %v6503_v5, %s4825_s10 }
 0x3cf   : > { %v2326_v49 = vpop.permute.xlu1 %2325 }
 0x3d0   : > { %v1950_v54 = vpop.permute.xlu0 %1949  ;;  %v2342_v60 = vsel %vm487_vm2, %v2294_v7, %v2326_v49  ;;  %v2358_v35 = vsel %vm487_vm2, %v2326_v49, %v2294_v7  ;;  %v2502_v7 = vsel %vm581_vm3, %v6373_v13, %v6408_v14  ;;  %v8189_v49 = vld [vmem:[#allocation39_spill] sm:$0xff] }
 0x3d1   : > { %v2401_v28 = vmul.f32 %v6285_v11, %v2358_v35  ;;  %v2402_v58 = vmul.f32 %v6288_v10, %v2342_v60  ;;  %2867 = vrot.lane.b32.xlu1 %v6476_v39, %s4825_s10  ;;  %v2544_v11 = vmul.f32 %v6869_v42, %v2499_v30  ;;  %v2518_v10 = vsel %vm581_vm3, %v6408_v14, %v6373_v13  ;;  %v8190_v30 = vld [vmem:[#allocation34_spill] sm:$0xff] }
 0x3d2   : > { %2869 = vrot.lane.b32.xlu0 %v6524_v34, %s4825_s10  ;;  %v2504_v60 = vsel %vm581_vm3, %v8190_v30, %v8189_v49  ;;  %v2517_v14 = vsel %vm581_vm3, %v6379_v25, %v6358_v40  ;;  %v2543_v13 = vmul.f32 %v6897_v3, %v2515_v29  ;;  %v2548_v40 = vmul.f32 %v6869_v42, %v2501_v50 }
 0x3d3   : > { %v4402_v45 = vpack.c.bf16 %v2401_v28, %v2399_v22  ;;  %v6916_v47 = vpop.permute.xlu1 %2497  ;;  %v4400_v26 = vpack.c.bf16 %v2402_v58, %v2400_v61  ;;  %v2550_v22 = vmul.f32 %v6869_v42, %v2502_v7  ;;  %v4404_v58 = vpack.c.bf16 %v2546_v16, %v2544_v11  ;;  %v8191_v61 = vld [vmem:[#allocation35_spill] sm:$0xff] }
 0x3d4   : > { %v6914_v8 = vpop.permute.xlu0 %2669  ;;  %v2549_v28 = vmul.f32 %v6897_v3, %v2518_v10  ;;  %v2503_v35 = vsel %vm581_vm3, %v8192_v17, %v8191_v61  ;;  %v2554_v25 = vmul.f32 %v6869_v42, %v2504_v60  ;;  %v4406_v29 = vpack.c.bf16 %v2545_v48, %v2543_v13 }
 0x3d5   : > { %4401 = vmatprep.subr.bf16.mxu1 %v4400_v26  ;;  %2115 = vrot.lane.b32.xlu1 %v6455_v24, %s4821_s15  ;;  %v2547_v11 = vmul.f32 %v6897_v3, %v2517_v14  ;;  %v2520_v10 = vsel %vm581_vm3, %v8189_v49, %v8190_v30  ;;  %v2552_v26 = vmul.f32 %v6869_v42, %v2503_v35  ;;  %v8193_v14 = vld [vmem:[#allocation47_spill] sm:$0xff] }
 0x3d6   : > { %2117 = vrot.lane.b32.xlu0 %v6503_v5, %s4821_s15  ;;  %4403 = vmatpush1.bf16.msra.mxu1 %v4402_v45  ;;  %v4408_v45 = vpack.c.bf16 %v2550_v22, %v2548_v40  ;;  %v2519_v60 = vsel %vm581_vm3, %v8191_v61, %v8192_v17  ;;  %v2553_v48 = vmul.f32 %v6897_v3, %v2520_v10  ;;  %v8194_v49 = vld [vmem:[#allocation43_spill] sm:$0xff] }
 0x3d7   : > { %4405 = vmatprep.subr.bf16.mxu1 %v4404_v58  ;;  %v6946_v16 = vpop.permute.xlu1 %2699  ;;  %v4410_v50 = vpack.c.bf16 %v2549_v28, %v2547_v11  ;;  %v2505_v30 = vsel %vm581_vm3, %v8194_v49, %v8193_v14  ;;  %v8195_v58 = vld [vmem:[#allocation49_spill] sm:$0xff]  ;;  %v4412_v61 = vpack.c.bf16 %v2554_v25, %v2552_v26 }
 0x3d8   : > { %v6944_v7 = vpop.permute.xlu0 %2701  ;;  %v2506_v22 = vsel %vm581_vm3, %v8195_v58, %v6589_v20 }
 0x3d9   : > { %2147 = vrot.lane.b32.xlu1 %v6476_v39, %s4821_s15 }
 0x3da   : > { %2149 = vrot.lane.b32.xlu0 %v6524_v34, %s4821_s15  ;;  %4407 = vmatpush1.bf16.msra.mxu1 %v4406_v29 }
 0x3db   : > { %4409 = vmatprep.subr.bf16.mxu1 %v4408_v45  ;;  %v1980_v28 = vpop.permute.xlu1 %1979  ;;  %v2522_v45 = vsel %vm581_vm3, %v6589_v20, %v8195_v58  ;;  %v2521_v20 = vsel %vm581_vm3, %v8193_v14, %v8194_v49  ;;  %v2524_v14 = vsel %vm581_vm3, %v6679_v4, %v6634_v46 }
 0x3dc   : > { %v1982_v13 = vpop.permute.xlu0 %1981  ;;  %v1997_v40 = vsel %vm300_vm0, %v6837_v36, %v1980_v28  ;;  %v2013_v29 = vsel %vm300_vm0, %v1980_v28, %v6837_v36  ;;  %v2558_v36 = vmul.f32 %v6869_v42, %v2506_v22  ;;  %v2557_v58 = vmul.f32 %v6897_v3, %v2522_v45 }
 0x3dd   : > { %v1998_v17 = vsel %vm300_vm0, %v1950_v54, %v1982_v13  ;;  %v2014_v35 = vsel %vm300_vm0, %v1982_v13, %v1950_v54  ;;  %v2055_v25 = vmul.f32 %v6321_v2, %v2013_v29  ;;  %v2056_v26 = vmul.f32 %v6324_v1, %v1997_v40  ;;  %v8196_v13 = vld [vmem:[#allocation46_spill] sm:$0xff] }
 0x3de   : > { %v2057_v11 = vmul.f32 %v6321_v2, %v2014_v35  ;;  %v2058_v10 = vmul.f32 %v6324_v1, %v1998_v17  ;;  %2841 = vrot.lane.b32.xlu0 %v6554_v23, %s4825_s10  ;;  %v2551_v54 = vmul.f32 %v6897_v3, %v2519_v60  ;;  %2839 = vrot.lane.b32.xlu1 %v8196_v13, %s4825_s10 }
 0x3df   : > { %4411 = vmatpush1.bf16.msra.mxu1 %v4410_v50  ;;  %v2508_v2 = vsel %vm581_vm3, %v6634_v46, %v6679_v4  ;;  %v7001_v60 = vpop.permute.xlu1 %2811  ;;  %v2556_v50 = vmul.f32 %v6869_v42, %v2505_v30  ;;  %v2507_v22 = vsel %vm581_vm3, %v6610_v0, %v6624_v6  ;;  %v8200_v30 = vld [vmem:[#allocation51_spill] sm:$0xff] }
 0x3e0   : > { %v4338_v1 = vpack.c.bf16 %v2057_v11, %v2055_v25  ;;  %v6999_v28 = vpop.permute.xlu0 %2813  ;;  %4413 = vmatprep.subr.bf16.mxu1 %v4412_v61  ;;  %v4336_v17 = vpack.c.bf16 %v2058_v10, %v2056_v26  ;;  %v4414_v35 = vpack.c.bf16 %v2553_v48, %v2551_v54  ;;  %v8197_v61 = vld [vmem:[#allocation58_spill] sm:$0xff]  ;;  %v8198_v48 = vld [vmem:[#allocation57_spill] sm:$0xff]  ;;  %v2562_v49 = vmul.f32 %v6869_v42, %v2508_v2 }
 0x3e1   : > { %v7017_v40 = vrot.slane %v8198_v48, %v8197_v61  ;;  %v4416_v29 = vpack.c.bf16 %v2558_v36, %v2556_v50  ;;  %v2555_v11 = vmul.f32 %v6897_v3, %v2521_v20  ;;  %v2510_v10 = vsel %vm581_vm3, %v6721_v59, %v6751_v31 }
 0x3e2   : > { %2873 = vrot.lane.b32.xlu0 %v6592_v57, %s4825_s10  ;;  %4337 = vmatprep.subr.bf16.mxu0 %v4336_v17  ;;  %v2526_v25 = vsel %vm581_vm3, %v6751_v31, %v6721_v59  ;;  %v2523_v54 = vsel %vm581_vm3, %v6624_v6, %v6610_v0  ;;  %v2560_v45 = vmul.f32 %v6869_v42, %v2507_v22  ;;  %v4148_v17 = vld [vmem:[%s8022_s1 + $0x1] ss:$8 sm:$0x3] }
 0x3e3   : > { %8199 = vst [vmem:[#allocation39_spill] sm:$0xff] %v7017_v40  ;;  %2871 = vrot.lane.b32.xlu1 %v8200_v30, %s4825_s10  ;;  %4339 = vmatpush1.bf16.msra.mxu0 %v4338_v1  ;;  %v7037_v4 = vpop.permute.xlu1 %2843  ;;  %v3642_v26 = vcombine.high %v7017_v40, %v7017_v40  ;;  %v4418_v36 = vpack.c.bf16 %v2557_v58, %v2555_v11  ;;  %v8222_v40 = vld [vmem:[#allocation19_spill] sm:$0xff] }
 0x3e4   : > { %4415 = vmatpush1.bf16.msra.mxu1 %v4414_v35  ;;  %v7035_v46 = vpop.permute.xlu0 %2845  ;;  %v2561_v2 = vmul.f32 %v6897_v3, %v2524_v14  ;;  %v2509_v59 = vsel %vm581_vm3, %v6699_v37, %v6711_v55  ;;  %v2525_v31 = vsel %vm581_vm3, %v6711_v55, %v6699_v37  ;;  %v2565_v0 = vmul.f32 %v6897_v3, %v2526_v25 }
 0x3e5   : > { %4417 = vmatprep.subr.bf16.mxu1 %v4416_v29  ;;  %v2566_v6 = vmul.f32 %v6869_v42, %v2510_v10  ;;  %v4420_v1 = vpack.c.bf16 %v2562_v49, %v2560_v45  ;;  %3741 = vmatprep.mubr.f32.mxu0 %v3642_v26  ;;  %v2559_v35 = vmul.f32 %v6897_v3, %v2523_v54 }
 0x3e6   : > { %2121 = vrot.lane.b32.xlu0 %v6554_v23, %s4821_s15  ;;  %v2512_v37 = vsel %vm581_vm3, %v6793_v33, %v6823_v44  ;;  %v2563_v50 = vmul.f32 %v6897_v3, %v2525_v31  ;;  %v2564_v58 = vmul.f32 %v6869_v42, %v2509_v59  ;;  %v2511_v22 = vsel %vm581_vm3, %v6771_v9, %v6783_v62 }
 0x3e7   : > { %2119 = vrot.lane.b32.xlu1 %v8196_v13, %s4821_s15  ;;  %v2092_v20 = vpop.permute.xlu1 %2091  ;;  %v2528_v48 = vsel %vm581_vm3, %v6823_v44, %v6793_v33  ;;  %v4422_v14 = vpack.c.bf16 %v2561_v2, %v2559_v35  ;;  %v7082_v49 = vrot.slane %v4148_v17, %v5097_v21  ;;  %v7085_v29 = vrot.slane %v4148_v17, %v5087_v19  ;;  %v8201_v35 = vld [vmem:[#allocation10_spill] sm:$0xff] }
 0x3e8   : > { %4419 = vmatpush1.bf16.msra.mxu1 %v4418_v36  ;;  %v2094_v55 = vpop.permute.xlu0 %2093  ;;  %v4426_v11 = vpack.c.bf16 %v2565_v0, %v2563_v50  ;;  %v2527_v10 = vsel %vm581_vm3, %v6783_v62, %v6771_v9  ;;  %v2570_v25 = vmul.f32 %v6869_v42, %v2512_v37  ;;  %v4424_v33 = vpack.c.bf16 %v2566_v6, %v2564_v58 }
 0x3e9   : > { %4421 = vmatprep.subr.bf16.mxu1 %v4420_v1  ;;  %v2568_v44 = vmul.f32 %v6869_v42, %v2511_v22  ;;  %v2569_v26 = vmul.f32 %v6897_v3, %v2528_v48  ;;  %v2513_v54 = vsel %vm581_vm3, %v6845_v52, %v6860_v15  ;;  %v2514_v9 = vsel %vm581_vm3, %v6855_v38, %v6916_v47 }
 0x3ea   : > { %2153 = vrot.lane.b32.xlu0 %v6592_v57, %s4821_s15  ;;  %v2530_v37 = vsel %vm581_vm3, %v6916_v47, %v6855_v38  ;;  %v2567_v58 = vmul.f32 %v6897_v3, %v2527_v10  ;;  %v2529_v38 = vsel %vm581_vm3, %v6860_v15, %v6845_v52  ;;  %v2572_v47 = vmul.f32 %v6869_v42, %v2513_v54 }
 0x3eb   : > { %2151 = vrot.lane.b32.xlu1 %v8200_v30, %s4821_s15  ;;  %v2124_v45 = vpop.permute.xlu1 %2123  ;;  %v4428_v50 = vpack.c.bf16 %v2570_v25, %v2568_v44  ;;  %v7138_v25 = vld [vmem:[%s8025_s4 + $0x8] sm:$0xff]  ;;  %v2571_v15 = vmul.f32 %v6897_v3, %v2529_v38  ;;  %v4444_v38 = vpack.c.bf16 %v6206_v12, %v6184_v41  ;;  %s242_s15 = sand.u32 1, %s4810_s22  }
 0x3ec   : > { %4423 = vmatpush1.bf16.msra.mxu1 %v4422_v14  ;;  %v2126_v62 = vpop.permute.xlu0 %2125  ;;  %v2155_v59 = vsel %vm393_vm1, %v2092_v20, %v2124_v45  ;;  %v2171_v31 = vsel %vm393_vm1, %v2124_v45, %v2092_v20  ;;  %v8202_v20 = vld [vmem:[#allocation8_spill] sm:$0xff]  ;;  %8203 = vst [vmem:[#allocation34_spill] sm:$0xff] %v7138_v25  ;;  %v4430_v10 = vpack.c.bf16 %v2569_v26, %v2567_v58  ;;  %v8204_v44 = vld [vmem:[#allocation11_spill] sm:$0xff]  ;;  %s4122_s9 = sshll.u32 %s242_s15, 2  ;;  %s4045_s14 = scalar_lea.sflag [#allocation5], %s242_s15 }
 0x3ed   : > { %v2156_v36 = vsel %vm393_vm1, %v2094_v55, %v2126_v62  ;;  %v2172_v2 = vsel %vm393_vm1, %v2126_v62, %v2094_v55  ;;  %4425 = vmatprep.subr.bf16.mxu1 %v4424_v33  ;;  %v2199_v1 = vmul.f32 %v7082_v49, %v2171_v31  ;;  %v2200_v17 = vmul.f32 %v7085_v29, %v2155_v59  ;;  %v8207_v31 = vld [vmem:[#allocation59_spill] sm:$0xff]  ;;  %s244_s12 = scalar_lea.vmem [#allocation4], %s4122_s9 }
 0x3ee   : > { %v2201_v0 = vmul.f32 %v7082_v49, %v2172_v2  ;;  %v2202_v6 = vmul.f32 %v7085_v29, %v2156_v36  ;;  %2985 = vrot.lane.b32.xlu0 %v8201_v35, %s4826_s13  ;;  %v2574_v55 = vmul.f32 %v6869_v42, %v2514_v9  ;;  %v8205_v9 = vld [vmem:[#allocation9_spill] sm:$0xff]  ;;  %v7150_v54 = vrot.slane %v7138_v25, %v8197_v61  ;;  %s4059_s19 = sshll.u32 %s244_s12, 4  ;;  %s7981_s19 = int_to_ptr.vmem [resolvable:$true] %s4059_s19 }
 0x3ef   : > { %2983 = vrot.lane.b32.xlu1 %v8202_v20, %s4826_s13  ;;  %v7128_v14 = vpop.permute.xlu1 %2815  ;;  %v4438_v59 = vpack.c.bf16 %v8201_v35, %v8202_v20  ;;  %v8224_v25 = vld [vmem:[#allocation29_spill] sm:$0xff] }
 0x3f0   : > { %v4342_v22 = vpack.c.bf16 %v2201_v0, %v2199_v1  ;;  %4427 = vmatpush1.bf16.msra.mxu1 %v4426_v11  ;;  %v7126_v48 = vpop.permute.xlu0 %2817  ;;  %v4340_v33 = vpack.c.bf16 %v2202_v6, %v2200_v17  ;;  %v2573_v11 = vmul.f32 %v6897_v3, %v2530_v37  ;;  %v4432_v52 = vpack.c.bf16 %v2574_v55, %v2572_v47 }
 0x3f1   : > { %4429 = vmatprep.subr.bf16.mxu1 %v4428_v50  ;;  %v4436_v3 = vpack.c.bf16 %v8204_v44, %v8205_v9  ;;  %v3659_v36 = vcombine.high %v7150_v54, %v7150_v54  ;;  %v4440_v0 = vpack.c.bf16 %v6154_v63, %v6116_v51 }
 0x3f2   : > { %3017 = vrot.lane.b32.xlu0 %v8204_v44, %s4826_s13  ;;  %4341 = vmatprep.subr.bf16.mxu0 %v4340_v33  ;;  %v4434_v62 = vpack.c.bf16 %v2573_v11, %v2571_v15 }
 0x3f3   : > { %3015 = vrot.lane.b32.xlu1 %v8205_v9, %s4826_s13  ;;  %4343 = vmatpush1.bf16.msra.mxu0 %v4342_v22  ;;  %v7152_v26 = vpop.permute.xlu1 %2847 }
 0x3f4   : > { %4431 = vmatpush1.bf16.msra.mxu1 %v4430_v10  ;;  %v7146_v42 = vpop.permute.xlu0 %2849 }
 0x3f5   : > { %4433 = vmatprep.subr.bf16.mxu1 %v4432_v52  ;;  %v8209_v52 = vld [vmem:[#allocation13_spill] sm:$0xff] }
 0x3f6   : > { %3157 = vrot.lane.b32.xlu0 %v8201_v35, %s8206_s11  ;;  %v4442_v35 = vpack.c.bf16 %v6127_v56, %v6105_v53 }
 0x3f7   : > { %3155 = vrot.lane.b32.xlu1 %v8202_v20, %s8206_s11  ;;  %v2096_v2 = vpop.permute.xlu1 %2095 }
 0x3f8   : > { %4435 = vmatpush1.bf16.msra.mxu1 %v4434_v62  ;;  %v2098_v45 = vpop.permute.xlu0 %2097  ;;  %v4448_v62 = vpack.c.bf16 %v6254_v43, %v6232_v32 }
 0x3f9   : > { %4437 = vmatprep.subr.bf16.mxu1 %v4436_v3 }
 0x3fa   : > { %3189 = vrot.lane.b32.xlu0 %v8204_v44, %s8206_s11 }
 0x3fb   : > { %3187 = vrot.lane.b32.xlu1 %v8205_v9, %s8206_s11  ;;  %3813 = vmatmul.mubr.f32.vlgmr.msra.gmra.mrb[32].mxu1 %v8207_v31  ;;  %v2128_v37 = vpop.permute.xlu1 %2127  ;;  %v8208_v9 = vld [vmem:[#allocation12_spill] sm:$0xff]  ;;  %v8212_v31 = vld [vmem:[#allocation22_spill] sm:$0xff] }
 0x3fc   : > { %4439 = vmatpush1.bf16.msra.mxu1 %v4438_v59  ;;  %v2130_v6 = vpop.permute.xlu0 %2129  ;;  %3883 = vmatprep.mubr.f32.mxu1 %v3659_v36  ;;  %v2157_v50 = vsel %vm393_vm1, %v2096_v2, %v2128_v37  ;;  %v2173_v58 = vsel %vm393_vm1, %v2128_v37, %v2096_v2  ;;  %v4446_v15 = vpack.c.bf16 %v8209_v52, %v8208_v9  ;;  %v8210_v36 = vld [vmem:[#allocation14_spill] sm:$0xff]  ;;  %v8214_v37 = vld [vmem:[#allocation20_spill] sm:$0xff] }
 0x3fd   : > { %v2158_v1 = vsel %vm393_vm1, %v2098_v45, %v2130_v6  ;;  %v2174_v17 = vsel %vm393_vm1, %v2130_v6, %v2098_v45  ;;  %4441 = vmatprep.subr.bf16.mxu1 %v4440_v0  ;;  %v2203_v22 = vmul.f32 %v7082_v49, %v2173_v58  ;;  %v2204_v33 = vmul.f32 %v7085_v29, %v2157_v50  ;;  %v8211_v59 = vld [vmem:[#allocation18_spill] sm:$0xff] }
 0x3fe   : > { %v2205_v55 = vmul.f32 %v7082_v49, %v2174_v17  ;;  %v2206_v20 = vmul.f32 %v7085_v29, %v2158_v1  ;;  %2989 = vrot.lane.b32.xlu0 %v6127_v56, %s4826_s13  ;;  %v4450_v2 = vpack.c.bf16 %v8210_v36, %v6221_v27  ;;  %v4452_v0 = vpack.c.bf16 %v8212_v31, %v8211_v59  ;;  %v8213_v17 = vld [vmem:[#allocation16_spill] sm:$0xff] }
 0x3ff   : > { %2987 = vrot.lane.b32.xlu1 %v6105_v53, %s4826_s13  ;;  %v7193_v11 = vpop.permute.xlu1 %2819 }
 0x400   : > { %4443 = vmatpush1.bf16.msra.mxu1 %v4442_v35  ;;  %v7191_v47 = vpop.permute.xlu0 %2821  ;;  %v4346_v10 = vpack.c.bf16 %v2205_v55, %v2203_v22  ;;  %v4344_v44 = vpack.c.bf16 %v2206_v20, %v2204_v33  ;;  %v4454_v35 = vpack.c.bf16 %v8214_v37, %v8213_v17  ;;  %v8216_v55 = vld [vmem:[#allocation30_spill] sm:$0xff]  ;;  %v8218_v33 = vld [vmem:[#allocation28_spill] sm:$0xff] }
 0x401   : > { %4445 = vmatprep.subr.bf16.mxu1 %v4444_v38 }
 0x402   : > { %3021 = vrot.lane.b32.xlu0 %v6154_v63, %s4826_s13  ;;  %4345 = vmatprep.subr.bf16.mxu0 %v4344_v44 }
 0x403   : > { %3019 = vrot.lane.b32.xlu1 %v6116_v51, %s4826_s13  ;;  %4347 = vmatpush1.bf16.msra.mxu0 %v4346_v10  ;;  %v7205_v45 = vpop.permute.xlu1 %2851 }
 0x404   : > { %4447 = vmatpush1.bf16.msra.mxu1 %v4446_v15  ;;  %v7203_v3 = vpop.permute.xlu0 %2853 }
 0x405   : > { %4449 = vmatprep.subr.bf16.mxu1 %v4448_v62 }
 0x406   : > { %3161 = vrot.lane.b32.xlu0 %v6127_v56, %s8206_s11  ;;  %v8215_v56 = vld [vmem:[#allocation26_spill] sm:$0xff] }
 0x407   : > { %3159 = vrot.lane.b32.xlu1 %v6105_v53, %s8206_s11  ;;  %v2100_v1 = vpop.permute.xlu1 %2099  ;;  %v4456_v20 = vpack.c.bf16 %v8216_v55, %v8215_v56 }
 0x408   : > { %4451 = vmatpush1.bf16.msra.mxu1 %v4450_v2  ;;  %v2102_v6 = vpop.permute.xlu0 %2101 }
 0x409   : > { %4453 = vmatprep.subr.bf16.mxu1 %v4452_v0 }
 0x40a   : > { %3193 = vrot.lane.b32.xlu0 %v6154_v63, %s8206_s11  ;;  %v8217_v63 = vld [vmem:[#allocation24_spill] sm:$0xff] }
 0x40b   : > { %3191 = vrot.lane.b32.xlu1 %v6116_v51, %s8206_s11  ;;  %v2132_v22 = vpop.permute.xlu1 %2131  ;;  %v4458_v38 = vpack.c.bf16 %v8218_v33, %v8217_v63  ;;  %v4151_v51 = vld [vmem:[%s8022_s1 + $0x5] ss:$8 sm:$0x3] }
 0x40c   : > { %4455 = vmatpush1.bf16.msra.mxu1 %v4454_v35  ;;  %v2134_v53 = vpop.permute.xlu0 %2133  ;;  %v2159_v15 = vsel %vm393_vm1, %v2100_v1, %v2132_v22  ;;  %v2175_v62 = vsel %vm393_vm1, %v2132_v22, %v2100_v1  ;;  %v8219_v35 = vld [vmem:[#allocation17_spill] sm:$0xff] }
 0x40d   : > { %v2160_v50 = vsel %vm393_vm1, %v2102_v6, %v2134_v53  ;;  %v2176_v58 = vsel %vm393_vm1, %v2134_v53, %v2102_v6  ;;  %4457 = vmatprep.subr.bf16.mxu1 %v4456_v20  ;;  %v2207_v2 = vmul.f32 %v7082_v49, %v2175_v62  ;;  %v2208_v0 = vmul.f32 %v7085_v29, %v2159_v15  ;;  %v8220_v20 = vld [vmem:[#allocation21_spill] sm:$0xff]  ;;  %v8221_v62 = vld [vmem:[#allocation15_spill] sm:$0xff] }
 0x40e   : > { %v2209_v10 = vmul.f32 %v7082_v49, %v2176_v58  ;;  %v2210_v44 = vmul.f32 %v7085_v29, %v2160_v50  ;;  %2993 = vrot.lane.b32.xlu0 %v8209_v52, %s4826_s13  ;;  %v4460_v6 = vpack.c.bf16 %v6524_v34, %v6476_v39  ;;  %v2720_v53 = vsel %vm691_vm4, %v8220_v20, %v8219_v35  ;;  %v8227_v34 = vld [vmem:[#allocation36_spill] sm:$0xff] }
 0x40f   : > { %2991 = vrot.lane.b32.xlu1 %v8208_v9, %s4826_s13  ;;  %v7253_v50 = vrot.slane %v4151_v51, %v5087_v19  ;;  %v7255_v22 = vpop.permute.xlu1 %2823  ;;  %v2719_v61 = vsel %vm691_vm4, %v8222_v40, %v8221_v62 }
 0x410   : > { %4459 = vmatpush1.bf16.msra.mxu1 %v4458_v38  ;;  %v7250_v1 = vpop.permute.xlu0 %2825  ;;  %v4350_v58 = vpack.c.bf16 %v2209_v10, %v2207_v2  ;;  %v4348_v15 = vpack.c.bf16 %v2210_v44, %v2208_v0  ;;  %v4462_v38 = vpack.c.bf16 %v6503_v5, %v6455_v24  ;;  %v2704_v10 = vsel %vm691_vm4, %v8219_v35, %v8220_v20  ;;  %v8228_v24 = vld [vmem:[#allocation41_spill] sm:$0xff]  ;;  %v8229_v5 = vld [vmem:[#allocation32_spill] sm:$0xff] }
 0x411   : > { %4461 = vmatprep.subr.bf16.mxu1 %v4460_v6  ;;  %v2750_v2 = vmul.f32 %v7253_v50, %v2720_v53  ;;  %v4464_v44 = vpack.c.bf16 %v6592_v57, %v8200_v30  ;;  %v7275_v0 = vrot.slane %v4151_v51, %v5097_v21  ;;  %v8223_v6 = vld [vmem:[#allocation25_spill] sm:$0xff]  ;;  %v2703_v20 = vsel %vm691_vm4, %v8221_v62, %v8222_v40  ;;  %v8226_v30 = vld [vmem:[#allocation27_spill] sm:$0xff] }
 0x412   : > { %3025 = vrot.lane.b32.xlu0 %v6206_v12, %s4826_s13  ;;  %4349 = vmatprep.subr.bf16.mxu0 %v4348_v15  ;;  %v2722_v39 = vsel %vm691_vm4, %v8224_v25, %v8223_v6  ;;  %v2748_v53 = vmul.f32 %v7253_v50, %v2719_v61  ;;  %v2706_v51 = vsel %vm691_vm4, %v8223_v6, %v8224_v25 }
 0x413   : > { %3023 = vrot.lane.b32.xlu1 %v6184_v41, %s4826_s13  ;;  %4351 = vmatpush1.bf16.msra.mxu0 %v4350_v58  ;;  %v7292_v15 = vpop.permute.xlu1 %2855  ;;  %v2749_v58 = vmul.f32 %v7275_v0, %v2704_v10  ;;  %v2724_v61 = vsel %vm691_vm4, %v8228_v24, %v8227_v34  ;;  %v4466_v40 = vpack.c.bf16 %v6554_v23, %v8196_v13 }
 0x414   : > { %4463 = vmatpush1.bf16.msra.mxu1 %v4462_v38  ;;  %v7281_v35 = vpop.permute.xlu0 %2857  ;;  %v8225_v38 = vld [vmem:[#allocation23_spill] sm:$0xff]  ;;  %v2754_v62 = vmul.f32 %v7253_v50, %v2722_v39  ;;  %v4468_v10 = vpack.c.bf16 %v2750_v2, %v2748_v53  ;;  %v2753_v6 = vmul.f32 %v7275_v0, %v2706_v51  ;;  %v2708_v39 = vsel %vm691_vm4, %v8227_v34, %v8228_v24 }
 0x415   : > { %4465 = vmatprep.subr.bf16.mxu1 %v4464_v44  ;;  %v2721_v57 = vsel %vm691_vm4, %v8226_v30, %v8225_v38  ;;  %v2705_v25 = vsel %vm691_vm4, %v8225_v38, %v8226_v30  ;;  %v2747_v44 = vmul.f32 %v7275_v0, %v2703_v20  ;;  %v2758_v30 = vmul.f32 %v7253_v50, %v2724_v61  ;;  %v8232_v38 = vld [vmem:[#allocation52_spill] sm:$0xff] }
 0x416   : > { %3165 = vrot.lane.b32.xlu0 %v8209_v52, %s8206_s11  ;;  %v8230_v52 = vld [vmem:[#allocation38_spill] sm:$0xff]  ;;  %v2752_v56 = vmul.f32 %v7253_v50, %v2721_v57  ;;  %v2751_v20 = vmul.f32 %v7275_v0, %v2705_v25  ;;  %v2757_v34 = vmul.f32 %v7275_v0, %v2708_v39 }
 0x417   : > { %3163 = vrot.lane.b32.xlu1 %v8208_v9, %s8206_s11  ;;  %v2723_v13 = vsel %vm691_vm4, %v8230_v52, %v8229_v5  ;;  %v2104_v9 = vpop.permute.xlu1 %2103  ;;  %v4470_v2 = vpack.c.bf16 %v2749_v58, %v2747_v44  ;;  %v2707_v24 = vsel %vm691_vm4, %v8229_v5, %v8230_v52  ;;  %v8231_v58 = vld [vmem:[#allocation50_spill] sm:$0xff] }
 0x418   : > { %4467 = vmatpush1.bf16.msra.mxu1 %v4466_v40  ;;  %v2106_v23 = vpop.permute.xlu0 %2105  ;;  %v2756_v53 = vmul.f32 %v7253_v50, %v2723_v13  ;;  %v4472_v57 = vpack.c.bf16 %v2754_v62, %v2752_v56  ;;  %v4474_v51 = vpack.c.bf16 %v2753_v6, %v2751_v20  ;;  %v2726_v61 = vsel %vm691_vm4, %v8232_v38, %v8231_v58  ;;  %v8233_v13 = vld [vmem:[#allocation44_spill] sm:$0xff]  ;;  %v8234_v40 = vld [vmem:[#allocation45_spill] sm:$0xff] }
 0x419   : > { %4469 = vmatprep.subr.bf16.mxu1 %v4468_v10  ;;  %v2762_v39 = vmul.f32 %v7253_v50, %v2726_v61  ;;  %v2755_v20 = vmul.f32 %v7275_v0, %v2707_v24 }
 0x41a   : > { %3197 = vrot.lane.b32.xlu0 %v6206_v12, %s8206_s11  ;;  %v4476_v62 = vpack.c.bf16 %v2758_v30, %v2756_v53  ;;  %v8236_v53 = vld [vmem:[#allocation60_spill] sm:$0xff] }
 0x41b   : > { %3195 = vrot.lane.b32.xlu1 %v6184_v41, %s8206_s11  ;;  %v2725_v41 = vsel %vm691_vm4, %v8234_v40, %v8233_v13  ;;  %v2136_v25 = vpop.permute.xlu1 %2135 }
 0x41c   : > { %4471 = vmatpush1.bf16.msra.mxu1 %v4470_v2  ;;  %v2138_v12 = vpop.permute.xlu0 %2137  ;;  %v2161_v6 = vsel %vm393_vm1, %v2104_v9, %v2136_v25  ;;  %v2177_v52 = vsel %vm393_vm1, %v2136_v25, %v2104_v9  ;;  %v8235_v9 = vld [vmem:[#allocation56_spill] sm:$0xff] }
 0x41d   : > { %v2162_v56 = vsel %vm393_vm1, %v2106_v23, %v2138_v12  ;;  %v2178_v5 = vsel %vm393_vm1, %v2138_v12, %v2106_v23  ;;  %4473 = vmatprep.subr.bf16.mxu1 %v4472_v57  ;;  %v2710_v23 = vsel %vm691_vm4, %v8231_v58, %v8232_v38  ;;  %v2211_v30 = vmul.f32 %v7082_v49, %v2177_v52  ;;  %v8238_v52 = vld [vmem:[#allocation55_spill] sm:$0xff] }
 0x41e   : > { %v2213_v10 = vmul.f32 %v7082_v49, %v2178_v5  ;;  %v2214_v44 = vmul.f32 %v7085_v29, %v2162_v56  ;;  %2997 = vrot.lane.b32.xlu0 %v8210_v36, %s4826_s13  ;;  %v2212_v2 = vmul.f32 %v7085_v29, %v2161_v6  ;;  %v2728_v57 = vsel %vm691_vm4, %v8236_v53, %v8235_v9  ;;  %v8237_v6 = vld [vmem:[#allocation54_spill] sm:$0xff] }
 0x41f   : > { %2995 = vrot.lane.b32.xlu1 %v6221_v27, %s4826_s13  ;;  %v2709_v58 = vsel %vm691_vm4, %v8233_v13, %v8234_v40  ;;  %v2760_v38 = vmul.f32 %v7253_v50, %v2725_v41  ;;  %v7378_v56 = vpop.permute.xlu1 %2827  ;;  %v4478_v5 = vpack.c.bf16 %v2757_v34, %v2755_v20  ;;  %v2761_v25 = vmul.f32 %v7275_v0, %v2710_v23 }
 0x420   : > { %4475 = vmatpush1.bf16.msra.mxu1 %v4474_v51  ;;  %v7371_v12 = vpop.permute.xlu0 %2829  ;;  %v4354_v61 = vpack.c.bf16 %v2213_v10, %v2211_v30  ;;  %v4352_v24 = vpack.c.bf16 %v2214_v44, %v2212_v2  ;;  %v2727_v51 = vsel %vm691_vm4, %v8238_v52, %v8237_v6  ;;  %v2712_v13 = vsel %vm691_vm4, %v8235_v9, %v8236_v53  ;;  %v8239_v10 = vld [vmem:[#allocation63_spill] sm:$0xff]  ;;  %v8240_v44 = vld [vmem:[#allocation64_spill] sm:$0xff] }
 0x421   : > { %4477 = vmatprep.subr.bf16.mxu1 %v4476_v62  ;;  %v2711_v34 = vsel %vm691_vm4, %v8237_v6, %v8238_v52  ;;  %v2766_v40 = vmul.f32 %v7253_v50, %v2728_v57  ;;  %v4480_v41 = vpack.c.bf16 %v2762_v39, %v2760_v38  ;;  %v2759_v62 = vmul.f32 %v7275_v0, %v2709_v58  ;;  %v8241_v9 = vld [vmem:[#allocation67_spill] sm:$0xff]  ;;  %v8242_v53 = vld [vmem:[#allocation68_spill] sm:$0xff] }
 0x422   : > { %3029 = vrot.lane.b32.xlu0 %v6254_v43, %s4826_s13  ;;  %4353 = vmatprep.subr.bf16.mxu0 %v4352_v24  ;;  %v2730_v23 = vsel %vm691_vm4, %v8240_v44, %v8239_v10  ;;  %v2764_v2 = vmul.f32 %v7253_v50, %v2727_v51  ;;  %v2765_v20 = vmul.f32 %v7275_v0, %v2712_v13  ;;  %v8243_v24 = vld [vmem:[#allocation61_spill] sm:$0xff] }
 0x423   : > { %3027 = vrot.lane.b32.xlu1 %v6232_v32, %s4826_s13  ;;  %4355 = vmatpush1.bf16.msra.mxu0 %v4354_v61  ;;  %v2714_v39 = vsel %vm691_vm4, %v8239_v10, %v8240_v44  ;;  %v2732_v57 = vsel %vm691_vm4, %v8242_v53, %v8241_v9  ;;  %v7415_v58 = vpop.permute.xlu1 %2859  ;;  %v4482_v38 = vpack.c.bf16 %v2761_v25, %v2759_v62  ;;  %v8245_v13 = vld [vmem:[#allocation65_spill] sm:$0xff]  ;;  %v4152_v10 = vld [vmem:[%s8022_s1 + $0x6] ss:$8 sm:$0x3] }
 0x424   : > { %4479 = vmatpush1.bf16.msra.mxu1 %v4478_v5  ;;  %v7403_v30 = vpop.permute.xlu0 %2861  ;;  %v2763_v61 = vmul.f32 %v7275_v0, %v2711_v34  ;;  %v8244_v5 = vld [vmem:[#allocation62_spill] sm:$0xff]  ;;  %v2770_v51 = vmul.f32 %v7253_v50, %v2730_v23  ;;  %v4484_v34 = vpack.c.bf16 %v2766_v40, %v2764_v2  ;;  %v2769_v62 = vmul.f32 %v7275_v0, %v2714_v39 }
 0x425   : > { %4481 = vmatprep.subr.bf16.mxu1 %v4480_v41  ;;  %v2729_v6 = vsel %vm691_vm4, %v8244_v5, %v8243_v24  ;;  %v2713_v52 = vsel %vm691_vm4, %v8243_v24, %v8244_v5  ;;  %v8246_v41 = vld [vmem:[#allocation66_spill] sm:$0xff] }
 0x426   : > { %3169 = vrot.lane.b32.xlu0 %v8210_v36, %s8206_s11  ;;  %v2731_v25 = vsel %vm691_vm4, %v8246_v41, %v8245_v13  ;;  %v2774_v36 = vmul.f32 %v7253_v50, %v2732_v57  ;;  %v4486_v23 = vpack.c.bf16 %v2765_v20, %v2763_v61  ;;  %v2768_v24 = vmul.f32 %v7253_v50, %v2729_v6  ;;  %v8247_v57 = vld [vmem:[#allocation69_spill] sm:$0xff] }
 0x427   : > { %3167 = vrot.lane.b32.xlu1 %v6221_v27, %s8206_s11  ;;  %v2715_v5 = vsel %vm691_vm4, %v8245_v13, %v8246_v41  ;;  %v2716_v27 = vsel %vm691_vm4, %v8241_v9, %v8242_v53  ;;  %v2108_v40 = vpop.permute.xlu1 %2107  ;;  %v2767_v2 = vmul.f32 %v7275_v0, %v2713_v52  ;;  %v2772_v39 = vmul.f32 %v7253_v50, %v2731_v25 }
 0x428   : > { %4483 = vmatpush1.bf16.msra.mxu1 %v4482_v38  ;;  %v2110_v44 = vpop.permute.xlu0 %2109  ;;  %v2734_v20 = vsel %vm691_vm4, %v6944_v7, %v6914_v8  ;;  %v2733_v38 = vsel %vm691_vm4, %v6946_v16, %v8247_v57  ;;  %v7462_v9 = vrot.slane %v4152_v10, %v5087_v19  ;;  %v4488_v53 = vpack.c.bf16 %v2770_v51, %v2768_v24 }
 0x429   : > { %4485 = vmatprep.subr.bf16.mxu1 %v4484_v34  ;;  %v4490_v61 = vpack.c.bf16 %v2769_v62, %v2767_v2  ;;  %v2771_v6 = vmul.f32 %v7275_v0, %v2715_v5  ;;  %v2773_v52 = vmul.f32 %v7275_v0, %v2716_v27  ;;  %v4492_v41 = vpack.c.bf16 %v2774_v36, %v2772_v39 }
 0x42a   : > { %3201 = vrot.lane.b32.xlu0 %v6254_v43, %s8206_s11  ;;  %v2778_v25 = vmul.f32 %v7253_v50, %v2734_v20  ;;  %v2776_v34 = vmul.f32 %v7253_v50, %v2733_v38  ;;  %v2718_v50 = vsel %vm691_vm4, %v6914_v8, %v6944_v7  ;;  %v2892_v5 = vsel %vm785_vm5, %v7035_v46, %v6999_v28 }
 0x42b   : > { %3199 = vrot.lane.b32.xlu1 %v6232_v32, %s8206_s11  ;;  %v2140_v32 = vpop.permute.xlu1 %2139  ;;  %v2891_v8 = vsel %vm785_vm5, %v7037_v4, %v7001_v60  ;;  %v7505_v27 = vrot.slane %v4152_v10, %v5097_v21  ;;  %v2777_v20 = vmul.f32 %v7275_v0, %v2718_v50  ;;  %v2876_v38 = vsel %vm785_vm5, %v6999_v28, %v7035_v46 }
 0x42c   : > { %4487 = vmatpush1.bf16.msra.mxu1 %v4486_v23  ;;  %v2142_v13 = vpop.permute.xlu0 %2141  ;;  %v2163_v23 = vsel %vm393_vm1, %v2108_v40, %v2140_v32  ;;  %v2179_v36 = vsel %vm393_vm1, %v2140_v32, %v2108_v40  ;;  %v2922_v10 = vmul.f32 %v7462_v9, %v2892_v5  ;;  %v2894_v28 = vsel %vm785_vm5, %v7146_v42, %v7126_v48 }
 0x42d   : > { %v2164_v43 = vsel %vm393_vm1, %v2110_v44, %v2142_v13  ;;  %v2180_v19 = vsel %vm393_vm1, %v2142_v13, %v2110_v44  ;;  %4489 = vmatprep.subr.bf16.mxu1 %v4488_v53  ;;  %v2215_v44 = vmul.f32 %v7082_v49, %v2179_v36  ;;  %v2216_v24 = vmul.f32 %v7085_v29, %v2163_v23 }
 0x42e   : > { %v2217_v51 = vmul.f32 %v7082_v49, %v2180_v19  ;;  %v2218_v62 = vmul.f32 %v7085_v29, %v2164_v43  ;;  %3001 = vrot.lane.b32.xlu0 %v8214_v37, %s4826_s13  ;;  %v2717_v19 = vsel %vm691_vm4, %v8247_v57, %v6946_v16  ;;  %v4494_v16 = vpack.c.bf16 %v2773_v52, %v2771_v6 }
 0x42f   : > { %2999 = vrot.lane.b32.xlu1 %v8213_v17, %s4826_s13  ;;  %v7507_v2 = vpop.permute.xlu1 %2831  ;;  %v2775_v57 = vmul.f32 %v7275_v0, %v2717_v19  ;;  %v4496_v53 = vpack.c.bf16 %v2778_v25, %v2776_v34  ;;  %v2920_v6 = vmul.f32 %v7462_v9, %v2891_v8  ;;  %v2893_v46 = vsel %vm785_vm5, %v7152_v26, %v7128_v14 }
 0x430   : > { %4491 = vmatpush1.bf16.msra.mxu1 %v4490_v61  ;;  %v7502_v7 = vpop.permute.xlu0 %2833  ;;  %v4358_v40 = vpack.c.bf16 %v2217_v51, %v2215_v44  ;;  %v4356_v39 = vpack.c.bf16 %v2218_v62, %v2216_v24  ;;  %v2875_v61 = vsel %vm785_vm5, %v7001_v60, %v7037_v4  ;;  %v2878_v60 = vsel %vm785_vm5, %v7126_v48, %v7146_v42 }
 0x431   : > { %4493 = vmatprep.subr.bf16.mxu1 %v4492_v41  ;;  %v2877_v4 = vsel %vm785_vm5, %v7128_v14, %v7152_v26  ;;  %v2896_v52 = vsel %vm785_vm5, %v7203_v3, %v7191_v47  ;;  %v2895_v13 = vsel %vm785_vm5, %v7205_v45, %v7193_v11  ;;  %v4498_v25 = vpack.c.bf16 %v2777_v20, %v2775_v57 }
 0x432   : > { %3033 = vrot.lane.b32.xlu0 %v8212_v31, %s4826_s13  ;;  %4357 = vmatprep.subr.bf16.mxu0 %v4356_v39  ;;  %v2921_v48 = vmul.f32 %v7505_v27, %v2876_v38  ;;  %v2919_v42 = vmul.f32 %v7505_v27, %v2875_v61  ;;  %v2926_v14 = vmul.f32 %v7462_v9, %v2894_v28 }
 0x433   : > { %3031 = vrot.lane.b32.xlu1 %v8211_v59, %s4826_s13  ;;  %4359 = vmatpush1.bf16.msra.mxu0 %v4358_v40  ;;  %v7551_v41 = vpop.permute.xlu1 %2863  ;;  %v2924_v26 = vmul.f32 %v7462_v9, %v2893_v46  ;;  %v4500_v34 = vpack.c.bf16 %v2922_v10, %v2920_v6  ;;  %v2925_v43 = vmul.f32 %v7505_v27, %v2878_v60 }
 0x434   : > { %4495 = vmatpush1.bf16.msra.mxu1 %v4494_v16  ;;  %v7533_v0 = vpop.permute.xlu0 %2865  ;;  %v2923_v32 = vmul.f32 %v7505_v27, %v2877_v4  ;;  %v2930_v51 = vmul.f32 %v7462_v9, %v2896_v52  ;;  %v2928_v62 = vmul.f32 %v7462_v9, %v2895_v13  ;;  %v4502_v50 = vpack.c.bf16 %v2921_v48, %v2919_v42 }
 0x435   : > { %4497 = vmatprep.subr.bf16.mxu1 %v4496_v53  ;;  %v2898_v19 = vsel %vm785_vm5, %v7281_v35, %v7250_v1  ;;  %v2897_v44 = vsel %vm785_vm5, %v7292_v15, %v7255_v22  ;;  %v2882_v38 = vsel %vm785_vm5, %v7250_v1, %v7281_v35  ;;  %v2881_v53 = vsel %vm785_vm5, %v7255_v22, %v7292_v15 }
 0x436   : > { %3173 = vrot.lane.b32.xlu0 %v8214_v37, %s8206_s11  ;;  %v2880_v37 = vsel %vm785_vm5, %v7191_v47, %v7203_v3  ;;  %v4504_v47 = vpack.c.bf16 %v2926_v14, %v2924_v26  ;;  %v4508_v5 = vpack.c.bf16 %v2930_v51, %v2928_v62  ;;  %v2934_v8 = vmul.f32 %v7462_v9, %v2898_v19  ;;  %v8248_v14 = vld [vmem:[#allocation26_spill] sm:$0xff] }
 0x437   : > { %3171 = vrot.lane.b32.xlu1 %v8213_v17, %s8206_s11  ;;  %v2879_v17 = vsel %vm785_vm5, %v7193_v11, %v7205_v45  ;;  %v2112_v36 = vpop.permute.xlu1 %2111  ;;  %v4506_v11 = vpack.c.bf16 %v2925_v43, %v2923_v32  ;;  %v2929_v3 = vmul.f32 %v7505_v27, %v2880_v37  ;;  %v2932_v16 = vmul.f32 %v7462_v9, %v2897_v44 }
 0x438   : > { %4499 = vmatpush1.bf16.msra.mxu1 %v4498_v25  ;;  %v2114_v23 = vpop.permute.xlu0 %2113  ;;  %v2927_v45 = vmul.f32 %v7505_v27, %v2879_v17  ;;  %v2900_v6 = vsel %vm785_vm5, %v7403_v30, %v7371_v12  ;;  %v2899_v1 = vsel %vm785_vm5, %v7415_v58, %v7378_v56  ;;  %v2933_v60 = vmul.f32 %v7505_v27, %v2882_v38 }
 0x439   : > { %4501 = vmatprep.subr.bf16.mxu1 %v4500_v34  ;;  %v2931_v4 = vmul.f32 %v7505_v27, %v2881_v53  ;;  %v2884_v52 = vsel %vm785_vm5, %v7371_v12, %v7403_v30  ;;  %v4512_v13 = vpack.c.bf16 %v2934_v8, %v2932_v16  ;;  %v2938_v25 = vmul.f32 %v7462_v9, %v2900_v6 }
 0x43a   : > { %3205 = vrot.lane.b32.xlu0 %v8212_v31, %s8206_s11  ;;  %v4510_v22 = vpack.c.bf16 %v2929_v3, %v2927_v45  ;;  %v2883_v48 = vsel %vm785_vm5, %v7378_v56, %v7415_v58  ;;  %v2936_v42 = vmul.f32 %v7462_v9, %v2899_v1  ;;  %v2902_v12 = vsel %vm785_vm5, %v7533_v0, %v7502_v7 }
 0x43b   : > { %3203 = vrot.lane.b32.xlu1 %v8211_v59, %s8206_s11  ;;  %3884 = vmatmul.mubr.f32.vlgmr.msra.gmra.mrb[32].mxu1 %v7150_v54  ;;  %v2144_v54 = vpop.permute.xlu1 %2143  ;;  %v2901_v30 = vsel %vm785_vm5, %v7551_v41, %v7507_v2  ;;  %v2886_v56 = vsel %vm785_vm5, %v7502_v7, %v7533_v0  ;;  %v2885_v58 = vsel %vm785_vm5, %v7507_v2, %v7551_v41 }
 0x43c   : > { %4503 = vmatpush1.bf16.msra.mxu1 %v4502_v50  ;;  %v2146_v24 = vpop.permute.xlu0 %2145  ;;  %v2165_v20 = vsel %vm393_vm1, %v2112_v36, %v2144_v54  ;;  %v2181_v57 = vsel %vm393_vm1, %v2144_v54, %v2112_v36  ;;  %v4514_v43 = vpack.c.bf16 %v2933_v60, %v2931_v4  ;;  %v2937_v32 = vmul.f32 %v7505_v27, %v2884_v52 }
 0x43d   : > { %v2166_v31 = vsel %vm393_vm1, %v2114_v23, %v2146_v24  ;;  %v2182_v59 = vsel %vm393_vm1, %v2146_v24, %v2114_v23  ;;  %4505 = vmatprep.subr.bf16.mxu1 %v4504_v47  ;;  %v2219_v10 = vmul.f32 %v7082_v49, %v2181_v57  ;;  %v2220_v61 = vmul.f32 %v7085_v29, %v2165_v20  ;;  %v8250_v57 = vld [vmem:[#allocation33_spill] sm:$0xff] }
 0x43e   : > { %v2221_v40 = vmul.f32 %v7082_v49, %v2182_v59  ;;  %v2222_v39 = vmul.f32 %v7085_v29, %v2166_v31  ;;  %3005 = vrot.lane.b32.xlu0 %v8218_v33, %s4826_s13  ;;  %v2935_v51 = vmul.f32 %v7505_v27, %v2883_v48  ;;  %v2942_v62 = vmul.f32 %v7462_v9, %v2902_v12  ;;  %v8253_v12 = vld [vmem:[#allocation34_spill] sm:$0xff] }
 0x43f   : > { %3003 = vrot.lane.b32.xlu1 %v8217_v63, %s4826_s13  ;;  %v2836_v28 = vpop.permute.xlu1 %2835  ;;  %v2940_v23 = vmul.f32 %v7462_v9, %v2901_v30  ;;  %v4516_v7 = vpack.c.bf16 %v2938_v25, %v2936_v42  ;;  %v2941_v2 = vmul.f32 %v7505_v27, %v2886_v56  ;;  %v2939_v0 = vmul.f32 %v7505_v27, %v2885_v58 }
 0x440   : > { %4507 = vmatpush1.bf16.msra.mxu1 %v4506_v11  ;;  %v2838_v35 = vpop.permute.xlu0 %2837  ;;  %v4362_v15 = vpack.c.bf16 %v2221_v40, %v2219_v10  ;;  %v4360_v46 = vpack.c.bf16 %v2222_v39, %v2220_v61  ;;  %v4518_v36 = vpack.c.bf16 %v2937_v32, %v2935_v51  ;;  %v8249_v40 = vld [vmem:[#allocation40_spill] sm:$0xff]  ;;  %v3644_v30 = vcombine.high %v8253_v12, %v8253_v12 }
 0x441   : > { %4509 = vmatprep.subr.bf16.mxu1 %v4508_v5  ;;  %v4520_v47 = vpack.c.bf16 %v2942_v62, %v2940_v23  ;;  %v4522_v11 = vpack.c.bf16 %v2941_v2, %v2939_v0 }
 0x442   : > { %3037 = vrot.lane.b32.xlu0 %v8216_v55, %s4826_s13  ;;  %4361 = vmatprep.subr.bf16.mxu0 %v4360_v46 }
 0x443   : > { %3035 = vrot.lane.b32.xlu1 %v8248_v14, %s4826_s13  ;;  %4363 = vmatpush1.bf16.msra.mxu0 %v4362_v15  ;;  %v2868_v34 = vpop.permute.xlu1 %2867 }
 0x444   : > { %4511 = vmatpush1.bf16.msra.mxu1 %v4510_v22  ;;  %v2870_v26 = vpop.permute.xlu0 %2869  ;;  %v2903_v37 = vsel %vm785_vm5, %v2868_v34, %v2836_v28  ;;  %v8252_v22 = vld [vmem:[#allocation37_spill] sm:$0xff] }
 0x445   : > { %4513 = vmatprep.subr.bf16.mxu1 %v4512_v13  ;;  %v2904_v41 = vsel %vm785_vm5, %v2870_v26, %v2838_v35  ;;  %v2888_v50 = vsel %vm785_vm5, %v2838_v35, %v2870_v26  ;;  %v2944_v44 = vmul.f32 %v7462_v9, %v2903_v37  ;;  %v8251_v35 = vld [vmem:[#allocation42_spill] sm:$0xff] }
 0x446   : > { %3177 = vrot.lane.b32.xlu0 %v8218_v33, %s8206_s11  ;;  %v2946_v19 = vmul.f32 %v7462_v9, %v2904_v41  ;;  %v2945_v45 = vmul.f32 %v7505_v27, %v2888_v50  ;;  %v8255_v41 = vld [vmem:[#allocation48_spill] sm:$0xff] }
 0x447   : > { %3175 = vrot.lane.b32.xlu1 %v8217_v63, %s8206_s11  ;;  %v2116_v17 = vpop.permute.xlu1 %2115  ;;  %v2887_v63 = vsel %vm785_vm5, %v2836_v28, %v2868_v34  ;;  %v8254_v34 = vld [vmem:[#allocation58_spill] sm:$0xff] }
 0x448   : > { %4515 = vmatpush1.bf16.msra.mxu1 %v4514_v43  ;;  %v2118_v33 = vpop.permute.xlu0 %2117  ;;  %v2943_v24 = vmul.f32 %v7505_v27, %v2887_v63  ;;  %v4524_v38 = vpack.c.bf16 %v2946_v19, %v2944_v44  ;;  %v7721_v43 = vrot.slane %v3644_v30, %v8254_v34 }
 0x449   : > { %4517 = vmatprep.subr.bf16.mxu1 %v4516_v7 }
 0x44a   : > { %3209 = vrot.lane.b32.xlu0 %v8216_v55, %s8206_s11  ;;  %v4526_v1 = vpack.c.bf16 %v2945_v45, %v2943_v24 }
 0x44b   : > { %3207 = vrot.lane.b32.xlu1 %v8248_v14, %s8206_s11  ;;  %v2148_v8 = vpop.permute.xlu1 %2147 }
 0x44c   : > { %4519 = vmatpush1.bf16.msra.mxu1 %v4518_v36  ;;  %v2150_v3 = vpop.permute.xlu0 %2149  ;;  %v2167_v59 = vsel %vm393_vm1, %v2116_v17, %v2148_v8  ;;  %v2183_v54 = vsel %vm393_vm1, %v2148_v8, %v2116_v17  ;;  %v8256_v17 = vld [vmem:[#allocation46_spill] sm:$0xff] }
 0x44d   : > { %v2168_v5 = vsel %vm393_vm1, %v2118_v33, %v2150_v3  ;;  %v2184_v55 = vsel %vm393_vm1, %v2150_v3, %v2118_v33  ;;  %4521 = vmatprep.subr.bf16.mxu1 %v4520_v47  ;;  %v2223_v39 = vmul.f32 %v7082_v49, %v2183_v54  ;;  %v2224_v20 = vmul.f32 %v7085_v29, %v2167_v59  ;;  %v4153_v36 = vld [vmem:[%s8022_s1 + $0x7] ss:$8 sm:$0x3]  ;;  %v8257_v47 = vld [vmem:[#allocation53_spill] sm:$0xff] }
 0x44e   : > { %v2225_v16 = vmul.f32 %v7082_v49, %v2184_v55  ;;  %v2226_v31 = vmul.f32 %v7085_v29, %v2168_v5  ;;  %3009 = vrot.lane.b32.xlu0 %v8249_v40, %s4826_s13  ;;  %v8259_v3 = vld [vmem:[#allocation51_spill] sm:$0xff] }
 0x44f   : > { %3007 = vrot.lane.b32.xlu1 %v8250_v57, %s4826_s13 }
 0x450   : > { %4523 = vmatpush1.bf16.msra.mxu1 %v4522_v11  ;;  %v2842_v53 = vpop.permute.xlu0 %2841  ;;  %v4366_v10 = vpack.c.bf16 %v2225_v16, %v2223_v39  ;;  %v2840_v61 = vpop.permute.xlu1 %2839  ;;  %v4364_v6 = vpack.c.bf16 %v2226_v31, %v2224_v20  ;;  %v7749_v11 = vrot.slane %v4153_v36, %v5097_v21  ;;  %v8260_v39 = vld [vmem:[#allocation39_spill] sm:$0xff]  ;;  %v4154_v20 = vld [vmem:[%s8022_s1 + $0x10] ss:$8 sm:$0x3] }
 0x451   : > { %4525 = vmatprep.subr.bf16.mxu1 %v4524_v38  ;;  %v8261_v38 = vmov 0.0  }
 0x452   : > { %3041 = vrot.lane.b32.xlu0 %v8251_v35, %s4826_s13  ;;  %4365 = vmatprep.subr.bf16.mxu0 %v4364_v6  ;;  %v7780_v6 = vrot.slane %v4154_v20, %v5097_v21 }
 0x453   : > { %3039 = vrot.lane.b32.xlu1 %v8252_v22, %s4826_s13  ;;  %4367 = vmatpush1.bf16.msra.mxu0 %v4366_v10 }
 0x454   : > { %4527 = vmatpush1.bf16.msra.mxu1 %v4526_v1  ;;  %v2874_v15 = vpop.permute.xlu0 %2873 }
 0x455   : > { %v2890_v28 = vsel %vm785_vm5, %v2842_v53, %v2874_v15  ;;  %v2906_v46 = vsel %vm785_vm5, %v2874_v15, %v2842_v53  ;;  %v2872_v60 = vpop.permute.xlu1 %2871 }
 0x456   : > { %v2949_v4 = vmul.f32 %v7505_v27, %v2890_v28  ;;  %v2950_v52 = vmul.f32 %v7462_v9, %v2906_v46  ;;  %v2889_v13 = vsel %vm785_vm5, %v2840_v61, %v2872_v60  ;;  %v2905_v25 = vsel %vm785_vm5, %v2872_v60, %v2840_v61  ;;  %3181 = vrot.lane.b32.xlu0 %v8249_v40, %s8206_s11 }
 0x457   : > { %v2947_v48 = vmul.f32 %v7505_v27, %v2889_v13  ;;  %v2948_v42 = vmul.f32 %v7462_v9, %v2905_v25  ;;  %3179 = vrot.lane.b32.xlu1 %v8250_v57, %s8206_s11  ;;  %v3660_v27 = vcombine.high %v7721_v43, %v7721_v43 }
 0x458   : > { %v2122_v14 = vpop.permute.xlu0 %2121 }
 0x459   : > { %v4530_v26 = vpack.c.bf16 %v2949_v4, %v2947_v48  ;;  %v2120_v56 = vpop.permute.xlu1 %2119  ;;  %v4528_v58 = vpack.c.bf16 %v2950_v52, %v2948_v42  ;;  %3954 = vmatprep.mubr.f32.mxu1 %v3660_v27 }
 0x45a   : > { %3213 = vrot.lane.b32.xlu0 %v8251_v35, %s8206_s11 }
 0x45b   : > { %3211 = vrot.lane.b32.xlu1 %v8252_v22, %s8206_s11  ;;  %4529 = vmatprep.subr.bf16.mxu1 %v4528_v58  ;;  %v3618_v22 = vld [vmem:[%s8026_s5] sm:$0x3] }
 0x45c   : > { %4531 = vmatpush1.bf16.msra.mxu1 %v4530_v26  ;;  %v2154_v9 = vpop.permute.xlu0 %2153 }
 0x45d   : > { %v2170_v32 = vsel %vm393_vm1, %v2122_v14, %v2154_v9  ;;  %v2186_v51 = vsel %vm393_vm1, %v2154_v9, %v2122_v14  ;;  %v2152_v62 = vpop.permute.xlu1 %2151 }
 0x45e   : > { %v2229_v23 = vmul.f32 %v7082_v49, %v2186_v51  ;;  %v2230_v7 = vmul.f32 %v7085_v29, %v2170_v32  ;;  %v2169_v2 = vsel %vm393_vm1, %v2120_v56, %v2152_v62  ;;  %v2185_v0 = vsel %vm393_vm1, %v2152_v62, %v2120_v56  ;;  %3013 = vrot.lane.b32.xlu0 %v8255_v41, %s4826_s13 }
 0x45f   : > { %v2227_v37 = vmul.f32 %v7082_v49, %v2185_v0  ;;  %v2228_v33 = vmul.f32 %v7085_v29, %v2169_v2  ;;  %3011 = vrot.lane.b32.xlu1 %v8256_v17, %s4826_s13  ;;  %v8258_v49 = vld [vmem:[#allocation7_spill] sm:$0xff] }
 0x460   : > { %v2986_v50 = vpop.permute.xlu0 %2985  ;;  %v7752_v29 = vrot.slane %v4153_v36, %v8258_v49  ;;  %v7783_v1 = vrot.slane %v4154_v20, %v8258_v49 }
 0x461   : > { %v4370_v63 = vpack.c.bf16 %v2229_v23, %v2227_v37  ;;  %v2984_v19 = vpop.permute.xlu1 %2983  ;;  %v4368_v44 = vpack.c.bf16 %v2230_v7, %v2228_v33 }
 0x462   : > { %3045 = vrot.lane.b32.xlu0 %v8257_v47, %s4826_s13 }
 0x463   : > { %3043 = vrot.lane.b32.xlu1 %v8259_v3, %s4826_s13  ;;  %4369 = vmatprep.subr.bf16.mxu0 %v4368_v44  ;;  %s4756_s13 = scalar_lea.vmem %s7981_s19, 64 }
 0x464   : > { %4371 = vmatpush1.bf16.msra.mxu0 %v4370_v63  ;;  %v3018_v45 = vpop.permute.xlu0 %3017  ;;  %p4757_p11 = scmp.ne.s32.totalorder %s7981_s19, %s4756_s13 }
 0x465   : > { %v3048_v24 = vsel %vm879_vm6, %v2986_v50, %v3018_v45  ;;  %v3064_v5 = vsel %vm879_vm6, %v3018_v45, %v2986_v50  ;;  %v3016_v55 = vpop.permute.xlu1 %3015 }
 0x466   : > { %v3093_v8 = vmul.f32 %v7749_v11, %v3048_v24  ;;  %v3094_v16 = vmul.f32 %v7752_v29, %v3064_v5  ;;  %v3047_v31 = vsel %vm879_vm6, %v2984_v19, %v3016_v55  ;;  %v3063_v59 = vsel %vm879_vm6, %v3016_v55, %v2984_v19  ;;  %3185 = vrot.lane.b32.xlu0 %v8255_v41, %s8206_s11  ;;  %p4758_p12 = pnand %p4757_p11, %p4905_p5 }
 0x467   : > { %v3091_v54 = vmul.f32 %v7749_v11, %v3047_v31  ;;  %v3092_v40 = vmul.f32 %v7752_v29, %v3063_v59  ;;  %3183 = vrot.lane.b32.xlu1 %v8256_v17, %s8206_s11  ;;  %3742 = vmatmul.mubr.f32.vlgmr.msra.gmra.mrb[32].mxu0 %v8260_v39 }
 0x468   : > { %v3158_v57 = vpop.permute.xlu0 %3157  ;;  %4025 = vmatprep.mubr.f32.mxu0 %v8261_v38  ;;  %p4759_p13 = pneg %p4758_p12 }
 0x469   : > { %v4534_v53 = vpack.c.bf16 %v3093_v8, %v3091_v54  ;;  %v3156_v10 = vpop.permute.xlu1 %3155  ;;  %v4532_v61 = vpack.c.bf16 %v3094_v16, %v3092_v40 }
 0x46a   : > { %3217 = vrot.lane.b32.xlu0 %v8257_v47, %s8206_s11 }
 0x46b   : > { %3215 = vrot.lane.b32.xlu1 %v8259_v3, %s8206_s11  ;;  %4533 = vmatprep.subr.bf16.mxu1 %v4532_v61  ;;  %s4163_s11 = sshll.u32 %s4888_s25, 6  ;;  %s4831_s25 = smov [#allocation4]  }
 0x46c   : > { %4535 = vmatpush1.bf16.msra.mxu1 %v4534_v53  ;;  %v3190_v35 = vpop.permute.xlu0 %3189  ;;  %s7979_s29 = scalar_lea.hbm %s8027_s6, %s4163_s11  ;;  %s4760_s16 = sshll.u32 %s4831_s25, 4  ;;  %s4761_s16 = int_to_ptr.vmem [resolvable:$false] %s4760_s16 }
 0x46d   : > { %v3220_v15 = vsel %vm973_vm7, %v3158_v57, %v3190_v35  ;;  %v3236_v21 = vsel %vm973_vm7, %v3190_v35, %v3158_v57  ;;  %v3188_v28 = vpop.permute.xlu1 %3187  ;;  %s4762_s17 = scalar_lea.vmem %s4761_s16, 128  ;;  %p4763_p0 = scmp.lt.s32.totalorder %s7981_s19, %s4761_s16 }
 0x46e   : > { %v3265_v46 = vmul.f32 %v7780_v6, %v3220_v15  ;;  %v3266_v60 = vmul.f32 %v7783_v1, %v3236_v21  ;;  %v3219_v4 = vsel %vm973_vm7, %v3156_v10, %v3188_v28  ;;  %v3235_v52 = vsel %vm973_vm7, %v3188_v28, %v3156_v10  ;;  %p4764_p1 = scmp.lt.s32.totalorder %s4762_s17, %s4756_s13 }
 0x46f   : > { %v3263_v13 = vmul.f32 %v7780_v6, %v3219_v4  ;;  %v3264_v25 = vmul.f32 %v7783_v1, %v3235_v52  ;;  %3621 = vperm.xlu1 %4753, %v3618_v22  }
 0x470   : > { %v2990_v48 = vpop.permute.xlu0 %2989  ;;  %p4765_p2 = por %p4764_p1, %p4763_p0 }
 0x471   : > { %v4566_v42 = vpack.c.bf16 %v3265_v46, %v3263_v13  ;;  %v2988_v14 = vpop.permute.xlu1 %2987  ;;  %v4564_v12 = vpack.c.bf16 %v3266_v60, %v3264_v25 }
 0x472   : > { %p4766_p3 = pnand %p4765_p2, %p4759_p13 }
 0x473   : > { %4565 = vmatprep.subr.bf16.mxu0 %v4564_v12 }
 0x474   : > { %4567 = vmatpush1.bf16.msra.mxu0 %v4566_v42  ;;  %v3022_v30 = vpop.permute.xlu0 %3021 }
 0x475   : > { %v3050_v26 = vsel %vm879_vm6, %v2990_v48, %v3022_v30  ;;  %v3066_v56 = vsel %vm879_vm6, %v3022_v30, %v2990_v48  ;;  %v3020_v58 = vpop.permute.xlu1 %3019 }
 0x476   : > { %v3097_v34 = vmul.f32 %v7749_v11, %v3050_v26  ;;  %v3098_v9 = vmul.f32 %v7752_v29, %v3066_v56  ;;  %v3049_v27 = vsel %vm879_vm6, %v2988_v14, %v3020_v58  ;;  %v3065_v32 = vsel %vm879_vm6, %v3020_v58, %v2988_v14 }
 0x477   : > { %v3095_v51 = vmul.f32 %v7749_v11, %v3049_v27  ;;  %v3096_v62 = vmul.f32 %v7752_v29, %v3065_v32 }
 0x478   : > { %v3162_v23 = vpop.permute.xlu0 %3161 }
 0x479   : > { %v4538_v7 = vpack.c.bf16 %v3097_v34, %v3095_v51  ;;  %v3160_v2 = vpop.permute.xlu1 %3159  ;;  %v4536_v0 = vpack.c.bf16 %v3098_v9, %v3096_v62 }
 0x47b   : > { %4537 = vmatprep.subr.bf16.mxu1 %v4536_v0 }
 0x47c   : > { %4539 = vmatpush1.bf16.msra.mxu1 %v4538_v7  ;;  %v3194_v41 = vpop.permute.xlu0 %3193 }
 0x47d   : > { %v3222_v37 = vsel %vm973_vm7, %v3162_v23, %v3194_v41  ;;  %v3238_v33 = vsel %vm973_vm7, %v3194_v41, %v3162_v23  ;;  %v3192_v17 = vpop.permute.xlu1 %3191 }
 0x47e   : > { %v3269_v36 = vmul.f32 %v7780_v6, %v3222_v37  ;;  %v3270_v50 = vmul.f32 %v7783_v1, %v3238_v33  ;;  %v3221_v63 = vsel %vm973_vm7, %v3160_v2, %v3192_v17  ;;  %v3237_v19 = vsel %vm973_vm7, %v3192_v17, %v3160_v2 }
 0x47f   : > { %v3267_v44 = vmul.f32 %v7780_v6, %v3221_v63  ;;  %v3268_v47 = vmul.f32 %v7783_v1, %v3237_v19 }
 0x480   : > { %v2994_v49 = vpop.permute.xlu0 %2993 }
 0x481   : > { %v4570_v3 = vpack.c.bf16 %v3269_v36, %v3267_v44  ;;  %v2992_v45 = vpop.permute.xlu1 %2991  ;;  %v4568_v24 = vpack.c.bf16 %v3270_v50, %v3268_v47 }
 0x483   : > { %4569 = vmatprep.subr.bf16.mxu0 %v4568_v24 }
 0x484   : > { %4571 = vmatpush1.bf16.msra.mxu0 %v4570_v3  ;;  %v3026_v5 = vpop.permute.xlu0 %3025 }
 0x485   : > { %v3052_v55 = vsel %vm879_vm6, %v2994_v49, %v3026_v5  ;;  %v3068_v8 = vsel %vm879_vm6, %v3026_v5, %v2994_v49  ;;  %v3024_v16 = vpop.permute.xlu1 %3023 }
 0x486   : > { %v3101_v31 = vmul.f32 %v7749_v11, %v3052_v55  ;;  %v3102_v59 = vmul.f32 %v7752_v29, %v3068_v8  ;;  %v3051_v54 = vsel %vm879_vm6, %v2992_v45, %v3024_v16  ;;  %v3067_v40 = vsel %vm879_vm6, %v3024_v16, %v2992_v45 }
 0x487   : > { %v3099_v39 = vmul.f32 %v7749_v11, %v3051_v54  ;;  %v3100_v20 = vmul.f32 %v7752_v29, %v3067_v40 }
 0x488   : > { %v3166_v57 = vpop.permute.xlu0 %3165 }
 0x489   : > { %v4542_v38 = vpack.c.bf16 %v3101_v31, %v3099_v39  ;;  %v3164_v53 = vpop.permute.xlu1 %3163  ;;  %v4540_v10 = vpack.c.bf16 %v3102_v59, %v3100_v20 }
 0x48b   : > { %4541 = vmatprep.subr.bf16.mxu1 %v4540_v10 }
 0x48c   : > { %4543 = vmatpush1.bf16.msra.mxu1 %v4542_v38  ;;  %v3198_v61 = vpop.permute.xlu0 %3197 }
 0x48d   : > { %v3224_v35 = vsel %vm973_vm7, %v3166_v57, %v3198_v61  ;;  %v3240_v22 = vsel %vm973_vm7, %v3198_v61, %v3166_v57  ;;  %v3196_v15 = vpop.permute.xlu1 %3195 }
 0x48e   : > { %v3273_v21 = vmul.f32 %v7780_v6, %v3224_v35  ;;  %v3274_v28 = vmul.f32 %v7783_v1, %v3240_v22  ;;  %v3223_v46 = vsel %vm973_vm7, %v3164_v53, %v3196_v15  ;;  %v3239_v60 = vsel %vm973_vm7, %v3196_v15, %v3164_v53 }
 0x48f   : > { %v3271_v4 = vmul.f32 %v7780_v6, %v3223_v46  ;;  %v3272_v52 = vmul.f32 %v7783_v1, %v3239_v60 }
 0x490   : > { %v2998_v13 = vpop.permute.xlu0 %2997 }
 0x491   : > { %v4574_v25 = vpack.c.bf16 %v3273_v21, %v3271_v4  ;;  %v2996_v48 = vpop.permute.xlu1 %2995  ;;  %v4572_v42 = vpack.c.bf16 %v3274_v28, %v3272_v52 }
 0x493   : > { %4573 = vmatprep.subr.bf16.mxu0 %v4572_v42 }
 0x494   : > { %4575 = vmatpush1.bf16.msra.mxu0 %v4574_v25  ;;  %v3030_v14 = vpop.permute.xlu0 %3029 }
 0x495   : > { %v3054_v12 = vsel %vm879_vm6, %v2998_v13, %v3030_v14  ;;  %v3070_v30 = vsel %vm879_vm6, %v3030_v14, %v2998_v13  ;;  %v3028_v26 = vpop.permute.xlu1 %3027 }
 0x496   : > { %v3105_v56 = vmul.f32 %v7749_v11, %v3054_v12  ;;  %v3106_v58 = vmul.f32 %v7752_v29, %v3070_v30  ;;  %v3053_v34 = vsel %vm879_vm6, %v2996_v48, %v3028_v26  ;;  %v3069_v9 = vsel %vm879_vm6, %v3028_v26, %v2996_v48 }
 0x497   : > { %v3103_v27 = vmul.f32 %v7749_v11, %v3053_v34  ;;  %v3104_v32 = vmul.f32 %v7752_v29, %v3069_v9 }
 0x498   : > { %v3170_v51 = vpop.permute.xlu0 %3169 }
 0x499   : > { %v4546_v62 = vpack.c.bf16 %v3105_v56, %v3103_v27  ;;  %v3168_v23 = vpop.permute.xlu1 %3167  ;;  %v4544_v7 = vpack.c.bf16 %v3106_v58, %v3104_v32 }
 0x49b   : > { %4545 = vmatprep.subr.bf16.mxu1 %v4544_v7 }
 0x49c   : > { %4547 = vmatpush1.bf16.msra.mxu1 %v4546_v62  ;;  %v3202_v2 = vpop.permute.xlu0 %3201 }
 0x49d   : > { %v3226_v0 = vsel %vm973_vm7, %v3170_v51, %v3202_v2  ;;  %v3242_v41 = vsel %vm973_vm7, %v3202_v2, %v3170_v51  ;;  %v3200_v37 = vpop.permute.xlu1 %3199 }
 0x49e   : > { %v3277_v33 = vmul.f32 %v7780_v6, %v3226_v0  ;;  %v3278_v17 = vmul.f32 %v7783_v1, %v3242_v41  ;;  %v3225_v36 = vsel %vm973_vm7, %v3168_v23, %v3200_v37  ;;  %v3241_v50 = vsel %vm973_vm7, %v3200_v37, %v3168_v23 }
 0x49f   : > { %v3275_v63 = vmul.f32 %v7780_v6, %v3225_v36  ;;  %v3276_v19 = vmul.f32 %v7783_v1, %v3241_v50 }
 0x4a0   : > { %v3002_v44 = vpop.permute.xlu0 %3001 }
 0x4a1   : > { %v4578_v47 = vpack.c.bf16 %v3277_v33, %v3275_v63  ;;  %v3000_v49 = vpop.permute.xlu1 %2999  ;;  %v4576_v3 = vpack.c.bf16 %v3278_v17, %v3276_v19 }
 0x4a3   : > { %4577 = vmatprep.subr.bf16.mxu0 %v4576_v3 }
 0x4a4   : > { %4579 = vmatpush1.bf16.msra.mxu0 %v4578_v47  ;;  %v3034_v45 = vpop.permute.xlu0 %3033 }
 0x4a5   : > { %v3056_v24 = vsel %vm879_vm6, %v3002_v44, %v3034_v45  ;;  %v3072_v5 = vsel %vm879_vm6, %v3034_v45, %v3002_v44  ;;  %v3032_v55 = vpop.permute.xlu1 %3031 }
 0x4a6   : > { %v3109_v8 = vmul.f32 %v7749_v11, %v3056_v24  ;;  %v3110_v16 = vmul.f32 %v7752_v29, %v3072_v5  ;;  %v3055_v31 = vsel %vm879_vm6, %v3000_v49, %v3032_v55  ;;  %v3071_v59 = vsel %vm879_vm6, %v3032_v55, %v3000_v49 }
 0x4a7   : > { %v3107_v54 = vmul.f32 %v7749_v11, %v3055_v31  ;;  %v3108_v40 = vmul.f32 %v7752_v29, %v3071_v59 }
 0x4a8   : > { %v3174_v39 = vpop.permute.xlu0 %3173 }
 0x4a9   : > { %v4550_v20 = vpack.c.bf16 %v3109_v8, %v3107_v54  ;;  %v3172_v57 = vpop.permute.xlu1 %3171  ;;  %v4548_v38 = vpack.c.bf16 %v3110_v16, %v3108_v40 }
 0x4ab   : > { %4549 = vmatprep.subr.bf16.mxu1 %v4548_v38 }
 0x4ac   : > { %4551 = vmatpush1.bf16.msra.mxu1 %v4550_v20  ;;  %v3206_v53 = vpop.permute.xlu0 %3205 }
 0x4ad   : > { %v3228_v10 = vsel %vm973_vm7, %v3174_v39, %v3206_v53  ;;  %v3244_v61 = vsel %vm973_vm7, %v3206_v53, %v3174_v39  ;;  %v3204_v35 = vpop.permute.xlu1 %3203 }
 0x4ae   : > { %v3281_v22 = vmul.f32 %v7780_v6, %v3228_v10  ;;  %v3282_v15 = vmul.f32 %v7783_v1, %v3244_v61  ;;  %v3227_v21 = vsel %vm973_vm7, %v3172_v57, %v3204_v35  ;;  %v3243_v28 = vsel %vm973_vm7, %v3204_v35, %v3172_v57 }
 0x4af   : > { %v3279_v46 = vmul.f32 %v7780_v6, %v3227_v21  ;;  %v3280_v60 = vmul.f32 %v7783_v1, %v3243_v28 }
 0x4b0   : > { %v3006_v4 = vpop.permute.xlu0 %3005 }
 0x4b1   : > { %v4582_v52 = vpack.c.bf16 %v3281_v22, %v3279_v46  ;;  %v3004_v13 = vpop.permute.xlu1 %3003  ;;  %v4580_v25 = vpack.c.bf16 %v3282_v15, %v3280_v60 }
 0x4b3   : > { %4581 = vmatprep.subr.bf16.mxu0 %v4580_v25 }
 0x4b4   : > { %4583 = vmatpush1.bf16.msra.mxu0 %v4582_v52  ;;  %v3038_v48 = vpop.permute.xlu0 %3037 }
 0x4b5   : > { %v3058_v42 = vsel %vm879_vm6, %v3006_v4, %v3038_v48  ;;  %v3074_v14 = vsel %vm879_vm6, %v3038_v48, %v3006_v4  ;;  %v3036_v12 = vpop.permute.xlu1 %3035 }
 0x4b6   : > { %v3113_v30 = vmul.f32 %v7749_v11, %v3058_v42  ;;  %v3114_v26 = vmul.f32 %v7752_v29, %v3074_v14  ;;  %v3057_v56 = vsel %vm879_vm6, %v3004_v13, %v3036_v12  ;;  %v3073_v58 = vsel %vm879_vm6, %v3036_v12, %v3004_v13 }
 0x4b7   : > { %v3111_v34 = vmul.f32 %v7749_v11, %v3057_v56  ;;  %v3112_v9 = vmul.f32 %v7752_v29, %v3073_v58 }
 0x4b8   : > { %v3178_v27 = vpop.permute.xlu0 %3177 }
 0x4b9   : > { %v4554_v32 = vpack.c.bf16 %v3113_v30, %v3111_v34  ;;  %v3176_v51 = vpop.permute.xlu1 %3175  ;;  %v4552_v62 = vpack.c.bf16 %v3114_v26, %v3112_v9 }
 0x4bb   : > { %4553 = vmatprep.subr.bf16.mxu1 %v4552_v62 }
 0x4bc   : > { %4555 = vmatpush1.bf16.msra.mxu1 %v4554_v32  ;;  %v3210_v23 = vpop.permute.xlu0 %3209 }
 0x4bd   : > { %v3230_v7 = vsel %vm973_vm7, %v3178_v27, %v3210_v23  ;;  %v3246_v2 = vsel %vm973_vm7, %v3210_v23, %v3178_v27  ;;  %v3208_v0 = vpop.permute.xlu1 %3207 }
 0x4be   : > { %v3285_v41 = vmul.f32 %v7780_v6, %v3230_v7  ;;  %v3286_v37 = vmul.f32 %v7783_v1, %v3246_v2  ;;  %v3229_v33 = vsel %vm973_vm7, %v3176_v51, %v3208_v0  ;;  %v3245_v17 = vsel %vm973_vm7, %v3208_v0, %v3176_v51 }
 0x4bf   : > { %v3283_v36 = vmul.f32 %v7780_v6, %v3229_v33  ;;  %v3284_v50 = vmul.f32 %v7783_v1, %v3245_v17 }
 0x4c0   : > { %v3010_v63 = vpop.permute.xlu0 %3009 }
 0x4c1   : > { %v4586_v19 = vpack.c.bf16 %v3285_v41, %v3283_v36  ;;  %v3008_v44 = vpop.permute.xlu1 %3007  ;;  %v4584_v47 = vpack.c.bf16 %v3286_v37, %v3284_v50  ;;  %v4155_v36 = vld.sshfl [vmem:[%s8025_s4 + $0x10] sm:$0x3 pattern:$0x76325410] }
 0x4c3   : > { %4585 = vmatprep.subr.bf16.mxu0 %v4584_v47 }
 0x4c4   : > { %4587 = vmatpush1.bf16.msra.mxu0 %v4586_v19  ;;  %v3042_v49 = vpop.permute.xlu0 %3041 }
 0x4c5   : > { %v3060_v3 = vsel %vm879_vm6, %v3010_v63, %v3042_v49  ;;  %v3076_v45 = vsel %vm879_vm6, %v3042_v49, %v3010_v63  ;;  %v3040_v24 = vpop.permute.xlu1 %3039 }
 0x4c6   : > { %v3117_v5 = vmul.f32 %v7749_v11, %v3060_v3  ;;  %v3118_v55 = vmul.f32 %v7752_v29, %v3076_v45  ;;  %v3059_v8 = vsel %vm879_vm6, %v3008_v44, %v3040_v24  ;;  %v3075_v16 = vsel %vm879_vm6, %v3040_v24, %v3008_v44 }
 0x4c7   : > { %v3115_v31 = vmul.f32 %v7749_v11, %v3059_v8  ;;  %v3116_v59 = vmul.f32 %v7752_v29, %v3075_v16 }
 0x4c8   : > { %v3182_v54 = vpop.permute.xlu0 %3181 }
 0x4c9   : > { %v4558_v40 = vpack.c.bf16 %v3117_v5, %v3115_v31  ;;  %v3180_v39 = vpop.permute.xlu1 %3179  ;;  %v4556_v20 = vpack.c.bf16 %v3118_v55, %v3116_v59 }
 0x4cb   : > { %4557 = vmatprep.subr.bf16.mxu1 %v4556_v20 }
 0x4cc   : > { %4559 = vmatpush1.bf16.msra.mxu1 %v4558_v40  ;;  %v3214_v57 = vpop.permute.xlu0 %3213 }
 0x4cd   : > { %v3232_v38 = vsel %vm973_vm7, %v3182_v54, %v3214_v57  ;;  %v3248_v53 = vsel %vm973_vm7, %v3214_v57, %v3182_v54  ;;  %v3212_v10 = vpop.permute.xlu1 %3211 }
 0x4ce   : > { %v3289_v61 = vmul.f32 %v7780_v6, %v3232_v38  ;;  %v3290_v35 = vmul.f32 %v7783_v1, %v3248_v53  ;;  %v3231_v22 = vsel %vm973_vm7, %v3180_v39, %v3212_v10  ;;  %v3247_v15 = vsel %vm973_vm7, %v3212_v10, %v3180_v39 }
 0x4cf   : > { %v3287_v21 = vmul.f32 %v7780_v6, %v3231_v22  ;;  %v3288_v28 = vmul.f32 %v7783_v1, %v3247_v15 }
 0x4d0   : > { %v3014_v46 = vpop.permute.xlu0 %3013 }
 0x4d1   : > { %v4590_v60 = vpack.c.bf16 %v3289_v61, %v3287_v21  ;;  %v3012_v4 = vpop.permute.xlu1 %3011  ;;  %v4588_v52 = vpack.c.bf16 %v3290_v35, %v3288_v28 }
 0x4d3   : > { %4589 = vmatprep.subr.bf16.mxu0 %v4588_v52 }
 0x4d4   : > { %4591 = vmatpush1.bf16.msra.mxu0 %v4590_v60  ;;  %v3046_v13 = vpop.permute.xlu0 %3045 }
 0x4d5   : > { %v3062_v25 = vsel %vm879_vm6, %v3014_v46, %v3046_v13  ;;  %v3078_v48 = vsel %vm879_vm6, %v3046_v13, %v3014_v46  ;;  %v3044_v42 = vpop.permute.xlu1 %3043 }
 0x4d6   : > { %v3121_v14 = vmul.f32 %v7749_v11, %v3062_v25  ;;  %v3122_v12 = vmul.f32 %v7752_v29, %v3078_v48  ;;  %v3061_v30 = vsel %vm879_vm6, %v3012_v4, %v3044_v42  ;;  %v3077_v26 = vsel %vm879_vm6, %v3044_v42, %v3012_v4 }
 0x4d7   : > { %v3119_v56 = vmul.f32 %v7749_v11, %v3061_v30  ;;  %v3120_v58 = vmul.f32 %v7752_v29, %v3077_v26 }
 0x4d8   : > { %v3186_v34 = vpop.permute.xlu0 %3185 }
 0x4d9   : > { %v4562_v9 = vpack.c.bf16 %v3121_v14, %v3119_v56  ;;  %v3184_v27 = vpop.permute.xlu1 %3183  ;;  %v4560_v32 = vpack.c.bf16 %v3122_v12, %v3120_v58 }
 0x4db   : > { %4561 = vmatprep.subr.bf16.mxu1 %v4560_v32 }
 0x4dc   : > { %4563 = vmatpush1.bf16.msra.mxu1 %v4562_v9  ;;  %v3218_v51 = vpop.permute.xlu0 %3217 }
 0x4dd   : > { %v3234_v62 = vsel %vm973_vm7, %v3186_v34, %v3218_v51  ;;  %v3250_v23 = vsel %vm973_vm7, %v3218_v51, %v3186_v34  ;;  %v3216_v7 = vpop.permute.xlu1 %3215 }
 0x4de   : > { %v3293_v2 = vmul.f32 %v7780_v6, %v3234_v62  ;;  %v3294_v11 = vmul.f32 %v7783_v1, %v3250_v23  ;;  %v3233_v29 = vsel %vm973_vm7, %v3184_v27, %v3216_v7  ;;  %v3249_v0 = vsel %vm973_vm7, %v3216_v7, %v3184_v27 }
 0x4df   : > { %v3291_v41 = vmul.f32 %v7780_v6, %v3233_v29  ;;  %v3292_v37 = vmul.f32 %v7783_v1, %v3249_v0  ;;  %3955 = vmatmul.mubr.f32.vlgmr.msra.gmra.mrb[32].mxu1 %v7721_v43 }
 0x4e1   : > { %v4594_v33 = vpack.c.bf16 %v3293_v2, %v3291_v41  ;;  %v4592_v17 = vpack.c.bf16 %v3294_v11, %v3292_v37 }
 0x4e3   : > { %4593 = vmatprep.subr.bf16.mxu0 %v4592_v17 }
 0x4e4   : > { %4595 = vmatpush1.bf16.msra.mxu0 %v4594_v33 }
 0x4e7   : > { %4026 = vmatmul.mubr.f32.vlgmr.msra.gmra.mrb[34].mxu0 %v4155_v36 }
 0x4ee   : > { %v3622_v63 = vpop.permute.xlu1 %3621 }
 0x53a   : > { %v3743_v50 = vpop.f32.mrb[32].mxu0 }
 0x53b   : > { %v3745_v18 = vpop.f32.mrb[33].mxu0  ;;  %v3744_v19 = vadd.f32 %v3743_v50, %v3622_v63 }
 0x53c   : > { %v3746_v44 = vadd.f32 %v3745_v18, %v3622_v63 }
 0x5b2   : > { %v3956_v6 = vpop.f32.mrb[32].mxu1 }
 0x5b3   : > { %v4661_v1 = vadd.f32 %v3956_v6, %v3744_v19  ;;  %v3958_v47 = vpop.f32.mrb[33].mxu1 }
 0x5b4   : > { %v4664_v43 = vadd.f32 %v3958_v47, %v3746_v44 }
 0x5ba   : > { %v4027_v49 = vpop.f32.mrb[34].mxu0 }
 0x5bb   : > { %v4662_v3 = vadd.f32 %v4661_v1, %v4027_v49  ;;  %v4029_v45 = vpop.f32.mrb[35].mxu0 }
 0x5bc   : > { %v4665_v24 = vadd.f32 %v4664_v43, %v4029_v45 }
 0x5be   : > { %v4034_v5 = vcombine.low %v4662_v3, %v4665_v24 }
 0x5c0   : > { %4156 = vst.sshfl [vmem:[%s244_s12] sm:$0x33 pattern:$0x76325410] %v4034_v5 }
 0x5c1   : > { %4769 = shalt.err (!%p4766_p3)
}
 0x5c2   : > { %s4770_s28 = scalar_lea.hbm %s7979_s29, 64  ;;  %s4774_s15 = scalar_lea.hbm %s8027_s6, 128 }
 0x5c3   : > { %p4771_p4 = scmp.ne.s32.totalorder %s7979_s29, %s4770_s28  ;;  %p4775_p9 = scmp.lt.u32.totalorder %s7979_s29, %s8027_s6 }
 0x5c4   : > { %p4776_p10 = scmp.lt.u32.totalorder %s4774_s15, %s4770_s28  ;;  %p4778_p12 = scmp.lt.u32.totalorder %s4770_s28, %s7979_s29 }
 0x5c5   : > { %p4772_p7 = pnand %p4771_p4, %p4905_p5 }
 0x5c6   : > { %p4777_p11 = por %p4776_p10, %p4775_p9 }
 0x5c7   : > { %p4773_p8 = pneg %p4772_p7 }
 0x5c8   : > { %p4779_p13 = por %p4778_p12, %p4777_p11 }
 0x5ca   : > { %p4780_p0 = pnand %p4779_p13, %p4773_p8 }
 0x5cc   : > { %4783 = shalt.err (!%p4780_p0)
}
 0x5cd   : > { %4702 = dma.vmem_to_hbm [thread:$0]  (%p4905_p5), %s7981_s19, 64, %s7979_s29, %s4045_s14  }
 0x5ce PF: > { %p4708_p1 = scmp.ge.s32.totalorder %s4818_s24, 2  ;;  %s4071_s12 = sand.u32 1, %s4806_s21  }
 0x5cf   : > { %s4072_s20 = scalar_lea.sflag [#allocation5], %s4071_s12 }
 0x5d0   : > { %p4705_p2 = pnand %p4708_p1, %p4909_p6 }
 0x5d2   : > { %4801 = dma.done.wait (!%p4705_p2), %s4072_s20, 64  }
 0x5d3   : > { %4803 = vsyncadd (!%p4705_p2), %s4072_s20, 4294967232  ;;  %p16_p3 = scmp.ge.s32.totalorder %s4892_s27, 4   ;;  %s8262_s21 = smov %s4810_s22 }
 0x5d4   : > { %s8263_s22 = smov %s4814_s23  ;;  %s8264_s23 = smov %s4903_s30 }
 0x5d5   : > { %s8265_s24 = smov %s4892_s27  ;;  %18 = sbr.rel (!%p16_p3) target bundleno = 3 (0x3), region = 86 }
 0x5dc   :  { %4077 = vsyncpa [#allocation5], 1 }
 0x5dd   :  { %4079 = vsyncpa [#allocation5 + $0x1], 1 }

</bundles_post_ra>
